<compile_context>
chip_gen: v7x
topology: tpu7x:2x2x1
jax: 0.10.0
libtpu: 0.0.40
codegen_flags: <defaults>
</compile_context>

<pallas_src>
import functools

import jax
import jax.numpy as jnp
from jax.experimental import pallas as pl
from jax.experimental.pallas import tpu as pltpu


# -----------------------------------------------------------------------------
# Pallas kernel: direct convolution with in-VMEM tap accumulation
# -----------------------------------------------------------------------------
def _direct_conv_kernel(x_ref, w_ref, b_ref, o_ref, *, kh, kw, stride, ho, wo, act):
    """One image per grid step.

    x_ref : (Hp, S, Wq, Cin)   bf16  zero-padded input, W pre-split into S
                               stride-parity planes (S = stride).
    w_ref : (Kh*Kw, Cin, Cout) bf16  per-tap GEMM weights (BN scale folded in).
    b_ref : (1, Cout)          f32   per-channel shift (conv bias + BN shift).
    o_ref : (Ho, Wo, Cout)           output feature map.
    """
    cout = o_ref.shape[-1]
    bias = b_ref[...]                                   # (1, cout) f32

    def row_body(r, carry):
        row0 = r * stride
        acc = jnp.zeros((wo, cout), jnp.float32)
        t = 0
        for dy in range(kh):                            # static tap loops
            slab = x_ref[row0 + dy]                     # (S, Wq, Cin) bf16
            for dx in range(kw):
                par = dx % stride                       # which parity plane
                off = dx // stride                      # column offset in plane
                lhs = slab[par, off:off + wo, :]        # (Wo, Cin) bf16
                acc = acc + jnp.dot(lhs, w_ref[t],
                                    preferred_element_type=jnp.float32)
                t += 1
        y = acc + bias                                  # f32 epilogue
        if act == "leaky_relu":
            y = jnp.where(y >= 0, y, 0.01 * y)          # PyTorch default slope
        elif act == "leaky_sigmoid":                    # sigmoid(leaky_relu(y))
            y = jnp.where(y >= 0, y, 0.01 * y)
            y = 1.0 / (1.0 + jnp.exp(-y))
        o_ref[r] = y.astype(o_ref.dtype)
        return carry

    jax.lax.fori_loop(0, ho, row_body, 0)


def direct_conv(x_nhwc, w_taps, bias, *, kh, kw, stride, pad, act,
                out_dtype=jnp.bfloat16):
    """act(conv(x) + bias) without materializing im2col in HBM.

    x_nhwc : (N, H, W, Cin)
    w_taps : (Kh*Kw, Cin, Cout) f32 (dy-major, dx-minor tap order)
    bias   : (Cout,) f32
    Returns (out (N, Ho, Wo, Cout), Ho, Wo).
    """
    n, h, w, cin = x_nhwc.shape
    t, cin_w, cout = w_taps.shape
    assert t == kh * kw and cin_w == cin

    ho = (h + 2 * pad - kh) // stride + 1
    wo = (w + 2 * pad - kw) // stride + 1

    # Lane-pad tiny C_out (1 -> 8) with zero weight columns; slice after.
    cout_p = max(8, ((cout + 7) // 8) * 8)
    if cout_p != cout:
        w_taps = jnp.pad(w_taps, ((0, 0), (0, 0), (0, cout_p - cout)))
        bias = jnp.pad(bias, (0, cout_p - cout))

    # Zero-pad spatially once (1x HBM traffic, no 9x im2col expansion).
    xp = jnp.pad(x_nhwc, ((0, 0), (pad, pad), (pad, pad), (0, 0)))
    hp = h + 2 * pad

    # Split W into `stride` parity planes so every per-tap column slice inside
    # the kernel is a unit-stride slice (handles stride-2 without strided ds).
    qmax = (kw - 1) // stride
    wq = qmax + wo
    planes = []
    for p_ in range(stride):
        plane = xp[:, :, p_::stride, :]
        cur = plane.shape[2]
        if cur < wq:
            plane = jnp.pad(plane, ((0, 0), (0, 0), (0, wq - cur), (0, 0)))
        elif cur > wq:
            plane = plane[:, :, :wq, :]
        planes.append(plane)
    xs = jnp.stack(planes, axis=2).astype(jnp.bfloat16)  # (n, hp, S, wq, cin)

    w_bf = w_taps.astype(jnp.bfloat16)
    b_f32 = bias.reshape(1, cout_p).astype(jnp.float32)

    kernel = functools.partial(_direct_conv_kernel, kh=kh, kw=kw, stride=stride,
                               ho=ho, wo=wo, act=act)
    out = pl.pallas_call(
        kernel,
        out_shape=jax.ShapeDtypeStruct((n, ho, wo, cout_p), out_dtype),
        grid_spec=pltpu.PrefetchScalarGridSpec(
            num_scalar_prefetch=0,
            grid=(n,),
            in_specs=[
                # whole padded image for this batch element, resident in VMEM
                pl.BlockSpec((None, hp, stride, wq, cin),
                             lambda i: (i, 0, 0, 0, 0)),
                # full weight / bias, resident across the grid
                pl.BlockSpec((kh * kw, cin, cout_p), lambda i: (0, 0, 0)),
                pl.BlockSpec((1, cout_p), lambda i: (0, 0)),
            ],
            out_specs=pl.BlockSpec((None, ho, wo, cout_p),
                                   lambda i: (i, 0, 0, 0)),
        ),
        compiler_params=pltpu.CompilerParams(
            dimension_semantics=("parallel",),
            vmem_limit_bytes=48 * 1024 * 1024,   # safe on v7x (64 MiB VMEM)
        ),
    )(xs, w_bf, b_f32)

    if cout_p != cout:
        out = out[..., :cout]
    return out, ho, wo


# -----------------------------------------------------------------------------
# Weight repacking (PyTorch layouts -> per-tap GEMM weights)
# -----------------------------------------------------------------------------
def conv_w_to_taps(w_oihw):
    """Conv2d weight (Cout, Cin, kh, kw) -> (kh*kw, Cin, Cout)."""
    o, i, kh, kw = w_oihw.shape
    return jnp.transpose(w_oihw, (2, 3, 1, 0)).reshape(kh * kw, i, o)


def deconv_w_to_taps(w_iohw):
    """ConvTranspose2d weight (Cin, Cout, kh, kw) -> flipped-kernel direct-conv
    taps (kh*kw, Cin, Cout).  Use with padding = kh - 1 - p."""
    i, o, kh, kw = w_iohw.shape
    w_flip = w_iohw[:, :, ::-1, ::-1]
    return jnp.transpose(w_flip, (2, 3, 0, 1)).reshape(kh * kw, i, o)


# -----------------------------------------------------------------------------
# Parameter initialization (deterministic, synthetic; BN folded at prep time)
# -----------------------------------------------------------------------------
def init_params(key, *, cin=6, c1=64, c2=128, lin=64, image_size=64):
    ks = jax.random.split(key, 24)
    eps = 1e-5

    def nrm(k, shape, s=0.05):
        return s * jax.random.normal(k, shape, jnp.float32)

    p = {}

    # conv1 + bn1  (fold BN scale into weights, shift into bias)
    w = nrm(ks[0], (c1, cin, 3, 3)); b = nrm(ks[1], (c1,))
    gamma = 1.0 + 0.1 * jax.random.normal(ks[2], (c1,), jnp.float32)
    beta = nrm(ks[3], (c1,)); mean = nrm(ks[4], (c1,))
    var = 1.0 + 0.1 * jnp.abs(jax.random.normal(ks[5], (c1,), jnp.float32))
    s = gamma / jnp.sqrt(var + eps)
    p["conv1_w"] = conv_w_to_taps(w * s[:, None, None, None])
    p["conv1_b"] = (b - mean) * s + beta

    # conv2 + bn2
    w = nrm(ks[6], (c2, c1, 3, 3)); b = nrm(ks[7], (c2,))
    gamma = 1.0 + 0.1 * jax.random.normal(ks[8], (c2,), jnp.float32)
    beta = nrm(ks[9], (c2,)); mean = nrm(ks[10], (c2,))
    var = 1.0 + 0.1 * jnp.abs(jax.random.normal(ks[11], (c2,), jnp.float32))
    s = gamma / jnp.sqrt(var + eps)
    p["conv2_w"] = conv_w_to_taps(w * s[:, None, None, None])
    p["conv2_b"] = (b - mean) * s + beta

    # deconv1 / deconv2 : ConvTranspose2d weights are (Cin, Cout, kh, kw)
    p["deconv1_w"] = deconv_w_to_taps(nrm(ks[12], (c2, c1, 4, 4)))
    p["deconv1_b"] = nrm(ks[13], (c1,))
    p["deconv2_w"] = deconv_w_to_taps(nrm(ks[14], (c1, 1, 4, 4)))
    p["deconv2_b"] = nrm(ks[15], (1,))

    # head: Conv2d(c2 -> 1, 3x3 s1 p1), Linear((image_size//4)^2, lin), Linear(lin, 3)
    p["headconv_w"] = conv_w_to_taps(nrm(ks[16], (1, c2, 3, 3)))
    p["headconv_b"] = nrm(ks[17], (1,))
    hw = (image_size // 4) ** 2
    p["lin1_w"] = jnp.transpose(nrm(ks[18], (lin, hw), s=0.02))   # (hw, lin)
    p["lin1_b"] = nrm(ks[19], (lin,))
    p["lin2_w"] = jnp.transpose(nrm(ks[20], (3, lin)))            # (lin, 3)
    p["lin2_b"] = nrm(ks[21], (3,))
    return p


# -----------------------------------------------------------------------------
# Forward pass (matches CenterSpeedModular2.forward, inference mode)
# -----------------------------------------------------------------------------
def center_speed_forward(x_nchw, p):
    x = jnp.transpose(x_nchw, (0, 2, 3, 1))          # NHWC
    n = x.shape[0]

    # x = leaky_relu(bn1(conv1(x)))   3x3, stride 2, pad 1 (BN folded)
    h1, _, _ = direct_conv(x, p["conv1_w"], p["conv1_b"], kh=3, kw=3, stride=2,
                           pad=1, act="leaky_relu", out_dtype=jnp.bfloat16)
    # x = leaky_relu(bn2(conv2(x)))   3x3, stride 2, pad 1 (BN folded)
    h2, _, _ = direct_conv(h1, p["conv2_w"], p["conv2_b"], kh=3, kw=3, stride=2,
                           pad=1, act="leaky_relu", out_dtype=jnp.bfloat16)

    # head: Conv2d(c2->1) -> Flatten -> Linear -> LeakyReLU -> Linear
    hc, hh, hw = direct_conv(h2, p["headconv_w"], p["headconv_b"], kh=3, kw=3,
                             stride=1, pad=1, act="none", out_dtype=jnp.float32)
    hc = hc[..., 0].reshape(n, hh * hw)              # same order as torch Flatten
    # Tiny GEMMs (M = batch): left to XLA per perf review.
    y = hc @ p["lin1_w"] + p["lin1_b"]
    y = jnp.where(y >= 0, y, 0.01 * y)               # nn.LeakyReLU (slope 0.01)
    y = y @ p["lin2_w"] + p["lin2_b"]                # (n, 3)

    # x = leaky_relu(deconv1(x))  : ConvTranspose2d(k=4,s=1,p=1) == direct conv
    #                               with flipped kernel, pad = 2 (H -> H+1)
    d1, _, _ = direct_conv(h2, p["deconv1_w"], p["deconv1_b"], kh=4, kw=4,
                           stride=1, pad=2, act="leaky_relu",
                           out_dtype=jnp.bfloat16)
    # x = dropout(x)  -> identity in inference mode
    # x = sigmoid(leaky_relu(deconv2(x)))  (fused epilogue)
    d2, _, _ = direct_conv(d1, p["deconv2_w"], p["deconv2_b"], kh=4, kw=4,
                           stride=1, pad=2, act="leaky_sigmoid",
                           out_dtype=jnp.float32)

    dense = jnp.transpose(d2, (0, 3, 1, 2))          # NCHW (n, 1, H/4+2, W/4+2)
    return dense, y


# -----------------------------------------------------------------------------
# Main
# -----------------------------------------------------------------------------
if __name__ == "__main__":
    root = jax.random.PRNGKey(0)
    k_params, k_input = jax.random.split(root)

    IMAGE, BATCH, CIN = 64, 2, 6                     # small but spec-consistent
    params = init_params(k_params, cin=CIN, c1=64, c2=128, lin=64,
                         image_size=IMAGE)
    x = jax.random.normal(k_input, (BATCH, CIN, IMAGE, IMAGE), jnp.float32)

    fwd = jax.jit(center_speed_forward)
    dense_out, head_out = fwd(x, params)
    dense_out = jax.block_until_ready(dense_out)
    head_out = jax.block_until_ready(head_out)

    # deconv1/deconv2 (k=4, s=1, p=1) each add +1 to the H/4 feature map.
    assert dense_out.shape == (BATCH, 1, IMAGE // 4 + 2, IMAGE // 4 + 2), dense_out.shape
    assert head_out.shape == (BATCH, 3), head_out.shape
    assert bool(jnp.all(jnp.isfinite(dense_out)))
    assert bool(jnp.all(jnp.isfinite(head_out)))
    assert bool(jnp.all((dense_out >= 0.0) & (dense_out <= 1.0)))   # sigmoid range
    print("KERNEL_OK")
</pallas_src>

<mosaic_0001>
module attributes {stable_mosaic.version = 11 : i64} {
  func.func @_direct_conv_kernel(%arg0: i32, %arg1: memref<1x66x2x33x6xbf16, #tpu.memory_space<vmem>>, %arg2: memref<9x6x64xbf16, #tpu.memory_space<vmem>>, %arg3: memref<1x64xf32, #tpu.memory_space<vmem>>, %arg4: memref<1x32x32x64xbf16, #tpu.memory_space<vmem>>) attributes {dimension_semantics = [#tpu.dimension_semantics<parallel>], iteration_bounds = array<i64: 2>, scalar_prefetch = 0 : i64, scratch_operands = 0 : i64, tpu.core_type = #tpu.core_type<tc>, window_params = [{transform_indices = @transform_0, window_bounds = array<i64: 1, 66, 2, 33, 6>}, {pipeline_mode = #tpu.pipeline_mode<synchronous>, transform_indices = @transform_1, window_bounds = array<i64: 9, 6, 64>}, {pipeline_mode = #tpu.pipeline_mode<synchronous>, transform_indices = @transform_2, window_bounds = array<i64: 1, 64>}, {transform_indices = @transform_3, window_bounds = array<i64: 1, 32, 32, 64>}]} {
    %c0 = arith.constant 0 : index
    %c0_0 = arith.constant 0 : index
    %0 = vector.load %arg3[%c0, %c0_0] : memref<1x64xf32, #tpu.memory_space<vmem>>, vector<1x64xf32>
    %c0_i32 = arith.constant 0 : i32
    %c32_i32 = arith.constant 32 : i32
    %1 = arith.addi %c0_i32, %c32_i32 : i32
    %c1_i32 = arith.constant 1 : i32
    scf.for %arg5 = %c0_i32 to %1 step %c1_i32  : i32 {
      %c2_i32 = arith.constant 2 : i32
      %2 = arith.muli %arg5, %c2_i32 : i32
      %cst = arith.constant 0.000000e+00 : f32
      %3 = vector.broadcast %cst : f32 to vector<32x64xf32>
      %c0_i32_2 = arith.constant 0 : i32
      %4 = arith.addi %2, %c0_i32_2 : i32
      %c0_3 = arith.constant 0 : index
      %5 = arith.index_cast %4 : i32 to index
      %c0_4 = arith.constant 0 : index
      %c0_5 = arith.constant 0 : index
      %c0_6 = arith.constant 0 : index
      %6 = vector.load %arg1[%c0_3, %5, %c0_4, %c0_5, %c0_6] : memref<1x66x2x33x6xbf16, #tpu.memory_space<vmem>>, vector<1x1x2x33x6xbf16>
      %7 = vector.shape_cast %6 : vector<1x1x2x33x6xbf16> to vector<2x33x6xbf16>
      %8 = vector.extract_strided_slice %7 {offsets = [0, 0, 0], sizes = [1, 32, 6], strides = [1, 1, 1]} : vector<2x33x6xbf16> to vector<1x32x6xbf16>
      %9 = vector.shape_cast %8 : vector<1x32x6xbf16> to vector<32x6xbf16>
      %c0_7 = arith.constant 0 : index
      %c0_8 = arith.constant 0 : index
      %c0_9 = arith.constant 0 : index
      %10 = vector.load %arg2[%c0_7, %c0_8, %c0_9] : memref<9x6x64xbf16, #tpu.memory_space<vmem>>, vector<1x6x64xbf16>
      %11 = vector.shape_cast %10 : vector<1x6x64xbf16> to vector<6x64xbf16>
      %cst_10 = arith.constant dense<0.000000e+00> : vector<32x64xf32>
      %12 = tpu.matmul %9, %11, %cst_10 {dimension_numbers = #tpu.dot_dimension_numbers<[1], [0], [0], [1], [0, 0, 1, 1], [], []>} : vector<32x6xbf16>, vector<6x64xbf16>, vector<32x64xf32> -> vector<32x64xf32>
      %13 = arith.addf %3, %12 : vector<32x64xf32>
      %14 = vector.extract_strided_slice %7 {offsets = [1, 0, 0], sizes = [1, 32, 6], strides = [1, 1, 1]} : vector<2x33x6xbf16> to vector<1x32x6xbf16>
      %15 = vector.shape_cast %14 : vector<1x32x6xbf16> to vector<32x6xbf16>
      %c1 = arith.constant 1 : index
      %c0_11 = arith.constant 0 : index
      %c0_12 = arith.constant 0 : index
      %16 = vector.load %arg2[%c1, %c0_11, %c0_12] : memref<9x6x64xbf16, #tpu.memory_space<vmem>>, vector<1x6x64xbf16>
      %17 = vector.shape_cast %16 : vector<1x6x64xbf16> to vector<6x64xbf16>
      %cst_13 = arith.constant dense<0.000000e+00> : vector<32x64xf32>
      %18 = tpu.matmul %15, %17, %cst_13 {dimension_numbers = #tpu.dot_dimension_numbers<[1], [0], [0], [1], [0, 0, 1, 1], [], []>} : vector<32x6xbf16>, vector<6x64xbf16>, vector<32x64xf32> -> vector<32x64xf32>
      %19 = arith.addf %13, %18 : vector<32x64xf32>
      %20 = vector.extract_strided_slice %7 {offsets = [0, 1, 0], sizes = [1, 32, 6], strides = [1, 1, 1]} : vector<2x33x6xbf16> to vector<1x32x6xbf16>
      %21 = vector.shape_cast %20 : vector<1x32x6xbf16> to vector<32x6xbf16>
      %c2 = arith.constant 2 : index
      %c0_14 = arith.constant 0 : index
      %c0_15 = arith.constant 0 : index
      %22 = vector.load %arg2[%c2, %c0_14, %c0_15] : memref<9x6x64xbf16, #tpu.memory_space<vmem>>, vector<1x6x64xbf16>
      %23 = vector.shape_cast %22 : vector<1x6x64xbf16> to vector<6x64xbf16>
      %cst_16 = arith.constant dense<0.000000e+00> : vector<32x64xf32>
      %24 = tpu.matmul %21, %23, %cst_16 {dimension_numbers = #tpu.dot_dimension_numbers<[1], [0], [0], [1], [0, 0, 1, 1], [], []>} : vector<32x6xbf16>, vector<6x64xbf16>, vector<32x64xf32> -> vector<32x64xf32>
      %25 = arith.addf %19, %24 : vector<32x64xf32>
      %c1_i32_17 = arith.constant 1 : i32
      %26 = arith.addi %2, %c1_i32_17 : i32
      %c0_18 = arith.constant 0 : index
      %27 = arith.index_cast %26 : i32 to index
      %c0_19 = arith.constant 0 : index
      %c0_20 = arith.constant 0 : index
      %c0_21 = arith.constant 0 : index
      %28 = vector.load %arg1[%c0_18, %27, %c0_19, %c0_20, %c0_21] : memref<1x66x2x33x6xbf16, #tpu.memory_space<vmem>>, vector<1x1x2x33x6xbf16>
      %29 = vector.shape_cast %28 : vector<1x1x2x33x6xbf16> to vector<2x33x6xbf16>
      %30 = vector.extract_strided_slice %29 {offsets = [0, 0, 0], sizes = [1, 32, 6], strides = [1, 1, 1]} : vector<2x33x6xbf16> to vector<1x32x6xbf16>
      %31 = vector.shape_cast %30 : vector<1x32x6xbf16> to vector<32x6xbf16>
      %c3 = arith.constant 3 : index
      %c0_22 = arith.constant 0 : index
      %c0_23 = arith.constant 0 : index
      %32 = vector.load %arg2[%c3, %c0_22, %c0_23] : memref<9x6x64xbf16, #tpu.memory_space<vmem>>, vector<1x6x64xbf16>
      %33 = vector.shape_cast %32 : vector<1x6x64xbf16> to vector<6x64xbf16>
      %cst_24 = arith.constant dense<0.000000e+00> : vector<32x64xf32>
      %34 = tpu.matmul %31, %33, %cst_24 {dimension_numbers = #tpu.dot_dimension_numbers<[1], [0], [0], [1], [0, 0, 1, 1], [], []>} : vector<32x6xbf16>, vector<6x64xbf16>, vector<32x64xf32> -> vector<32x64xf32>
      %35 = arith.addf %25, %34 : vector<32x64xf32>
      %36 = vector.extract_strided_slice %29 {offsets = [1, 0, 0], sizes = [1, 32, 6], strides = [1, 1, 1]} : vector<2x33x6xbf16> to vector<1x32x6xbf16>
      %37 = vector.shape_cast %36 : vector<1x32x6xbf16> to vector<32x6xbf16>
      %c4 = arith.constant 4 : index
      %c0_25 = arith.constant 0 : index
      %c0_26 = arith.constant 0 : index
      %38 = vector.load %arg2[%c4, %c0_25, %c0_26] : memref<9x6x64xbf16, #tpu.memory_space<vmem>>, vector<1x6x64xbf16>
      %39 = vector.shape_cast %38 : vector<1x6x64xbf16> to vector<6x64xbf16>
      %cst_27 = arith.constant dense<0.000000e+00> : vector<32x64xf32>
      %40 = tpu.matmul %37, %39, %cst_27 {dimension_numbers = #tpu.dot_dimension_numbers<[1], [0], [0], [1], [0, 0, 1, 1], [], []>} : vector<32x6xbf16>, vector<6x64xbf16>, vector<32x64xf32> -> vector<32x64xf32>
      %41 = arith.addf %35, %40 : vector<32x64xf32>
      %42 = vector.extract_strided_slice %29 {offsets = [0, 1, 0], sizes = [1, 32, 6], strides = [1, 1, 1]} : vector<2x33x6xbf16> to vector<1x32x6xbf16>
      %43 = vector.shape_cast %42 : vector<1x32x6xbf16> to vector<32x6xbf16>
      %c5 = arith.constant 5 : index
      %c0_28 = arith.constant 0 : index
      %c0_29 = arith.constant 0 : index
      %44 = vector.load %arg2[%c5, %c0_28, %c0_29] : memref<9x6x64xbf16, #tpu.memory_space<vmem>>, vector<1x6x64xbf16>
      %45 = vector.shape_cast %44 : vector<1x6x64xbf16> to vector<6x64xbf16>
      %cst_30 = arith.constant dense<0.000000e+00> : vector<32x64xf32>
      %46 = tpu.matmul %43, %45, %cst_30 {dimension_numbers = #tpu.dot_dimension_numbers<[1], [0], [0], [1], [0, 0, 1, 1], [], []>} : vector<32x6xbf16>, vector<6x64xbf16>, vector<32x64xf32> -> vector<32x64xf32>
      %47 = arith.addf %41, %46 : vector<32x64xf32>
      %c2_i32_31 = arith.constant 2 : i32
      %48 = arith.addi %2, %c2_i32_31 : i32
      %c0_32 = arith.constant 0 : index
      %49 = arith.index_cast %48 : i32 to index
      %c0_33 = arith.constant 0 : index
      %c0_34 = arith.constant 0 : index
      %c0_35 = arith.constant 0 : index
      %50 = vector.load %arg1[%c0_32, %49, %c0_33, %c0_34, %c0_35] : memref<1x66x2x33x6xbf16, #tpu.memory_space<vmem>>, vector<1x1x2x33x6xbf16>
      %51 = vector.shape_cast %50 : vector<1x1x2x33x6xbf16> to vector<2x33x6xbf16>
      %52 = vector.extract_strided_slice %51 {offsets = [0, 0, 0], sizes = [1, 32, 6], strides = [1, 1, 1]} : vector<2x33x6xbf16> to vector<1x32x6xbf16>
      %53 = vector.shape_cast %52 : vector<1x32x6xbf16> to vector<32x6xbf16>
      %c6 = arith.constant 6 : index
      %c0_36 = arith.constant 0 : index
      %c0_37 = arith.constant 0 : index
      %54 = vector.load %arg2[%c6, %c0_36, %c0_37] : memref<9x6x64xbf16, #tpu.memory_space<vmem>>, vector<1x6x64xbf16>
      %55 = vector.shape_cast %54 : vector<1x6x64xbf16> to vector<6x64xbf16>
      %cst_38 = arith.constant dense<0.000000e+00> : vector<32x64xf32>
      %56 = tpu.matmul %53, %55, %cst_38 {dimension_numbers = #tpu.dot_dimension_numbers<[1], [0], [0], [1], [0, 0, 1, 1], [], []>} : vector<32x6xbf16>, vector<6x64xbf16>, vector<32x64xf32> -> vector<32x64xf32>
      %57 = arith.addf %47, %56 : vector<32x64xf32>
      %58 = vector.extract_strided_slice %51 {offsets = [1, 0, 0], sizes = [1, 32, 6], strides = [1, 1, 1]} : vector<2x33x6xbf16> to vector<1x32x6xbf16>
      %59 = vector.shape_cast %58 : vector<1x32x6xbf16> to vector<32x6xbf16>
      %c7 = arith.constant 7 : index
      %c0_39 = arith.constant 0 : index
      %c0_40 = arith.constant 0 : index
      %60 = vector.load %arg2[%c7, %c0_39, %c0_40] : memref<9x6x64xbf16, #tpu.memory_space<vmem>>, vector<1x6x64xbf16>
      %61 = vector.shape_cast %60 : vector<1x6x64xbf16> to vector<6x64xbf16>
      %cst_41 = arith.constant dense<0.000000e+00> : vector<32x64xf32>
      %62 = tpu.matmul %59, %61, %cst_41 {dimension_numbers = #tpu.dot_dimension_numbers<[1], [0], [0], [1], [0, 0, 1, 1], [], []>} : vector<32x6xbf16>, vector<6x64xbf16>, vector<32x64xf32> -> vector<32x64xf32>
      %63 = arith.addf %57, %62 : vector<32x64xf32>
      %64 = vector.extract_strided_slice %51 {offsets = [0, 1, 0], sizes = [1, 32, 6], strides = [1, 1, 1]} : vector<2x33x6xbf16> to vector<1x32x6xbf16>
      %65 = vector.shape_cast %64 : vector<1x32x6xbf16> to vector<32x6xbf16>
      %c8 = arith.constant 8 : index
      %c0_42 = arith.constant 0 : index
      %c0_43 = arith.constant 0 : index
      %66 = vector.load %arg2[%c8, %c0_42, %c0_43] : memref<9x6x64xbf16, #tpu.memory_space<vmem>>, vector<1x6x64xbf16>
      %67 = vector.shape_cast %66 : vector<1x6x64xbf16> to vector<6x64xbf16>
      %cst_44 = arith.constant dense<0.000000e+00> : vector<32x64xf32>
      %68 = tpu.matmul %65, %67, %cst_44 {dimension_numbers = #tpu.dot_dimension_numbers<[1], [0], [0], [1], [0, 0, 1, 1], [], []>} : vector<32x6xbf16>, vector<6x64xbf16>, vector<32x64xf32> -> vector<32x64xf32>
      %69 = arith.addf %63, %68 : vector<32x64xf32>
      %70 = vector.broadcast %0 : vector<1x64xf32> to vector<32x64xf32>
      %71 = arith.addf %69, %70 : vector<32x64xf32>
      %cst_45 = arith.constant 0.000000e+00 : f32
      %72 = vector.broadcast %cst_45 : f32 to vector<32x64xf32>
      %73 = arith.cmpf oge, %71, %72 : vector<32x64xf32>
      %cst_46 = arith.constant 0.00999999977 : f32
      %74 = vector.broadcast %cst_46 : f32 to vector<32x64xf32>
      %75 = arith.mulf %74, %71 : vector<32x64xf32>
      %76 = arith.select %73, %71, %75 : vector<32x64xi1>, vector<32x64xf32>
      %77 = arith.truncf %76 : vector<32x64xf32> to vector<32x64xbf16>
      %c0_47 = arith.constant 0 : index
      %78 = arith.index_cast %arg5 : i32 to index
      %c0_48 = arith.constant 0 : index
      %c0_49 = arith.constant 0 : index
      %79 = vector.load %arg4[%c0_47, %78, %c0_48, %c0_49] : memref<1x32x32x64xbf16, #tpu.memory_space<vmem>>, vector<1x1x32x64xbf16>
      %80 = vector.shape_cast %79 : vector<1x1x32x64xbf16> to vector<32x64xbf16>
      %81 = vector.shape_cast %77 : vector<32x64xbf16> to vector<1x1x32x64xbf16>
      tpu.vector_store %arg4[%c0_47, %78, %c0_48, %c0_49], %81 {strides = array<i32>} : memref<1x32x32x64xbf16, #tpu.memory_space<vmem>>, vector<1x1x32x64xbf16>,
    }
    %c32_i32_1 = arith.constant 32 : i32
    return
  }
  func.func @transform_0(%arg0: i32) -> (i32, i32, i32, i32, i32) {
    %c0_i32 = arith.constant 0 : i32
    %c0_i32_0 = arith.constant 0 : i32
    %c0_i32_1 = arith.constant 0 : i32
    %c0_i32_2 = arith.constant 0 : i32
    %c0_i32_3 = arith.constant 0 : i32
    return %arg0, %c0_i32, %c0_i32_0, %c0_i32_1, %c0_i32_2 : i32, i32, i32, i32, i32
  }
  func.func @transform_1(%arg0: i32) -> (i32, i32, i32) {
    %c0_i32 = arith.constant 0 : i32
    %c0_i32_0 = arith.constant 0 : i32
    %c0_i32_1 = arith.constant 0 : i32
    %c0_i32_2 = arith.constant 0 : i32
    return %c0_i32, %c0_i32_0, %c0_i32_1 : i32, i32, i32
  }
  func.func @transform_2(%arg0: i32) -> (i32, i32) {
    %c0_i32 = arith.constant 0 : i32
    %c0_i32_0 = arith.constant 0 : i32
    %c0_i32_1 = arith.constant 0 : i32
    return %c0_i32, %c0_i32_0 : i32, i32
  }
  func.func @transform_3(%arg0: i32) -> (i32, i32, i32, i32) {
    %c0_i32 = arith.constant 0 : i32
    %c0_i32_0 = arith.constant 0 : i32
    %c0_i32_1 = arith.constant 0 : i32
    %c0_i32_2 = arith.constant 0 : i32
    return %arg0, %c0_i32, %c0_i32_0, %c0_i32_1 : i32, i32, i32, i32
  }
}

module attributes {stable_mosaic.version = 11 : i64} {
  func.func @_direct_conv_kernel(%arg0: i32, %arg1: memref<1x34x2x17x64xbf16, #tpu.memory_space<vmem>>, %arg2: memref<9x64x128xbf16, #tpu.memory_space<vmem>>, %arg3: memref<1x128xf32, #tpu.memory_space<vmem>>, %arg4: memref<1x16x16x128xbf16, #tpu.memory_space<vmem>>) attributes {dimension_semantics = [#tpu.dimension_semantics<parallel>], iteration_bounds = array<i64: 2>, scalar_prefetch = 0 : i64, scratch_operands = 0 : i64, tpu.core_type = #tpu.core_type<tc>, window_params = [{transform_indices = @transform_0, window_bounds = array<i64: 1, 34, 2, 17, 64>}, {pipeline_mode = #tpu.pipeline_mode<synchronous>, transform_indices = @transform_1, window_bounds = array<i64: 9, 64, 128>}, {pipeline_mode = #tpu.pipeline_mode<synchronous>, transform_indices = @transform_2, window_bounds = array<i64: 1, 128>}, {transform_indices = @transform_3, window_bounds = array<i64: 1, 16, 16, 128>}]} {
    %c0 = arith.constant 0 : index
    %c0_0 = arith.constant 0 : index
    %0 = vector.load %arg3[%c0, %c0_0] : memref<1x128xf32, #tpu.memory_space<vmem>>, vector<1x128xf32>
    %c0_i32 = arith.constant 0 : i32
    %c16_i32 = arith.constant 16 : i32
    %1 = arith.addi %c0_i32, %c16_i32 : i32
    %c1_i32 = arith.constant 1 : i32
    scf.for %arg5 = %c0_i32 to %1 step %c1_i32  : i32 {
      %c2_i32 = arith.constant 2 : i32
      %2 = arith.muli %arg5, %c2_i32 : i32
      %cst = arith.constant 0.000000e+00 : f32
      %3 = vector.broadcast %cst : f32 to vector<16x128xf32>
      %c0_i32_2 = arith.constant 0 : i32
      %4 = arith.addi %2, %c0_i32_2 : i32
      %c0_3 = arith.constant 0 : index
      %5 = arith.index_cast %4 : i32 to index
      %c0_4 = arith.constant 0 : index
      %c0_5 = arith.constant 0 : index
      %c0_6 = arith.constant 0 : index
      %6 = vector.load %arg1[%c0_3, %5, %c0_4, %c0_5, %c0_6] : memref<1x34x2x17x64xbf16, #tpu.memory_space<vmem>>, vector<1x1x2x17x64xbf16>
      %7 = vector.shape_cast %6 : vector<1x1x2x17x64xbf16> to vector<2x17x64xbf16>
      %8 = vector.extract_strided_slice %7 {offsets = [0, 0, 0], sizes = [1, 16, 64], strides = [1, 1, 1]} : vector<2x17x64xbf16> to vector<1x16x64xbf16>
      %9 = vector.shape_cast %8 : vector<1x16x64xbf16> to vector<16x64xbf16>
      %c0_7 = arith.constant 0 : index
      %c0_8 = arith.constant 0 : index
      %c0_9 = arith.constant 0 : index
      %10 = vector.load %arg2[%c0_7, %c0_8, %c0_9] : memref<9x64x128xbf16, #tpu.memory_space<vmem>>, vector<1x64x128xbf16>
      %11 = vector.shape_cast %10 : vector<1x64x128xbf16> to vector<64x128xbf16>
      %cst_10 = arith.constant dense<0.000000e+00> : vector<16x128xf32>
      %12 = tpu.matmul %9, %11, %cst_10 {dimension_numbers = #tpu.dot_dimension_numbers<[1], [0], [0], [1], [0, 0, 1, 1], [], []>} : vector<16x64xbf16>, vector<64x128xbf16>, vector<16x128xf32> -> vector<16x128xf32>
      %13 = arith.addf %3, %12 : vector<16x128xf32>
      %14 = vector.extract_strided_slice %7 {offsets = [1, 0, 0], sizes = [1, 16, 64], strides = [1, 1, 1]} : vector<2x17x64xbf16> to vector<1x16x64xbf16>
      %15 = vector.shape_cast %14 : vector<1x16x64xbf16> to vector<16x64xbf16>
      %c1 = arith.constant 1 : index
      %c0_11 = arith.constant 0 : index
      %c0_12 = arith.constant 0 : index
      %16 = vector.load %arg2[%c1, %c0_11, %c0_12] : memref<9x64x128xbf16, #tpu.memory_space<vmem>>, vector<1x64x128xbf16>
      %17 = vector.shape_cast %16 : vector<1x64x128xbf16> to vector<64x128xbf16>
      %cst_13 = arith.constant dense<0.000000e+00> : vector<16x128xf32>
      %18 = tpu.matmul %15, %17, %cst_13 {dimension_numbers = #tpu.dot_dimension_numbers<[1], [0], [0], [1], [0, 0, 1, 1], [], []>} : vector<16x64xbf16>, vector<64x128xbf16>, vector<16x128xf32> -> vector<16x128xf32>
      %19 = arith.addf %13, %18 : vector<16x128xf32>
      %20 = vector.extract_strided_slice %7 {offsets = [0, 1, 0], sizes = [1, 16, 64], strides = [1, 1, 1]} : vector<2x17x64xbf16> to vector<1x16x64xbf16>
      %21 = vector.shape_cast %20 : vector<1x16x64xbf16> to vector<16x64xbf16>
      %c2 = arith.constant 2 : index
      %c0_14 = arith.constant 0 : index
      %c0_15 = arith.constant 0 : index
      %22 = vector.load %arg2[%c2, %c0_14, %c0_15] : memref<9x64x128xbf16, #tpu.memory_space<vmem>>, vector<1x64x128xbf16>
      %23 = vector.shape_cast %22 : vector<1x64x128xbf16> to vector<64x128xbf16>
      %cst_16 = arith.constant dense<0.000000e+00> : vector<16x128xf32>
      %24 = tpu.matmul %21, %23, %cst_16 {dimension_numbers = #tpu.dot_dimension_numbers<[1], [0], [0], [1], [0, 0, 1, 1], [], []>} : vector<16x64xbf16>, vector<64x128xbf16>, vector<16x128xf32> -> vector<16x128xf32>
      %25 = arith.addf %19, %24 : vector<16x128xf32>
      %c1_i32_17 = arith.constant 1 : i32
      %26 = arith.addi %2, %c1_i32_17 : i32
      %c0_18 = arith.constant 0 : index
      %27 = arith.index_cast %26 : i32 to index
      %c0_19 = arith.constant 0 : index
      %c0_20 = arith.constant 0 : index
      %c0_21 = arith.constant 0 : index
      %28 = vector.load %arg1[%c0_18, %27, %c0_19, %c0_20, %c0_21] : memref<1x34x2x17x64xbf16, #tpu.memory_space<vmem>>, vector<1x1x2x17x64xbf16>
      %29 = vector.shape_cast %28 : vector<1x1x2x17x64xbf16> to vector<2x17x64xbf16>
      %30 = vector.extract_strided_slice %29 {offsets = [0, 0, 0], sizes = [1, 16, 64], strides = [1, 1, 1]} : vector<2x17x64xbf16> to vector<1x16x64xbf16>
      %31 = vector.shape_cast %30 : vector<1x16x64xbf16> to vector<16x64xbf16>
      %c3 = arith.constant 3 : index
      %c0_22 = arith.constant 0 : index
      %c0_23 = arith.constant 0 : index
      %32 = vector.load %arg2[%c3, %c0_22, %c0_23] : memref<9x64x128xbf16, #tpu.memory_space<vmem>>, vector<1x64x128xbf16>
      %33 = vector.shape_cast %32 : vector<1x64x128xbf16> to vector<64x128xbf16>
      %cst_24 = arith.constant dense<0.000000e+00> : vector<16x128xf32>
      %34 = tpu.matmul %31, %33, %cst_24 {dimension_numbers = #tpu.dot_dimension_numbers<[1], [0], [0], [1], [0, 0, 1, 1], [], []>} : vector<16x64xbf16>, vector<64x128xbf16>, vector<16x128xf32> -> vector<16x128xf32>
      %35 = arith.addf %25, %34 : vector<16x128xf32>
      %36 = vector.extract_strided_slice %29 {offsets = [1, 0, 0], sizes = [1, 16, 64], strides = [1, 1, 1]} : vector<2x17x64xbf16> to vector<1x16x64xbf16>
      %37 = vector.shape_cast %36 : vector<1x16x64xbf16> to vector<16x64xbf16>
      %c4 = arith.constant 4 : index
      %c0_25 = arith.constant 0 : index
      %c0_26 = arith.constant 0 : index
      %38 = vector.load %arg2[%c4, %c0_25, %c0_26] : memref<9x64x128xbf16, #tpu.memory_space<vmem>>, vector<1x64x128xbf16>
      %39 = vector.shape_cast %38 : vector<1x64x128xbf16> to vector<64x128xbf16>
      %cst_27 = arith.constant dense<0.000000e+00> : vector<16x128xf32>
      %40 = tpu.matmul %37, %39, %cst_27 {dimension_numbers = #tpu.dot_dimension_numbers<[1], [0], [0], [1], [0, 0, 1, 1], [], []>} : vector<16x64xbf16>, vector<64x128xbf16>, vector<16x128xf32> -> vector<16x128xf32>
      %41 = arith.addf %35, %40 : vector<16x128xf32>
      %42 = vector.extract_strided_slice %29 {offsets = [0, 1, 0], sizes = [1, 16, 64], strides = [1, 1, 1]} : vector<2x17x64xbf16> to vector<1x16x64xbf16>
      %43 = vector.shape_cast %42 : vector<1x16x64xbf16> to vector<16x64xbf16>
      %c5 = arith.constant 5 : index
      %c0_28 = arith.constant 0 : index
      %c0_29 = arith.constant 0 : index
      %44 = vector.load %arg2[%c5, %c0_28, %c0_29] : memref<9x64x128xbf16, #tpu.memory_space<vmem>>, vector<1x64x128xbf16>
      %45 = vector.shape_cast %44 : vector<1x64x128xbf16> to vector<64x128xbf16>
      %cst_30 = arith.constant dense<0.000000e+00> : vector<16x128xf32>
      %46 = tpu.matmul %43, %45, %cst_30 {dimension_numbers = #tpu.dot_dimension_numbers<[1], [0], [0], [1], [0, 0, 1, 1], [], []>} : vector<16x64xbf16>, vector<64x128xbf16>, vector<16x128xf32> -> vector<16x128xf32>
      %47 = arith.addf %41, %46 : vector<16x128xf32>
      %c2_i32_31 = arith.constant 2 : i32
      %48 = arith.addi %2, %c2_i32_31 : i32
      %c0_32 = arith.constant 0 : index
      %49 = arith.index_cast %48 : i32 to index
      %c0_33 = arith.constant 0 : index
      %c0_34 = arith.constant 0 : index
      %c0_35 = arith.constant 0 : index
      %50 = vector.load %arg1[%c0_32, %49, %c0_33, %c0_34, %c0_35] : memref<1x34x2x17x64xbf16, #tpu.memory_space<vmem>>, vector<1x1x2x17x64xbf16>
      %51 = vector.shape_cast %50 : vector<1x1x2x17x64xbf16> to vector<2x17x64xbf16>
      %52 = vector.extract_strided_slice %51 {offsets = [0, 0, 0], sizes = [1, 16, 64], strides = [1, 1, 1]} : vector<2x17x64xbf16> to vector<1x16x64xbf16>
      %53 = vector.shape_cast %52 : vector<1x16x64xbf16> to vector<16x64xbf16>
      %c6 = arith.constant 6 : index
      %c0_36 = arith.constant 0 : index
      %c0_37 = arith.constant 0 : index
      %54 = vector.load %arg2[%c6, %c0_36, %c0_37] : memref<9x64x128xbf16, #tpu.memory_space<vmem>>, vector<1x64x128xbf16>
      %55 = vector.shape_cast %54 : vector<1x64x128xbf16> to vector<64x128xbf16>
      %cst_38 = arith.constant dense<0.000000e+00> : vector<16x128xf32>
      %56 = tpu.matmul %53, %55, %cst_38 {dimension_numbers = #tpu.dot_dimension_numbers<[1], [0], [0], [1], [0, 0, 1, 1], [], []>} : vector<16x64xbf16>, vector<64x128xbf16>, vector<16x128xf32> -> vector<16x128xf32>
      %57 = arith.addf %47, %56 : vector<16x128xf32>
      %58 = vector.extract_strided_slice %51 {offsets = [1, 0, 0], sizes = [1, 16, 64], strides = [1, 1, 1]} : vector<2x17x64xbf16> to vector<1x16x64xbf16>
      %59 = vector.shape_cast %58 : vector<1x16x64xbf16> to vector<16x64xbf16>
      %c7 = arith.constant 7 : index
      %c0_39 = arith.constant 0 : index
      %c0_40 = arith.constant 0 : index
      %60 = vector.load %arg2[%c7, %c0_39, %c0_40] : memref<9x64x128xbf16, #tpu.memory_space<vmem>>, vector<1x64x128xbf16>
      %61 = vector.shape_cast %60 : vector<1x64x128xbf16> to vector<64x128xbf16>
      %cst_41 = arith.constant dense<0.000000e+00> : vector<16x128xf32>
      %62 = tpu.matmul %59, %61, %cst_41 {dimension_numbers = #tpu.dot_dimension_numbers<[1], [0], [0], [1], [0, 0, 1, 1], [], []>} : vector<16x64xbf16>, vector<64x128xbf16>, vector<16x128xf32> -> vector<16x128xf32>
      %63 = arith.addf %57, %62 : vector<16x128xf32>
      %64 = vector.extract_strided_slice %51 {offsets = [0, 1, 0], sizes = [1, 16, 64], strides = [1, 1, 1]} : vector<2x17x64xbf16> to vector<1x16x64xbf16>
      %65 = vector.shape_cast %64 : vector<1x16x64xbf16> to vector<16x64xbf16>
      %c8 = arith.constant 8 : index
      %c0_42 = arith.constant 0 : index
      %c0_43 = arith.constant 0 : index
      %66 = vector.load %arg2[%c8, %c0_42, %c0_43] : memref<9x64x128xbf16, #tpu.memory_space<vmem>>, vector<1x64x128xbf16>
      %67 = vector.shape_cast %66 : vector<1x64x128xbf16> to vector<64x128xbf16>
      %cst_44 = arith.constant dense<0.000000e+00> : vector<16x128xf32>
      %68 = tpu.matmul %65, %67, %cst_44 {dimension_numbers = #tpu.dot_dimension_numbers<[1], [0], [0], [1], [0, 0, 1, 1], [], []>} : vector<16x64xbf16>, vector<64x128xbf16>, vector<16x128xf32> -> vector<16x128xf32>
      %69 = arith.addf %63, %68 : vector<16x128xf32>
      %70 = vector.broadcast %0 : vector<1x128xf32> to vector<16x128xf32>
      %71 = arith.addf %69, %70 : vector<16x128xf32>
      %cst_45 = arith.constant 0.000000e+00 : f32
      %72 = vector.broadcast %cst_45 : f32 to vector<16x128xf32>
      %73 = arith.cmpf oge, %71, %72 : vector<16x128xf32>
      %cst_46 = arith.constant 0.00999999977 : f32
      %74 = vector.broadcast %cst_46 : f32 to vector<16x128xf32>
      %75 = arith.mulf %74, %71 : vector<16x128xf32>
      %76 = arith.select %73, %71, %75 : vector<16x128xi1>, vector<16x128xf32>
      %77 = arith.truncf %76 : vector<16x128xf32> to vector<16x128xbf16>
      %c0_47 = arith.constant 0 : index
      %78 = arith.index_cast %arg5 : i32 to index
      %c0_48 = arith.constant 0 : index
      %c0_49 = arith.constant 0 : index
      %79 = vector.load %arg4[%c0_47, %78, %c0_48, %c0_49] : memref<1x16x16x128xbf16, #tpu.memory_space<vmem>>, vector<1x1x16x128xbf16>
      %80 = vector.shape_cast %79 : vector<1x1x16x128xbf16> to vector<16x128xbf16>
      %81 = vector.shape_cast %77 : vector<16x128xbf16> to vector<1x1x16x128xbf16>
      tpu.vector_store %arg4[%c0_47, %78, %c0_48, %c0_49], %81 {strides = array<i32>} : memref<1x16x16x128xbf16, #tpu.memory_space<vmem>>, vector<1x1x16x128xbf16>,
    }
    %c16_i32_1 = arith.constant 16 : i32
    return
  }
  func.func @transform_0(%arg0: i32) -> (i32, i32, i32, i32, i32) {
    %c0_i32 = arith.constant 0 : i32
    %c0_i32_0 = arith.constant 0 : i32
    %c0_i32_1 = arith.constant 0 : i32
    %c0_i32_2 = arith.constant 0 : i32
    %c0_i32_3 = arith.constant 0 : i32
    return %arg0, %c0_i32, %c0_i32_0, %c0_i32_1, %c0_i32_2 : i32, i32, i32, i32, i32
  }
  func.func @transform_1(%arg0: i32) -> (i32, i32, i32) {
    %c0_i32 = arith.constant 0 : i32
    %c0_i32_0 = arith.constant 0 : i32
    %c0_i32_1 = arith.constant 0 : i32
    %c0_i32_2 = arith.constant 0 : i32
    return %c0_i32, %c0_i32_0, %c0_i32_1 : i32, i32, i32
  }
  func.func @transform_2(%arg0: i32) -> (i32, i32) {
    %c0_i32 = arith.constant 0 : i32
    %c0_i32_0 = arith.constant 0 : i32
    %c0_i32_1 = arith.constant 0 : i32
    return %c0_i32, %c0_i32_0 : i32, i32
  }
  func.func @transform_3(%arg0: i32) -> (i32, i32, i32, i32) {
    %c0_i32 = arith.constant 0 : i32
    %c0_i32_0 = arith.constant 0 : i32
    %c0_i32_1 = arith.constant 0 : i32
    %c0_i32_2 = arith.constant 0 : i32
    return %arg0, %c0_i32, %c0_i32_0, %c0_i32_1 : i32, i32, i32, i32
  }
}

module attributes {stable_mosaic.version = 11 : i64} {
  func.func @_direct_conv_kernel(%arg0: i32, %arg1: memref<1x20x1x20x128xbf16, #tpu.memory_space<vmem>>, %arg2: memref<16x128x64xbf16, #tpu.memory_space<vmem>>, %arg3: memref<1x64xf32, #tpu.memory_space<vmem>>, %arg4: memref<1x17x17x64xbf16, #tpu.memory_space<vmem>>) attributes {dimension_semantics = [#tpu.dimension_semantics<parallel>], iteration_bounds = array<i64: 2>, scalar_prefetch = 0 : i64, scratch_operands = 0 : i64, tpu.core_type = #tpu.core_type<tc>, window_params = [{transform_indices = @transform_0, window_bounds = array<i64: 1, 20, 1, 20, 128>}, {pipeline_mode = #tpu.pipeline_mode<synchronous>, transform_indices = @transform_1, window_bounds = array<i64: 16, 128, 64>}, {pipeline_mode = #tpu.pipeline_mode<synchronous>, transform_indices = @transform_2, window_bounds = array<i64: 1, 64>}, {transform_indices = @transform_3, window_bounds = array<i64: 1, 17, 17, 64>}]} {
    %c0 = arith.constant 0 : index
    %c0_0 = arith.constant 0 : index
    %0 = vector.load %arg3[%c0, %c0_0] : memref<1x64xf32, #tpu.memory_space<vmem>>, vector<1x64xf32>
    %c0_i32 = arith.constant 0 : i32
    %c17_i32 = arith.constant 17 : i32
    %1 = arith.addi %c0_i32, %c17_i32 : i32
    %c1_i32 = arith.constant 1 : i32
    scf.for %arg5 = %c0_i32 to %1 step %c1_i32  : i32 {
      %c1_i32_2 = arith.constant 1 : i32
      %2 = arith.muli %arg5, %c1_i32_2 : i32
      %cst = arith.constant 0.000000e+00 : f32
      %3 = vector.broadcast %cst : f32 to vector<17x64xf32>
      %c0_i32_3 = arith.constant 0 : i32
      %4 = arith.addi %2, %c0_i32_3 : i32
      %c0_4 = arith.constant 0 : index
      %5 = arith.index_cast %4 : i32 to index
      %c0_5 = arith.constant 0 : index
      %c0_6 = arith.constant 0 : index
      %c0_7 = arith.constant 0 : index
      %6 = vector.load %arg1[%c0_4, %5, %c0_5, %c0_6, %c0_7] : memref<1x20x1x20x128xbf16, #tpu.memory_space<vmem>>, vector<1x1x1x20x128xbf16>
      %7 = vector.shape_cast %6 : vector<1x1x1x20x128xbf16> to vector<1x20x128xbf16>
      %8 = vector.extract_strided_slice %7 {offsets = [0, 0, 0], sizes = [1, 17, 128], strides = [1, 1, 1]} : vector<1x20x128xbf16> to vector<1x17x128xbf16>
      %9 = vector.shape_cast %8 : vector<1x17x128xbf16> to vector<17x128xbf16>
      %c0_8 = arith.constant 0 : index
      %c0_9 = arith.constant 0 : index
      %c0_10 = arith.constant 0 : index
      %10 = vector.load %arg2[%c0_8, %c0_9, %c0_10] : memref<16x128x64xbf16, #tpu.memory_space<vmem>>, vector<1x128x64xbf16>
      %11 = vector.shape_cast %10 : vector<1x128x64xbf16> to vector<128x64xbf16>
      %cst_11 = arith.constant dense<0.000000e+00> : vector<17x64xf32>
      %12 = tpu.matmul %9, %11, %cst_11 {dimension_numbers = #tpu.dot_dimension_numbers<[1], [0], [0], [1], [0, 0, 1, 1], [], []>} : vector<17x128xbf16>, vector<128x64xbf16>, vector<17x64xf32> -> vector<17x64xf32>
      %13 = arith.addf %3, %12 : vector<17x64xf32>
      %14 = vector.extract_strided_slice %7 {offsets = [0, 1, 0], sizes = [1, 17, 128], strides = [1, 1, 1]} : vector<1x20x128xbf16> to vector<1x17x128xbf16>
      %15 = vector.shape_cast %14 : vector<1x17x128xbf16> to vector<17x128xbf16>
      %c1 = arith.constant 1 : index
      %c0_12 = arith.constant 0 : index
      %c0_13 = arith.constant 0 : index
      %16 = vector.load %arg2[%c1, %c0_12, %c0_13] : memref<16x128x64xbf16, #tpu.memory_space<vmem>>, vector<1x128x64xbf16>
      %17 = vector.shape_cast %16 : vector<1x128x64xbf16> to vector<128x64xbf16>
      %cst_14 = arith.constant dense<0.000000e+00> : vector<17x64xf32>
      %18 = tpu.matmul %15, %17, %cst_14 {dimension_numbers = #tpu.dot_dimension_numbers<[1], [0], [0], [1], [0, 0, 1, 1], [], []>} : vector<17x128xbf16>, vector<128x64xbf16>, vector<17x64xf32> -> vector<17x64xf32>
      %19 = arith.addf %13, %18 : vector<17x64xf32>
      %20 = vector.extract_strided_slice %7 {offsets = [0, 2, 0], sizes = [1, 17, 128], strides = [1, 1, 1]} : vector<1x20x128xbf16> to vector<1x17x128xbf16>
      %21 = vector.shape_cast %20 : vector<1x17x128xbf16> to vector<17x128xbf16>
      %c2 = arith.constant 2 : index
      %c0_15 = arith.constant 0 : index
      %c0_16 = arith.constant 0 : index
      %22 = vector.load %arg2[%c2, %c0_15, %c0_16] : memref<16x128x64xbf16, #tpu.memory_space<vmem>>, vector<1x128x64xbf16>
      %23 = vector.shape_cast %22 : vector<1x128x64xbf16> to vector<128x64xbf16>
      %cst_17 = arith.constant dense<0.000000e+00> : vector<17x64xf32>
      %24 = tpu.matmul %21, %23, %cst_17 {dimension_numbers = #tpu.dot_dimension_numbers<[1], [0], [0], [1], [0, 0, 1, 1], [], []>} : vector<17x128xbf16>, vector<128x64xbf16>, vector<17x64xf32> -> vector<17x64xf32>
      %25 = arith.addf %19, %24 : vector<17x64xf32>
      %26 = vector.extract_strided_slice %7 {offsets = [0, 3, 0], sizes = [1, 17, 128], strides = [1, 1, 1]} : vector<1x20x128xbf16> to vector<1x17x128xbf16>
      %27 = vector.shape_cast %26 : vector<1x17x128xbf16> to vector<17x128xbf16>
      %c3 = arith.constant 3 : index
      %c0_18 = arith.constant 0 : index
      %c0_19 = arith.constant 0 : index
      %28 = vector.load %arg2[%c3, %c0_18, %c0_19] : memref<16x128x64xbf16, #tpu.memory_space<vmem>>, vector<1x128x64xbf16>
      %29 = vector.shape_cast %28 : vector<1x128x64xbf16> to vector<128x64xbf16>
      %cst_20 = arith.constant dense<0.000000e+00> : vector<17x64xf32>
      %30 = tpu.matmul %27, %29, %cst_20 {dimension_numbers = #tpu.dot_dimension_numbers<[1], [0], [0], [1], [0, 0, 1, 1], [], []>} : vector<17x128xbf16>, vector<128x64xbf16>, vector<17x64xf32> -> vector<17x64xf32>
      %31 = arith.addf %25, %30 : vector<17x64xf32>
      %c1_i32_21 = arith.constant 1 : i32
      %32 = arith.addi %2, %c1_i32_21 : i32
      %c0_22 = arith.constant 0 : index
      %33 = arith.index_cast %32 : i32 to index
      %c0_23 = arith.constant 0 : index
      %c0_24 = arith.constant 0 : index
      %c0_25 = arith.constant 0 : index
      %34 = vector.load %arg1[%c0_22, %33, %c0_23, %c0_24, %c0_25] : memref<1x20x1x20x128xbf16, #tpu.memory_space<vmem>>, vector<1x1x1x20x128xbf16>
      %35 = vector.shape_cast %34 : vector<1x1x1x20x128xbf16> to vector<1x20x128xbf16>
      %36 = vector.extract_strided_slice %35 {offsets = [0, 0, 0], sizes = [1, 17, 128], strides = [1, 1, 1]} : vector<1x20x128xbf16> to vector<1x17x128xbf16>
      %37 = vector.shape_cast %36 : vector<1x17x128xbf16> to vector<17x128xbf16>
      %c4 = arith.constant 4 : index
      %c0_26 = arith.constant 0 : index
      %c0_27 = arith.constant 0 : index
      %38 = vector.load %arg2[%c4, %c0_26, %c0_27] : memref<16x128x64xbf16, #tpu.memory_space<vmem>>, vector<1x128x64xbf16>
      %39 = vector.shape_cast %38 : vector<1x128x64xbf16> to vector<128x64xbf16>
      %cst_28 = arith.constant dense<0.000000e+00> : vector<17x64xf32>
      %40 = tpu.matmul %37, %39, %cst_28 {dimension_numbers = #tpu.dot_dimension_numbers<[1], [0], [0], [1], [0, 0, 1, 1], [], []>} : vector<17x128xbf16>, vector<128x64xbf16>, vector<17x64xf32> -> vector<17x64xf32>
      %41 = arith.addf %31, %40 : vector<17x64xf32>
      %42 = vector.extract_strided_slice %35 {offsets = [0, 1, 0], sizes = [1, 17, 128], strides = [1, 1, 1]} : vector<1x20x128xbf16> to vector<1x17x128xbf16>
      %43 = vector.shape_cast %42 : vector<1x17x128xbf16> to vector<17x128xbf16>
      %c5 = arith.constant 5 : index
      %c0_29 = arith.constant 0 : index
      %c0_30 = arith.constant 0 : index
      %44 = vector.load %arg2[%c5, %c0_29, %c0_30] : memref<16x128x64xbf16, #tpu.memory_space<vmem>>, vector<1x128x64xbf16>
      %45 = vector.shape_cast %44 : vector<1x128x64xbf16> to vector<128x64xbf16>
      %cst_31 = arith.constant dense<0.000000e+00> : vector<17x64xf32>
      %46 = tpu.matmul %43, %45, %cst_31 {dimension_numbers = #tpu.dot_dimension_numbers<[1], [0], [0], [1], [0, 0, 1, 1], [], []>} : vector<17x128xbf16>, vector<128x64xbf16>, vector<17x64xf32> -> vector<17x64xf32>
      %47 = arith.addf %41, %46 : vector<17x64xf32>
      %48 = vector.extract_strided_slice %35 {offsets = [0, 2, 0], sizes = [1, 17, 128], strides = [1, 1, 1]} : vector<1x20x128xbf16> to vector<1x17x128xbf16>
      %49 = vector.shape_cast %48 : vector<1x17x128xbf16> to vector<17x128xbf16>
      %c6 = arith.constant 6 : index
      %c0_32 = arith.constant 0 : index
      %c0_33 = arith.constant 0 : index
      %50 = vector.load %arg2[%c6, %c0_32, %c0_33] : memref<16x128x64xbf16, #tpu.memory_space<vmem>>, vector<1x128x64xbf16>
      %51 = vector.shape_cast %50 : vector<1x128x64xbf16> to vector<128x64xbf16>
      %cst_34 = arith.constant dense<0.000000e+00> : vector<17x64xf32>
      %52 = tpu.matmul %49, %51, %cst_34 {dimension_numbers = #tpu.dot_dimension_numbers<[1], [0], [0], [1], [0, 0, 1, 1], [], []>} : vector<17x128xbf16>, vector<128x64xbf16>, vector<17x64xf32> -> vector<17x64xf32>
      %53 = arith.addf %47, %52 : vector<17x64xf32>
      %54 = vector.extract_strided_slice %35 {offsets = [0, 3, 0], sizes = [1, 17, 128], strides = [1, 1, 1]} : vector<1x20x128xbf16> to vector<1x17x128xbf16>
      %55 = vector.shape_cast %54 : vector<1x17x128xbf16> to vector<17x128xbf16>
      %c7 = arith.constant 7 : index
      %c0_35 = arith.constant 0 : index
      %c0_36 = arith.constant 0 : index
      %56 = vector.load %arg2[%c7, %c0_35, %c0_36] : memref<16x128x64xbf16, #tpu.memory_space<vmem>>, vector<1x128x64xbf16>
      %57 = vector.shape_cast %56 : vector<1x128x64xbf16> to vector<128x64xbf16>
      %cst_37 = arith.constant dense<0.000000e+00> : vector<17x64xf32>
      %58 = tpu.matmul %55, %57, %cst_37 {dimension_numbers = #tpu.dot_dimension_numbers<[1], [0], [0], [1], [0, 0, 1, 1], [], []>} : vector<17x128xbf16>, vector<128x64xbf16>, vector<17x64xf32> -> vector<17x64xf32>
      %59 = arith.addf %53, %58 : vector<17x64xf32>
      %c2_i32 = arith.constant 2 : i32
      %60 = arith.addi %2, %c2_i32 : i32
      %c0_38 = arith.constant 0 : index
      %61 = arith.index_cast %60 : i32 to index
      %c0_39 = arith.constant 0 : index
      %c0_40 = arith.constant 0 : index
      %c0_41 = arith.constant 0 : index
      %62 = vector.load %arg1[%c0_38, %61, %c0_39, %c0_40, %c0_41] : memref<1x20x1x20x128xbf16, #tpu.memory_space<vmem>>, vector<1x1x1x20x128xbf16>
      %63 = vector.shape_cast %62 : vector<1x1x1x20x128xbf16> to vector<1x20x128xbf16>
      %64 = vector.extract_strided_slice %63 {offsets = [0, 0, 0], sizes = [1, 17, 128], strides = [1, 1, 1]} : vector<1x20x128xbf16> to vector<1x17x128xbf16>
      %65 = vector.shape_cast %64 : vector<1x17x128xbf16> to vector<17x128xbf16>
      %c8 = arith.constant 8 : index
      %c0_42 = arith.constant 0 : index
      %c0_43 = arith.constant 0 : index
      %66 = vector.load %arg2[%c8, %c0_42, %c0_43] : memref<16x128x64xbf16, #tpu.memory_space<vmem>>, vector<1x128x64xbf16>
      %67 = vector.shape_cast %66 : vector<1x128x64xbf16> to vector<128x64xbf16>
      %cst_44 = arith.constant dense<0.000000e+00> : vector<17x64xf32>
      %68 = tpu.matmul %65, %67, %cst_44 {dimension_numbers = #tpu.dot_dimension_numbers<[1], [0], [0], [1], [0, 0, 1, 1], [], []>} : vector<17x128xbf16>, vector<128x64xbf16>, vector<17x64xf32> -> vector<17x64xf32>
      %69 = arith.addf %59, %68 : vector<17x64xf32>
      %70 = vector.extract_strided_slice %63 {offsets = [0, 1, 0], sizes = [1, 17, 128], strides = [1, 1, 1]} : vector<1x20x128xbf16> to vector<1x17x128xbf16>
      %71 = vector.shape_cast %70 : vector<1x17x128xbf16> to vector<17x128xbf16>
      %c9 = arith.constant 9 : index
      %c0_45 = arith.constant 0 : index
      %c0_46 = arith.constant 0 : index
      %72 = vector.load %arg2[%c9, %c0_45, %c0_46] : memref<16x128x64xbf16, #tpu.memory_space<vmem>>, vector<1x128x64xbf16>
      %73 = vector.shape_cast %72 : vector<1x128x64xbf16> to vector<128x64xbf16>
      %cst_47 = arith.constant dense<0.000000e+00> : vector<17x64xf32>
      %74 = tpu.matmul %71, %73, %cst_47 {dimension_numbers = #tpu.dot_dimension_numbers<[1], [0], [0], [1], [0, 0, 1, 1], [], []>} : vector<17x128xbf16>, vector<128x64xbf16>, vector<17x64xf32> -> vector<17x64xf32>
      %75 = arith.addf %69, %74 : vector<17x64xf32>
      %76 = vector.extract_strided_slice %63 {offsets = [0, 2, 0], sizes = [1, 17, 128], strides = [1, 1, 1]} : vector<1x20x128xbf16> to vector<1x17x128xbf16>
      %77 = vector.shape_cast %76 : vector<1x17x128xbf16> to vector<17x128xbf16>
      %c10 = arith.constant 10 : index
      %c0_48 = arith.constant 0 : index
      %c0_49 = arith.constant 0 : index
      %78 = vector.load %arg2[%c10, %c0_48, %c0_49] : memref<16x128x64xbf16, #tpu.memory_space<vmem>>, vector<1x128x64xbf16>
      %79 = vector.shape_cast %78 : vector<1x128x64xbf16> to vector<128x64xbf16>
      %cst_50 = arith.constant dense<0.000000e+00> : vector<17x64xf32>
      %80 = tpu.matmul %77, %79, %cst_50 {dimension_numbers = #tpu.dot_dimension_numbers<[1], [0], [0], [1], [0, 0, 1, 1], [], []>} : vector<17x128xbf16>, vector<128x64xbf16>, vector<17x64xf32> -> vector<17x64xf32>
      %81 = arith.addf %75, %80 : vector<17x64xf32>
      %82 = vector.extract_strided_slice %63 {offsets = [0, 3, 0], sizes = [1, 17, 128], strides = [1, 1, 1]} : vector<1x20x128xbf16> to vector<1x17x128xbf16>
      %83 = vector.shape_cast %82 : vector<1x17x128xbf16> to vector<17x128xbf16>
      %c11 = arith.constant 11 : index
      %c0_51 = arith.constant 0 : index
      %c0_52 = arith.constant 0 : index
      %84 = vector.load %arg2[%c11, %c0_51, %c0_52] : memref<16x128x64xbf16, #tpu.memory_space<vmem>>, vector<1x128x64xbf16>
      %85 = vector.shape_cast %84 : vector<1x128x64xbf16> to vector<128x64xbf16>
      %cst_53 = arith.constant dense<0.000000e+00> : vector<17x64xf32>
      %86 = tpu.matmul %83, %85, %cst_53 {dimension_numbers = #tpu.dot_dimension_numbers<[1], [0], [0], [1], [0, 0, 1, 1], [], []>} : vector<17x128xbf16>, vector<128x64xbf16>, vector<17x64xf32> -> vector<17x64xf32>
      %87 = arith.addf %81, %86 : vector<17x64xf32>
      %c3_i32 = arith.constant 3 : i32
      %88 = arith.addi %2, %c3_i32 : i32
      %c0_54 = arith.constant 0 : index
      %89 = arith.index_cast %88 : i32 to index
      %c0_55 = arith.constant 0 : index
      %c0_56 = arith.constant 0 : index
      %c0_57 = arith.constant 0 : index
      %90 = vector.load %arg1[%c0_54, %89, %c0_55, %c0_56, %c0_57] : memref<1x20x1x20x128xbf16, #tpu.memory_space<vmem>>, vector<1x1x1x20x128xbf16>
      %91 = vector.shape_cast %90 : vector<1x1x1x20x128xbf16> to vector<1x20x128xbf16>
      %92 = vector.extract_strided_slice %91 {offsets = [0, 0, 0], sizes = [1, 17, 128], strides = [1, 1, 1]} : vector<1x20x128xbf16> to vector<1x17x128xbf16>
      %93 = vector.shape_cast %92 : vector<1x17x128xbf16> to vector<17x128xbf16>
      %c12 = arith.constant 12 : index
      %c0_58 = arith.constant 0 : index
      %c0_59 = arith.constant 0 : index
      %94 = vector.load %arg2[%c12, %c0_58, %c0_59] : memref<16x128x64xbf16, #tpu.memory_space<vmem>>, vector<1x128x64xbf16>
      %95 = vector.shape_cast %94 : vector<1x128x64xbf16> to vector<128x64xbf16>
      %cst_60 = arith.constant dense<0.000000e+00> : vector<17x64xf32>
      %96 = tpu.matmul %93, %95, %cst_60 {dimension_numbers = #tpu.dot_dimension_numbers<[1], [0], [0], [1], [0, 0, 1, 1], [], []>} : vector<17x128xbf16>, vector<128x64xbf16>, vector<17x64xf32> -> vector<17x64xf32>
      %97 = arith.addf %87, %96 : vector<17x64xf32>
      %98 = vector.extract_strided_slice %91 {offsets = [0, 1, 0], sizes = [1, 17, 128], strides = [1, 1, 1]} : vector<1x20x128xbf16> to vector<1x17x128xbf16>
      %99 = vector.shape_cast %98 : vector<1x17x128xbf16> to vector<17x128xbf16>
      %c13 = arith.constant 13 : index
      %c0_61 = arith.constant 0 : index
      %c0_62 = arith.constant 0 : index
      %100 = vector.load %arg2[%c13, %c0_61, %c0_62] : memref<16x128x64xbf16, #tpu.memory_space<vmem>>, vector<1x128x64xbf16>
      %101 = vector.shape_cast %100 : vector<1x128x64xbf16> to vector<128x64xbf16>
      %cst_63 = arith.constant dense<0.000000e+00> : vector<17x64xf32>
      %102 = tpu.matmul %99, %101, %cst_63 {dimension_numbers = #tpu.dot_dimension_numbers<[1], [0], [0], [1], [0, 0, 1, 1], [], []>} : vector<17x128xbf16>, vector<128x64xbf16>, vector<17x64xf32> -> vector<17x64xf32>
      %103 = arith.addf %97, %102 : vector<17x64xf32>
      %104 = vector.extract_strided_slice %91 {offsets = [0, 2, 0], sizes = [1, 17, 128], strides = [1, 1, 1]} : vector<1x20x128xbf16> to vector<1x17x128xbf16>
      %105 = vector.shape_cast %104 : vector<1x17x128xbf16> to vector<17x128xbf16>
      %c14 = arith.constant 14 : index
      %c0_64 = arith.constant 0 : index
      %c0_65 = arith.constant 0 : index
      %106 = vector.load %arg2[%c14, %c0_64, %c0_65] : memref<16x128x64xbf16, #tpu.memory_space<vmem>>, vector<1x128x64xbf16>
      %107 = vector.shape_cast %106 : vector<1x128x64xbf16> to vector<128x64xbf16>
      %cst_66 = arith.constant dense<0.000000e+00> : vector<17x64xf32>
      %108 = tpu.matmul %105, %107, %cst_66 {dimension_numbers = #tpu.dot_dimension_numbers<[1], [0], [0], [1], [0, 0, 1, 1], [], []>} : vector<17x128xbf16>, vector<128x64xbf16>, vector<17x64xf32> -> vector<17x64xf32>
      %109 = arith.addf %103, %108 : vector<17x64xf32>
      %110 = vector.extract_strided_slice %91 {offsets = [0, 3, 0], sizes = [1, 17, 128], strides = [1, 1, 1]} : vector<1x20x128xbf16> to vector<1x17x128xbf16>
      %111 = vector.shape_cast %110 : vector<1x17x128xbf16> to vector<17x128xbf16>
      %c15 = arith.constant 15 : index
      %c0_67 = arith.constant 0 : index
      %c0_68 = arith.constant 0 : index
      %112 = vector.load %arg2[%c15, %c0_67, %c0_68] : memref<16x128x64xbf16, #tpu.memory_space<vmem>>, vector<1x128x64xbf16>
      %113 = vector.shape_cast %112 : vector<1x128x64xbf16> to vector<128x64xbf16>
      %cst_69 = arith.constant dense<0.000000e+00> : vector<17x64xf32>
      %114 = tpu.matmul %111, %113, %cst_69 {dimension_numbers = #tpu.dot_dimension_numbers<[1], [0], [0], [1], [0, 0, 1, 1], [], []>} : vector<17x128xbf16>, vector<128x64xbf16>, vector<17x64xf32> -> vector<17x64xf32>
      %115 = arith.addf %109, %114 : vector<17x64xf32>
      %116 = vector.broadcast %0 : vector<1x64xf32> to vector<17x64xf32>
      %117 = arith.addf %115, %116 : vector<17x64xf32>
      %cst_70 = arith.constant 0.000000e+00 : f32
      %118 = vector.broadcast %cst_70 : f32 to vector<17x64xf32>
      %119 = arith.cmpf oge, %117, %118 : vector<17x64xf32>
      %cst_71 = arith.constant 0.00999999977 : f32
      %120 = vector.broadcast %cst_71 : f32 to vector<17x64xf32>
      %121 = arith.mulf %120, %117 : vector<17x64xf32>
      %122 = arith.select %119, %117, %121 : vector<17x64xi1>, vector<17x64xf32>
      %123 = arith.truncf %122 : vector<17x64xf32> to vector<17x64xbf16>
      %c0_72 = arith.constant 0 : index
      %124 = arith.index_cast %arg5 : i32 to index
      %c0_73 = arith.constant 0 : index
      %c0_74 = arith.constant 0 : index
      %125 = vector.load %arg4[%c0_72, %124, %c0_73, %c0_74] : memref<1x17x17x64xbf16, #tpu.memory_space<vmem>>, vector<1x1x17x64xbf16>
      %126 = vector.shape_cast %125 : vector<1x1x17x64xbf16> to vector<17x64xbf16>
      %127 = vector.shape_cast %123 : vector<17x64xbf16> to vector<1x1x17x64xbf16>
      tpu.vector_store %arg4[%c0_72, %124, %c0_73, %c0_74], %127 {strides = array<i32>} : memref<1x17x17x64xbf16, #tpu.memory_space<vmem>>, vector<1x1x17x64xbf16>,
    }
    %c17_i32_1 = arith.constant 17 : i32
    return
  }
  func.func @transform_0(%arg0: i32) -> (i32, i32, i32, i32, i32) {
    %c0_i32 = arith.constant 0 : i32
    %c0_i32_0 = arith.constant 0 : i32
    %c0_i32_1 = arith.constant 0 : i32
    %c0_i32_2 = arith.constant 0 : i32
    %c0_i32_3 = arith.constant 0 : i32
    return %arg0, %c0_i32, %c0_i32_0, %c0_i32_1, %c0_i32_2 : i32, i32, i32, i32, i32
  }
  func.func @transform_1(%arg0: i32) -> (i32, i32, i32) {
    %c0_i32 = arith.constant 0 : i32
    %c0_i32_0 = arith.constant 0 : i32
    %c0_i32_1 = arith.constant 0 : i32
    %c0_i32_2 = arith.constant 0 : i32
    return %c0_i32, %c0_i32_0, %c0_i32_1 : i32, i32, i32
  }
  func.func @transform_2(%arg0: i32) -> (i32, i32) {
    %c0_i32 = arith.constant 0 : i32
    %c0_i32_0 = arith.constant 0 : i32
    %c0_i32_1 = arith.constant 0 : i32
    return %c0_i32, %c0_i32_0 : i32, i32
  }
  func.func @transform_3(%arg0: i32) -> (i32, i32, i32, i32) {
    %c0_i32 = arith.constant 0 : i32
    %c0_i32_0 = arith.constant 0 : i32
    %c0_i32_1 = arith.constant 0 : i32
    %c0_i32_2 = arith.constant 0 : i32
    return %arg0, %c0_i32, %c0_i32_0, %c0_i32_1 : i32, i32, i32, i32
  }
}

module attributes {stable_mosaic.version = 11 : i64} {
  func.func @_direct_conv_kernel(%arg0: i32, %arg1: memref<1x21x1x21x64xbf16, #tpu.memory_space<vmem>>, %arg2: memref<16x64x8xbf16, #tpu.memory_space<vmem>>, %arg3: memref<1x8xf32, #tpu.memory_space<vmem>>, %arg4: memref<1x18x18x8xf32, #tpu.memory_space<vmem>>) attributes {dimension_semantics = [#tpu.dimension_semantics<parallel>], iteration_bounds = array<i64: 2>, scalar_prefetch = 0 : i64, scratch_operands = 0 : i64, tpu.core_type = #tpu.core_type<tc>, window_params = [{transform_indices = @transform_0, window_bounds = array<i64: 1, 21, 1, 21, 64>}, {pipeline_mode = #tpu.pipeline_mode<synchronous>, transform_indices = @transform_1, window_bounds = array<i64: 16, 64, 8>}, {pipeline_mode = #tpu.pipeline_mode<synchronous>, transform_indices = @transform_2, window_bounds = array<i64: 1, 8>}, {transform_indices = @transform_3, window_bounds = array<i64: 1, 18, 18, 8>}]} {
    %c0 = arith.constant 0 : index
    %c0_0 = arith.constant 0 : index
    %0 = vector.load %arg3[%c0, %c0_0] : memref<1x8xf32, #tpu.memory_space<vmem>>, vector<1x8xf32>
    %c0_i32 = arith.constant 0 : i32
    %c18_i32 = arith.constant 18 : i32
    %1 = arith.addi %c0_i32, %c18_i32 : i32
    %c1_i32 = arith.constant 1 : i32
    scf.for %arg5 = %c0_i32 to %1 step %c1_i32  : i32 {
      %c1_i32_2 = arith.constant 1 : i32
      %2 = arith.muli %arg5, %c1_i32_2 : i32
      %cst = arith.constant 0.000000e+00 : f32
      %3 = vector.broadcast %cst : f32 to vector<18x8xf32>
      %c0_i32_3 = arith.constant 0 : i32
      %4 = arith.addi %2, %c0_i32_3 : i32
      %c0_4 = arith.constant 0 : index
      %5 = arith.index_cast %4 : i32 to index
      %c0_5 = arith.constant 0 : index
      %c0_6 = arith.constant 0 : index
      %c0_7 = arith.constant 0 : index
      %6 = vector.load %arg1[%c0_4, %5, %c0_5, %c0_6, %c0_7] : memref<1x21x1x21x64xbf16, #tpu.memory_space<vmem>>, vector<1x1x1x21x64xbf16>
      %7 = vector.shape_cast %6 : vector<1x1x1x21x64xbf16> to vector<1x21x64xbf16>
      %8 = vector.extract_strided_slice %7 {offsets = [0, 0, 0], sizes = [1, 18, 64], strides = [1, 1, 1]} : vector<1x21x64xbf16> to vector<1x18x64xbf16>
      %9 = vector.shape_cast %8 : vector<1x18x64xbf16> to vector<18x64xbf16>
      %c0_8 = arith.constant 0 : index
      %c0_9 = arith.constant 0 : index
      %c0_10 = arith.constant 0 : index
      %10 = vector.load %arg2[%c0_8, %c0_9, %c0_10] : memref<16x64x8xbf16, #tpu.memory_space<vmem>>, vector<1x64x8xbf16>
      %11 = vector.shape_cast %10 : vector<1x64x8xbf16> to vector<64x8xbf16>
      %cst_11 = arith.constant dense<0.000000e+00> : vector<18x8xf32>
      %12 = tpu.matmul %9, %11, %cst_11 {dimension_numbers = #tpu.dot_dimension_numbers<[1], [0], [0], [1], [0, 0, 1, 1], [], []>} : vector<18x64xbf16>, vector<64x8xbf16>, vector<18x8xf32> -> vector<18x8xf32>
      %13 = arith.addf %3, %12 : vector<18x8xf32>
      %14 = vector.extract_strided_slice %7 {offsets = [0, 1, 0], sizes = [1, 18, 64], strides = [1, 1, 1]} : vector<1x21x64xbf16> to vector<1x18x64xbf16>
      %15 = vector.shape_cast %14 : vector<1x18x64xbf16> to vector<18x64xbf16>
      %c1 = arith.constant 1 : index
      %c0_12 = arith.constant 0 : index
      %c0_13 = arith.constant 0 : index
      %16 = vector.load %arg2[%c1, %c0_12, %c0_13] : memref<16x64x8xbf16, #tpu.memory_space<vmem>>, vector<1x64x8xbf16>
      %17 = vector.shape_cast %16 : vector<1x64x8xbf16> to vector<64x8xbf16>
      %cst_14 = arith.constant dense<0.000000e+00> : vector<18x8xf32>
      %18 = tpu.matmul %15, %17, %cst_14 {dimension_numbers = #tpu.dot_dimension_numbers<[1], [0], [0], [1], [0, 0, 1, 1], [], []>} : vector<18x64xbf16>, vector<64x8xbf16>, vector<18x8xf32> -> vector<18x8xf32>
      %19 = arith.addf %13, %18 : vector<18x8xf32>
      %20 = vector.extract_strided_slice %7 {offsets = [0, 2, 0], sizes = [1, 18, 64], strides = [1, 1, 1]} : vector<1x21x64xbf16> to vector<1x18x64xbf16>
      %21 = vector.shape_cast %20 : vector<1x18x64xbf16> to vector<18x64xbf16>
      %c2 = arith.constant 2 : index
      %c0_15 = arith.constant 0 : index
      %c0_16 = arith.constant 0 : index
      %22 = vector.load %arg2[%c2, %c0_15, %c0_16] : memref<16x64x8xbf16, #tpu.memory_space<vmem>>, vector<1x64x8xbf16>
      %23 = vector.shape_cast %22 : vector<1x64x8xbf16> to vector<64x8xbf16>
      %cst_17 = arith.constant dense<0.000000e+00> : vector<18x8xf32>
      %24 = tpu.matmul %21, %23, %cst_17 {dimension_numbers = #tpu.dot_dimension_numbers<[1], [0], [0], [1], [0, 0, 1, 1], [], []>} : vector<18x64xbf16>, vector<64x8xbf16>, vector<18x8xf32> -> vector<18x8xf32>
      %25 = arith.addf %19, %24 : vector<18x8xf32>
      %26 = vector.extract_strided_slice %7 {offsets = [0, 3, 0], sizes = [1, 18, 64], strides = [1, 1, 1]} : vector<1x21x64xbf16> to vector<1x18x64xbf16>
      %27 = vector.shape_cast %26 : vector<1x18x64xbf16> to vector<18x64xbf16>
      %c3 = arith.constant 3 : index
      %c0_18 = arith.constant 0 : index
      %c0_19 = arith.constant 0 : index
      %28 = vector.load %arg2[%c3, %c0_18, %c0_19] : memref<16x64x8xbf16, #tpu.memory_space<vmem>>, vector<1x64x8xbf16>
      %29 = vector.shape_cast %28 : vector<1x64x8xbf16> to vector<64x8xbf16>
      %cst_20 = arith.constant dense<0.000000e+00> : vector<18x8xf32>
      %30 = tpu.matmul %27, %29, %cst_20 {dimension_numbers = #tpu.dot_dimension_numbers<[1], [0], [0], [1], [0, 0, 1, 1], [], []>} : vector<18x64xbf16>, vector<64x8xbf16>, vector<18x8xf32> -> vector<18x8xf32>
      %31 = arith.addf %25, %30 : vector<18x8xf32>
      %c1_i32_21 = arith.constant 1 : i32
      %32 = arith.addi %2, %c1_i32_21 : i32
      %c0_22 = arith.constant 0 : index
      %33 = arith.index_cast %32 : i32 to index
      %c0_23 = arith.constant 0 : index
      %c0_24 = arith.constant 0 : index
      %c0_25 = arith.constant 0 : index
      %34 = vector.load %arg1[%c0_22, %33, %c0_23, %c0_24, %c0_25] : memref<1x21x1x21x64xbf16, #tpu.memory_space<vmem>>, vector<1x1x1x21x64xbf16>
      %35 = vector.shape_cast %34 : vector<1x1x1x21x64xbf16> to vector<1x21x64xbf16>
      %36 = vector.extract_strided_slice %35 {offsets = [0, 0, 0], sizes = [1, 18, 64], strides = [1, 1, 1]} : vector<1x21x64xbf16> to vector<1x18x64xbf16>
      %37 = vector.shape_cast %36 : vector<1x18x64xbf16> to vector<18x64xbf16>
      %c4 = arith.constant 4 : index
      %c0_26 = arith.constant 0 : index
      %c0_27 = arith.constant 0 : index
      %38 = vector.load %arg2[%c4, %c0_26, %c0_27] : memref<16x64x8xbf16, #tpu.memory_space<vmem>>, vector<1x64x8xbf16>
      %39 = vector.shape_cast %38 : vector<1x64x8xbf16> to vector<64x8xbf16>
      %cst_28 = arith.constant dense<0.000000e+00> : vector<18x8xf32>
      %40 = tpu.matmul %37, %39, %cst_28 {dimension_numbers = #tpu.dot_dimension_numbers<[1], [0], [0], [1], [0, 0, 1, 1], [], []>} : vector<18x64xbf16>, vector<64x8xbf16>, vector<18x8xf32> -> vector<18x8xf32>
      %41 = arith.addf %31, %40 : vector<18x8xf32>
      %42 = vector.extract_strided_slice %35 {offsets = [0, 1, 0], sizes = [1, 18, 64], strides = [1, 1, 1]} : vector<1x21x64xbf16> to vector<1x18x64xbf16>
      %43 = vector.shape_cast %42 : vector<1x18x64xbf16> to vector<18x64xbf16>
      %c5 = arith.constant 5 : index
      %c0_29 = arith.constant 0 : index
      %c0_30 = arith.constant 0 : index
      %44 = vector.load %arg2[%c5, %c0_29, %c0_30] : memref<16x64x8xbf16, #tpu.memory_space<vmem>>, vector<1x64x8xbf16>
      %45 = vector.shape_cast %44 : vector<1x64x8xbf16> to vector<64x8xbf16>
      %cst_31 = arith.constant dense<0.000000e+00> : vector<18x8xf32>
      %46 = tpu.matmul %43, %45, %cst_31 {dimension_numbers = #tpu.dot_dimension_numbers<[1], [0], [0], [1], [0, 0, 1, 1], [], []>} : vector<18x64xbf16>, vector<64x8xbf16>, vector<18x8xf32> -> vector<18x8xf32>
      %47 = arith.addf %41, %46 : vector<18x8xf32>
      %48 = vector.extract_strided_slice %35 {offsets = [0, 2, 0], sizes = [1, 18, 64], strides = [1, 1, 1]} : vector<1x21x64xbf16> to vector<1x18x64xbf16>
      %49 = vector.shape_cast %48 : vector<1x18x64xbf16> to vector<18x64xbf16>
      %c6 = arith.constant 6 : index
      %c0_32 = arith.constant 0 : index
      %c0_33 = arith.constant 0 : index
      %50 = vector.load %arg2[%c6, %c0_32, %c0_33] : memref<16x64x8xbf16, #tpu.memory_space<vmem>>, vector<1x64x8xbf16>
      %51 = vector.shape_cast %50 : vector<1x64x8xbf16> to vector<64x8xbf16>
      %cst_34 = arith.constant dense<0.000000e+00> : vector<18x8xf32>
      %52 = tpu.matmul %49, %51, %cst_34 {dimension_numbers = #tpu.dot_dimension_numbers<[1], [0], [0], [1], [0, 0, 1, 1], [], []>} : vector<18x64xbf16>, vector<64x8xbf16>, vector<18x8xf32> -> vector<18x8xf32>
      %53 = arith.addf %47, %52 : vector<18x8xf32>
      %54 = vector.extract_strided_slice %35 {offsets = [0, 3, 0], sizes = [1, 18, 64], strides = [1, 1, 1]} : vector<1x21x64xbf16> to vector<1x18x64xbf16>
      %55 = vector.shape_cast %54 : vector<1x18x64xbf16> to vector<18x64xbf16>
      %c7 = arith.constant 7 : index
      %c0_35 = arith.constant 0 : index
      %c0_36 = arith.constant 0 : index
      %56 = vector.load %arg2[%c7, %c0_35, %c0_36] : memref<16x64x8xbf16, #tpu.memory_space<vmem>>, vector<1x64x8xbf16>
      %57 = vector.shape_cast %56 : vector<1x64x8xbf16> to vector<64x8xbf16>
      %cst_37 = arith.constant dense<0.000000e+00> : vector<18x8xf32>
      %58 = tpu.matmul %55, %57, %cst_37 {dimension_numbers = #tpu.dot_dimension_numbers<[1], [0], [0], [1], [0, 0, 1, 1], [], []>} : vector<18x64xbf16>, vector<64x8xbf16>, vector<18x8xf32> -> vector<18x8xf32>
      %59 = arith.addf %53, %58 : vector<18x8xf32>
      %c2_i32 = arith.constant 2 : i32
      %60 = arith.addi %2, %c2_i32 : i32
      %c0_38 = arith.constant 0 : index
      %61 = arith.index_cast %60 : i32 to index
      %c0_39 = arith.constant 0 : index
      %c0_40 = arith.constant 0 : index
      %c0_41 = arith.constant 0 : index
      %62 = vector.load %arg1[%c0_38, %61, %c0_39, %c0_40, %c0_41] : memref<1x21x1x21x64xbf16, #tpu.memory_space<vmem>>, vector<1x1x1x21x64xbf16>
      %63 = vector.shape_cast %62 : vector<1x1x1x21x64xbf16> to vector<1x21x64xbf16>
      %64 = vector.extract_strided_slice %63 {offsets = [0, 0, 0], sizes = [1, 18, 64], strides = [1, 1, 1]} : vector<1x21x64xbf16> to vector<1x18x64xbf16>
      %65 = vector.shape_cast %64 : vector<1x18x64xbf16> to vector<18x64xbf16>
      %c8 = arith.constant 8 : index
      %c0_42 = arith.constant 0 : index
      %c0_43 = arith.constant 0 : index
      %66 = vector.load %arg2[%c8, %c0_42, %c0_43] : memref<16x64x8xbf16, #tpu.memory_space<vmem>>, vector<1x64x8xbf16>
      %67 = vector.shape_cast %66 : vector<1x64x8xbf16> to vector<64x8xbf16>
      %cst_44 = arith.constant dense<0.000000e+00> : vector<18x8xf32>
      %68 = tpu.matmul %65, %67, %cst_44 {dimension_numbers = #tpu.dot_dimension_numbers<[1], [0], [0], [1], [0, 0, 1, 1], [], []>} : vector<18x64xbf16>, vector<64x8xbf16>, vector<18x8xf32> -> vector<18x8xf32>
      %69 = arith.addf %59, %68 : vector<18x8xf32>
      %70 = vector.extract_strided_slice %63 {offsets = [0, 1, 0], sizes = [1, 18, 64], strides = [1, 1, 1]} : vector<1x21x64xbf16> to vector<1x18x64xbf16>
      %71 = vector.shape_cast %70 : vector<1x18x64xbf16> to vector<18x64xbf16>
      %c9 = arith.constant 9 : index
      %c0_45 = arith.constant 0 : index
      %c0_46 = arith.constant 0 : index
      %72 = vector.load %arg2[%c9, %c0_45, %c0_46] : memref<16x64x8xbf16, #tpu.memory_space<vmem>>, vector<1x64x8xbf16>
      %73 = vector.shape_cast %72 : vector<1x64x8xbf16> to vector<64x8xbf16>
      %cst_47 = arith.constant dense<0.000000e+00> : vector<18x8xf32>
      %74 = tpu.matmul %71, %73, %cst_47 {dimension_numbers = #tpu.dot_dimension_numbers<[1], [0], [0], [1], [0, 0, 1, 1], [], []>} : vector<18x64xbf16>, vector<64x8xbf16>, vector<18x8xf32> -> vector<18x8xf32>
      %75 = arith.addf %69, %74 : vector<18x8xf32>
      %76 = vector.extract_strided_slice %63 {offsets = [0, 2, 0], sizes = [1, 18, 64], strides = [1, 1, 1]} : vector<1x21x64xbf16> to vector<1x18x64xbf16>
      %77 = vector.shape_cast %76 : vector<1x18x64xbf16> to vector<18x64xbf16>
      %c10 = arith.constant 10 : index
      %c0_48 = arith.constant 0 : index
      %c0_49 = arith.constant 0 : index
      %78 = vector.load %arg2[%c10, %c0_48, %c0_49] : memref<16x64x8xbf16, #tpu.memory_space<vmem>>, vector<1x64x8xbf16>
      %79 = vector.shape_cast %78 : vector<1x64x8xbf16> to vector<64x8xbf16>
      %cst_50 = arith.constant dense<0.000000e+00> : vector<18x8xf32>
      %80 = tpu.matmul %77, %79, %cst_50 {dimension_numbers = #tpu.dot_dimension_numbers<[1], [0], [0], [1], [0, 0, 1, 1], [], []>} : vector<18x64xbf16>, vector<64x8xbf16>, vector<18x8xf32> -> vector<18x8xf32>
      %81 = arith.addf %75, %80 : vector<18x8xf32>
      %82 = vector.extract_strided_slice %63 {offsets = [0, 3, 0], sizes = [1, 18, 64], strides = [1, 1, 1]} : vector<1x21x64xbf16> to vector<1x18x64xbf16>
      %83 = vector.shape_cast %82 : vector<1x18x64xbf16> to vector<18x64xbf16>
      %c11 = arith.constant 11 : index
      %c0_51 = arith.constant 0 : index
      %c0_52 = arith.constant 0 : index
      %84 = vector.load %arg2[%c11, %c0_51, %c0_52] : memref<16x64x8xbf16, #tpu.memory_space<vmem>>, vector<1x64x8xbf16>
      %85 = vector.shape_cast %84 : vector<1x64x8xbf16> to vector<64x8xbf16>
      %cst_53 = arith.constant dense<0.000000e+00> : vector<18x8xf32>
      %86 = tpu.matmul %83, %85, %cst_53 {dimension_numbers = #tpu.dot_dimension_numbers<[1], [0], [0], [1], [0, 0, 1, 1], [], []>} : vector<18x64xbf16>, vector<64x8xbf16>, vector<18x8xf32> -> vector<18x8xf32>
      %87 = arith.addf %81, %86 : vector<18x8xf32>
      %c3_i32 = arith.constant 3 : i32
      %88 = arith.addi %2, %c3_i32 : i32
      %c0_54 = arith.constant 0 : index
      %89 = arith.index_cast %88 : i32 to index
      %c0_55 = arith.constant 0 : index
      %c0_56 = arith.constant 0 : index
      %c0_57 = arith.constant 0 : index
      %90 = vector.load %arg1[%c0_54, %89, %c0_55, %c0_56, %c0_57] : memref<1x21x1x21x64xbf16, #tpu.memory_space<vmem>>, vector<1x1x1x21x64xbf16>
      %91 = vector.shape_cast %90 : vector<1x1x1x21x64xbf16> to vector<1x21x64xbf16>
      %92 = vector.extract_strided_slice %91 {offsets = [0, 0, 0], sizes = [1, 18, 64], strides = [1, 1, 1]} : vector<1x21x64xbf16> to vector<1x18x64xbf16>
      %93 = vector.shape_cast %92 : vector<1x18x64xbf16> to vector<18x64xbf16>
      %c12 = arith.constant 12 : index
      %c0_58 = arith.constant 0 : index
      %c0_59 = arith.constant 0 : index
      %94 = vector.load %arg2[%c12, %c0_58, %c0_59] : memref<16x64x8xbf16, #tpu.memory_space<vmem>>, vector<1x64x8xbf16>
      %95 = vector.shape_cast %94 : vector<1x64x8xbf16> to vector<64x8xbf16>
      %cst_60 = arith.constant dense<0.000000e+00> : vector<18x8xf32>
      %96 = tpu.matmul %93, %95, %cst_60 {dimension_numbers = #tpu.dot_dimension_numbers<[1], [0], [0], [1], [0, 0, 1, 1], [], []>} : vector<18x64xbf16>, vector<64x8xbf16>, vector<18x8xf32> -> vector<18x8xf32>
      %97 = arith.addf %87, %96 : vector<18x8xf32>
      %98 = vector.extract_strided_slice %91 {offsets = [0, 1, 0], sizes = [1, 18, 64], strides = [1, 1, 1]} : vector<1x21x64xbf16> to vector<1x18x64xbf16>
      %99 = vector.shape_cast %98 : vector<1x18x64xbf16> to vector<18x64xbf16>
      %c13 = arith.constant 13 : index
      %c0_61 = arith.constant 0 : index
      %c0_62 = arith.constant 0 : index
      %100 = vector.load %arg2[%c13, %c0_61, %c0_62] : memref<16x64x8xbf16, #tpu.memory_space<vmem>>, vector<1x64x8xbf16>
      %101 = vector.shape_cast %100 : vector<1x64x8xbf16> to vector<64x8xbf16>
      %cst_63 = arith.constant dense<0.000000e+00> : vector<18x8xf32>
      %102 = tpu.matmul %99, %101, %cst_63 {dimension_numbers = #tpu.dot_dimension_numbers<[1], [0], [0], [1], [0, 0, 1, 1], [], []>} : vector<18x64xbf16>, vector<64x8xbf16>, vector<18x8xf32> -> vector<18x8xf32>
      %103 = arith.addf %97, %102 : vector<18x8xf32>
      %104 = vector.extract_strided_slice %91 {offsets = [0, 2, 0], sizes = [1, 18, 64], strides = [1, 1, 1]} : vector<1x21x64xbf16> to vector<1x18x64xbf16>
      %105 = vector.shape_cast %104 : vector<1x18x64xbf16> to vector<18x64xbf16>
      %c14 = arith.constant 14 : index
      %c0_64 = arith.constant 0 : index
      %c0_65 = arith.constant 0 : index
      %106 = vector.load %arg2[%c14, %c0_64, %c0_65] : memref<16x64x8xbf16, #tpu.memory_space<vmem>>, vector<1x64x8xbf16>
      %107 = vector.shape_cast %106 : vector<1x64x8xbf16> to vector<64x8xbf16>
      %cst_66 = arith.constant dense<0.000000e+00> : vector<18x8xf32>
      %108 = tpu.matmul %105, %107, %cst_66 {dimension_numbers = #tpu.dot_dimension_numbers<[1], [0], [0], [1], [0, 0, 1, 1], [], []>} : vector<18x64xbf16>, vector<64x8xbf16>, vector<18x8xf32> -> vector<18x8xf32>
      %109 = arith.addf %103, %108 : vector<18x8xf32>
      %110 = vector.extract_strided_slice %91 {offsets = [0, 3, 0], sizes = [1, 18, 64], strides = [1, 1, 1]} : vector<1x21x64xbf16> to vector<1x18x64xbf16>
      %111 = vector.shape_cast %110 : vector<1x18x64xbf16> to vector<18x64xbf16>
      %c15 = arith.constant 15 : index
      %c0_67 = arith.constant 0 : index
      %c0_68 = arith.constant 0 : index
      %112 = vector.load %arg2[%c15, %c0_67, %c0_68] : memref<16x64x8xbf16, #tpu.memory_space<vmem>>, vector<1x64x8xbf16>
      %113 = vector.shape_cast %112 : vector<1x64x8xbf16> to vector<64x8xbf16>
      %cst_69 = arith.constant dense<0.000000e+00> : vector<18x8xf32>
      %114 = tpu.matmul %111, %113, %cst_69 {dimension_numbers = #tpu.dot_dimension_numbers<[1], [0], [0], [1], [0, 0, 1, 1], [], []>} : vector<18x64xbf16>, vector<64x8xbf16>, vector<18x8xf32> -> vector<18x8xf32>
      %115 = arith.addf %109, %114 : vector<18x8xf32>
      %116 = vector.broadcast %0 : vector<1x8xf32> to vector<18x8xf32>
      %117 = arith.addf %115, %116 : vector<18x8xf32>
      %cst_70 = arith.constant 0.000000e+00 : f32
      %118 = vector.broadcast %cst_70 : f32 to vector<18x8xf32>
      %119 = arith.cmpf oge, %117, %118 : vector<18x8xf32>
      %cst_71 = arith.constant 0.00999999977 : f32
      %120 = vector.broadcast %cst_71 : f32 to vector<18x8xf32>
      %121 = arith.mulf %120, %117 : vector<18x8xf32>
      %122 = arith.select %119, %117, %121 : vector<18x8xi1>, vector<18x8xf32>
      %cst_72 = arith.constant 0.000000e+00 : f32
      %123 = vector.broadcast %cst_72 : f32 to vector<18x8xf32>
      %124 = arith.subf %123, %122 : vector<18x8xf32>
      %125 = math.exp %124 : vector<18x8xf32>
      %cst_73 = arith.constant 1.000000e+00 : f32
      %126 = vector.broadcast %cst_73 : f32 to vector<18x8xf32>
      %127 = arith.addf %126, %125 : vector<18x8xf32>
      %cst_74 = arith.constant 1.000000e+00 : f32
      %128 = vector.broadcast %cst_74 : f32 to vector<18x8xf32>
      %129 = arith.divf %128, %127 : vector<18x8xf32>
      %c0_75 = arith.constant 0 : index
      %130 = arith.index_cast %arg5 : i32 to index
      %c0_76 = arith.constant 0 : index
      %c0_77 = arith.constant 0 : index
      %131 = vector.load %arg4[%c0_75, %130, %c0_76, %c0_77] : memref<1x18x18x8xf32, #tpu.memory_space<vmem>>, vector<1x1x18x8xf32>
      %132 = vector.shape_cast %131 : vector<1x1x18x8xf32> to vector<18x8xf32>
      %133 = vector.shape_cast %129 : vector<18x8xf32> to vector<1x1x18x8xf32>
      tpu.vector_store %arg4[%c0_75, %130, %c0_76, %c0_77], %133 {strides = array<i32>} : memref<1x18x18x8xf32, #tpu.memory_space<vmem>>, vector<1x1x18x8xf32>,
    }
    %c18_i32_1 = arith.constant 18 : i32
    return
  }
  func.func @transform_0(%arg0: i32) -> (i32, i32, i32, i32, i32) {
    %c0_i32 = arith.constant 0 : i32
    %c0_i32_0 = arith.constant 0 : i32
    %c0_i32_1 = arith.constant 0 : i32
    %c0_i32_2 = arith.constant 0 : i32
    %c0_i32_3 = arith.constant 0 : i32
    return %arg0, %c0_i32, %c0_i32_0, %c0_i32_1, %c0_i32_2 : i32, i32, i32, i32, i32
  }
  func.func @transform_1(%arg0: i32) -> (i32, i32, i32) {
    %c0_i32 = arith.constant 0 : i32
    %c0_i32_0 = arith.constant 0 : i32
    %c0_i32_1 = arith.constant 0 : i32
    %c0_i32_2 = arith.constant 0 : i32
    return %c0_i32, %c0_i32_0, %c0_i32_1 : i32, i32, i32
  }
  func.func @transform_2(%arg0: i32) -> (i32, i32) {
    %c0_i32 = arith.constant 0 : i32
    %c0_i32_0 = arith.constant 0 : i32
    %c0_i32_1 = arith.constant 0 : i32
    return %c0_i32, %c0_i32_0 : i32, i32
  }
  func.func @transform_3(%arg0: i32) -> (i32, i32, i32, i32) {
    %c0_i32 = arith.constant 0 : i32
    %c0_i32_0 = arith.constant 0 : i32
    %c0_i32_1 = arith.constant 0 : i32
    %c0_i32_2 = arith.constant 0 : i32
    return %arg0, %c0_i32, %c0_i32_0, %c0_i32_1 : i32, i32, i32, i32
  }
}

module attributes {stable_mosaic.version = 11 : i64} {
  func.func @_direct_conv_kernel(%arg0: i32, %arg1: memref<1x18x1x18x128xbf16, #tpu.memory_space<vmem>>, %arg2: memref<9x128x8xbf16, #tpu.memory_space<vmem>>, %arg3: memref<1x8xf32, #tpu.memory_space<vmem>>, %arg4: memref<1x16x16x8xf32, #tpu.memory_space<vmem>>) attributes {dimension_semantics = [#tpu.dimension_semantics<parallel>], iteration_bounds = array<i64: 2>, scalar_prefetch = 0 : i64, scratch_operands = 0 : i64, tpu.core_type = #tpu.core_type<tc>, window_params = [{transform_indices = @transform_0, window_bounds = array<i64: 1, 18, 1, 18, 128>}, {pipeline_mode = #tpu.pipeline_mode<synchronous>, transform_indices = @transform_1, window_bounds = array<i64: 9, 128, 8>}, {pipeline_mode = #tpu.pipeline_mode<synchronous>, transform_indices = @transform_2, window_bounds = array<i64: 1, 8>}, {transform_indices = @transform_3, window_bounds = array<i64: 1, 16, 16, 8>}]} {
    %c0 = arith.constant 0 : index
    %c0_0 = arith.constant 0 : index
    %0 = vector.load %arg3[%c0, %c0_0] : memref<1x8xf32, #tpu.memory_space<vmem>>, vector<1x8xf32>
    %c0_i32 = arith.constant 0 : i32
    %c16_i32 = arith.constant 16 : i32
    %1 = arith.addi %c0_i32, %c16_i32 : i32
    %c1_i32 = arith.constant 1 : i32
    scf.for %arg5 = %c0_i32 to %1 step %c1_i32  : i32 {
      %c1_i32_2 = arith.constant 1 : i32
      %2 = arith.muli %arg5, %c1_i32_2 : i32
      %cst = arith.constant 0.000000e+00 : f32
      %3 = vector.broadcast %cst : f32 to vector<16x8xf32>
      %c0_i32_3 = arith.constant 0 : i32
      %4 = arith.addi %2, %c0_i32_3 : i32
      %c0_4 = arith.constant 0 : index
      %5 = arith.index_cast %4 : i32 to index
      %c0_5 = arith.constant 0 : index
      %c0_6 = arith.constant 0 : index
      %c0_7 = arith.constant 0 : index
      %6 = vector.load %arg1[%c0_4, %5, %c0_5, %c0_6, %c0_7] : memref<1x18x1x18x128xbf16, #tpu.memory_space<vmem>>, vector<1x1x1x18x128xbf16>
      %7 = vector.shape_cast %6 : vector<1x1x1x18x128xbf16> to vector<1x18x128xbf16>
      %8 = vector.extract_strided_slice %7 {offsets = [0, 0, 0], sizes = [1, 16, 128], strides = [1, 1, 1]} : vector<1x18x128xbf16> to vector<1x16x128xbf16>
      %9 = vector.shape_cast %8 : vector<1x16x128xbf16> to vector<16x128xbf16>
      %c0_8 = arith.constant 0 : index
      %c0_9 = arith.constant 0 : index
      %c0_10 = arith.constant 0 : index
      %10 = vector.load %arg2[%c0_8, %c0_9, %c0_10] : memref<9x128x8xbf16, #tpu.memory_space<vmem>>, vector<1x128x8xbf16>
      %11 = vector.shape_cast %10 : vector<1x128x8xbf16> to vector<128x8xbf16>
      %cst_11 = arith.constant dense<0.000000e+00> : vector<16x8xf32>
      %12 = tpu.matmul %9, %11, %cst_11 {dimension_numbers = #tpu.dot_dimension_numbers<[1], [0], [0], [1], [0, 0, 1, 1], [], []>} : vector<16x128xbf16>, vector<128x8xbf16>, vector<16x8xf32> -> vector<16x8xf32>
      %13 = arith.addf %3, %12 : vector<16x8xf32>
      %14 = vector.extract_strided_slice %7 {offsets = [0, 1, 0], sizes = [1, 16, 128], strides = [1, 1, 1]} : vector<1x18x128xbf16> to vector<1x16x128xbf16>
      %15 = vector.shape_cast %14 : vector<1x16x128xbf16> to vector<16x128xbf16>
      %c1 = arith.constant 1 : index
      %c0_12 = arith.constant 0 : index
      %c0_13 = arith.constant 0 : index
      %16 = vector.load %arg2[%c1, %c0_12, %c0_13] : memref<9x128x8xbf16, #tpu.memory_space<vmem>>, vector<1x128x8xbf16>
      %17 = vector.shape_cast %16 : vector<1x128x8xbf16> to vector<128x8xbf16>
      %cst_14 = arith.constant dense<0.000000e+00> : vector<16x8xf32>
      %18 = tpu.matmul %15, %17, %cst_14 {dimension_numbers = #tpu.dot_dimension_numbers<[1], [0], [0], [1], [0, 0, 1, 1], [], []>} : vector<16x128xbf16>, vector<128x8xbf16>, vector<16x8xf32> -> vector<16x8xf32>
      %19 = arith.addf %13, %18 : vector<16x8xf32>
      %20 = vector.extract_strided_slice %7 {offsets = [0, 2, 0], sizes = [1, 16, 128], strides = [1, 1, 1]} : vector<1x18x128xbf16> to vector<1x16x128xbf16>
      %21 = vector.shape_cast %20 : vector<1x16x128xbf16> to vector<16x128xbf16>
      %c2 = arith.constant 2 : index
      %c0_15 = arith.constant 0 : index
      %c0_16 = arith.constant 0 : index
      %22 = vector.load %arg2[%c2, %c0_15, %c0_16] : memref<9x128x8xbf16, #tpu.memory_space<vmem>>, vector<1x128x8xbf16>
      %23 = vector.shape_cast %22 : vector<1x128x8xbf16> to vector<128x8xbf16>
      %cst_17 = arith.constant dense<0.000000e+00> : vector<16x8xf32>
      %24 = tpu.matmul %21, %23, %cst_17 {dimension_numbers = #tpu.dot_dimension_numbers<[1], [0], [0], [1], [0, 0, 1, 1], [], []>} : vector<16x128xbf16>, vector<128x8xbf16>, vector<16x8xf32> -> vector<16x8xf32>
      %25 = arith.addf %19, %24 : vector<16x8xf32>
      %c1_i32_18 = arith.constant 1 : i32
      %26 = arith.addi %2, %c1_i32_18 : i32
      %c0_19 = arith.constant 0 : index
      %27 = arith.index_cast %26 : i32 to index
      %c0_20 = arith.constant 0 : index
      %c0_21 = arith.constant 0 : index
      %c0_22 = arith.constant 0 : index
      %28 = vector.load %arg1[%c0_19, %27, %c0_20, %c0_21, %c0_22] : memref<1x18x1x18x128xbf16, #tpu.memory_space<vmem>>, vector<1x1x1x18x128xbf16>
      %29 = vector.shape_cast %28 : vector<1x1x1x18x128xbf16> to vector<1x18x128xbf16>
      %30 = vector.extract_strided_slice %29 {offsets = [0, 0, 0], sizes = [1, 16, 128], strides = [1, 1, 1]} : vector<1x18x128xbf16> to vector<1x16x128xbf16>
      %31 = vector.shape_cast %30 : vector<1x16x128xbf16> to vector<16x128xbf16>
      %c3 = arith.constant 3 : index
      %c0_23 = arith.constant 0 : index
      %c0_24 = arith.constant 0 : index
      %32 = vector.load %arg2[%c3, %c0_23, %c0_24] : memref<9x128x8xbf16, #tpu.memory_space<vmem>>, vector<1x128x8xbf16>
      %33 = vector.shape_cast %32 : vector<1x128x8xbf16> to vector<128x8xbf16>
      %cst_25 = arith.constant dense<0.000000e+00> : vector<16x8xf32>
      %34 = tpu.matmul %31, %33, %cst_25 {dimension_numbers = #tpu.dot_dimension_numbers<[1], [0], [0], [1], [0, 0, 1, 1], [], []>} : vector<16x128xbf16>, vector<128x8xbf16>, vector<16x8xf32> -> vector<16x8xf32>
      %35 = arith.addf %25, %34 : vector<16x8xf32>
      %36 = vector.extract_strided_slice %29 {offsets = [0, 1, 0], sizes = [1, 16, 128], strides = [1, 1, 1]} : vector<1x18x128xbf16> to vector<1x16x128xbf16>
      %37 = vector.shape_cast %36 : vector<1x16x128xbf16> to vector<16x128xbf16>
      %c4 = arith.constant 4 : index
      %c0_26 = arith.constant 0 : index
      %c0_27 = arith.constant 0 : index
      %38 = vector.load %arg2[%c4, %c0_26, %c0_27] : memref<9x128x8xbf16, #tpu.memory_space<vmem>>, vector<1x128x8xbf16>
      %39 = vector.shape_cast %38 : vector<1x128x8xbf16> to vector<128x8xbf16>
      %cst_28 = arith.constant dense<0.000000e+00> : vector<16x8xf32>
      %40 = tpu.matmul %37, %39, %cst_28 {dimension_numbers = #tpu.dot_dimension_numbers<[1], [0], [0], [1], [0, 0, 1, 1], [], []>} : vector<16x128xbf16>, vector<128x8xbf16>, vector<16x8xf32> -> vector<16x8xf32>
      %41 = arith.addf %35, %40 : vector<16x8xf32>
      %42 = vector.extract_strided_slice %29 {offsets = [0, 2, 0], sizes = [1, 16, 128], strides = [1, 1, 1]} : vector<1x18x128xbf16> to vector<1x16x128xbf16>
      %43 = vector.shape_cast %42 : vector<1x16x128xbf16> to vector<16x128xbf16>
      %c5 = arith.constant 5 : index
      %c0_29 = arith.constant 0 : index
      %c0_30 = arith.constant 0 : index
      %44 = vector.load %arg2[%c5, %c0_29, %c0_30] : memref<9x128x8xbf16, #tpu.memory_space<vmem>>, vector<1x128x8xbf16>
      %45 = vector.shape_cast %44 : vector<1x128x8xbf16> to vector<128x8xbf16>
      %cst_31 = arith.constant dense<0.000000e+00> : vector<16x8xf32>
      %46 = tpu.matmul %43, %45, %cst_31 {dimension_numbers = #tpu.dot_dimension_numbers<[1], [0], [0], [1], [0, 0, 1, 1], [], []>} : vector<16x128xbf16>, vector<128x8xbf16>, vector<16x8xf32> -> vector<16x8xf32>
      %47 = arith.addf %41, %46 : vector<16x8xf32>
      %c2_i32 = arith.constant 2 : i32
      %48 = arith.addi %2, %c2_i32 : i32
      %c0_32 = arith.constant 0 : index
      %49 = arith.index_cast %48 : i32 to index
      %c0_33 = arith.constant 0 : index
      %c0_34 = arith.constant 0 : index
      %c0_35 = arith.constant 0 : index
      %50 = vector.load %arg1[%c0_32, %49, %c0_33, %c0_34, %c0_35] : memref<1x18x1x18x128xbf16, #tpu.memory_space<vmem>>, vector<1x1x1x18x128xbf16>
      %51 = vector.shape_cast %50 : vector<1x1x1x18x128xbf16> to vector<1x18x128xbf16>
      %52 = vector.extract_strided_slice %51 {offsets = [0, 0, 0], sizes = [1, 16, 128], strides = [1, 1, 1]} : vector<1x18x128xbf16> to vector<1x16x128xbf16>
      %53 = vector.shape_cast %52 : vector<1x16x128xbf16> to vector<16x128xbf16>
      %c6 = arith.constant 6 : index
      %c0_36 = arith.constant 0 : index
      %c0_37 = arith.constant 0 : index
      %54 = vector.load %arg2[%c6, %c0_36, %c0_37] : memref<9x128x8xbf16, #tpu.memory_space<vmem>>, vector<1x128x8xbf16>
      %55 = vector.shape_cast %54 : vector<1x128x8xbf16> to vector<128x8xbf16>
      %cst_38 = arith.constant dense<0.000000e+00> : vector<16x8xf32>
      %56 = tpu.matmul %53, %55, %cst_38 {dimension_numbers = #tpu.dot_dimension_numbers<[1], [0], [0], [1], [0, 0, 1, 1], [], []>} : vector<16x128xbf16>, vector<128x8xbf16>, vector<16x8xf32> -> vector<16x8xf32>
      %57 = arith.addf %47, %56 : vector<16x8xf32>
      %58 = vector.extract_strided_slice %51 {offsets = [0, 1, 0], sizes = [1, 16, 128], strides = [1, 1, 1]} : vector<1x18x128xbf16> to vector<1x16x128xbf16>
      %59 = vector.shape_cast %58 : vector<1x16x128xbf16> to vector<16x128xbf16>
      %c7 = arith.constant 7 : index
      %c0_39 = arith.constant 0 : index
      %c0_40 = arith.constant 0 : index
      %60 = vector.load %arg2[%c7, %c0_39, %c0_40] : memref<9x128x8xbf16, #tpu.memory_space<vmem>>, vector<1x128x8xbf16>
      %61 = vector.shape_cast %60 : vector<1x128x8xbf16> to vector<128x8xbf16>
      %cst_41 = arith.constant dense<0.000000e+00> : vector<16x8xf32>
      %62 = tpu.matmul %59, %61, %cst_41 {dimension_numbers = #tpu.dot_dimension_numbers<[1], [0], [0], [1], [0, 0, 1, 1], [], []>} : vector<16x128xbf16>, vector<128x8xbf16>, vector<16x8xf32> -> vector<16x8xf32>
      %63 = arith.addf %57, %62 : vector<16x8xf32>
      %64 = vector.extract_strided_slice %51 {offsets = [0, 2, 0], sizes = [1, 16, 128], strides = [1, 1, 1]} : vector<1x18x128xbf16> to vector<1x16x128xbf16>
      %65 = vector.shape_cast %64 : vector<1x16x128xbf16> to vector<16x128xbf16>
      %c8 = arith.constant 8 : index
      %c0_42 = arith.constant 0 : index
      %c0_43 = arith.constant 0 : index
      %66 = vector.load %arg2[%c8, %c0_42, %c0_43] : memref<9x128x8xbf16, #tpu.memory_space<vmem>>, vector<1x128x8xbf16>
      %67 = vector.shape_cast %66 : vector<1x128x8xbf16> to vector<128x8xbf16>
      %cst_44 = arith.constant dense<0.000000e+00> : vector<16x8xf32>
      %68 = tpu.matmul %65, %67, %cst_44 {dimension_numbers = #tpu.dot_dimension_numbers<[1], [0], [0], [1], [0, 0, 1, 1], [], []>} : vector<16x128xbf16>, vector<128x8xbf16>, vector<16x8xf32> -> vector<16x8xf32>
      %69 = arith.addf %63, %68 : vector<16x8xf32>
      %70 = vector.broadcast %0 : vector<1x8xf32> to vector<16x8xf32>
      %71 = arith.addf %69, %70 : vector<16x8xf32>
      %c0_45 = arith.constant 0 : index
      %72 = arith.index_cast %arg5 : i32 to index
      %c0_46 = arith.constant 0 : index
      %c0_47 = arith.constant 0 : index
      %73 = vector.load %arg4[%c0_45, %72, %c0_46, %c0_47] : memref<1x16x16x8xf32, #tpu.memory_space<vmem>>, vector<1x1x16x8xf32>
      %74 = vector.shape_cast %73 : vector<1x1x16x8xf32> to vector<16x8xf32>
      %75 = vector.shape_cast %71 : vector<16x8xf32> to vector<1x1x16x8xf32>
      tpu.vector_store %arg4[%c0_45, %72, %c0_46, %c0_47], %75 {strides = array<i32>} : memref<1x16x16x8xf32, #tpu.memory_space<vmem>>, vector<1x1x16x8xf32>,
    }
    %c16_i32_1 = arith.constant 16 : i32
    return
  }
  func.func @transform_0(%arg0: i32) -> (i32, i32, i32, i32, i32) {
    %c0_i32 = arith.constant 0 : i32
    %c0_i32_0 = arith.constant 0 : i32
    %c0_i32_1 = arith.constant 0 : i32
    %c0_i32_2 = arith.constant 0 : i32
    %c0_i32_3 = arith.constant 0 : i32
    return %arg0, %c0_i32, %c0_i32_0, %c0_i32_1, %c0_i32_2 : i32, i32, i32, i32, i32
  }
  func.func @transform_1(%arg0: i32) -> (i32, i32, i32) {
    %c0_i32 = arith.constant 0 : i32
    %c0_i32_0 = arith.constant 0 : i32
    %c0_i32_1 = arith.constant 0 : i32
    %c0_i32_2 = arith.constant 0 : i32
    return %c0_i32, %c0_i32_0, %c0_i32_1 : i32, i32, i32
  }
  func.func @transform_2(%arg0: i32) -> (i32, i32) {
    %c0_i32 = arith.constant 0 : i32
    %c0_i32_0 = arith.constant 0 : i32
    %c0_i32_1 = arith.constant 0 : i32
    return %c0_i32, %c0_i32_0 : i32, i32
  }
  func.func @transform_3(%arg0: i32) -> (i32, i32, i32, i32) {
    %c0_i32 = arith.constant 0 : i32
    %c0_i32_0 = arith.constant 0 : i32
    %c0_i32_1 = arith.constant 0 : i32
    %c0_i32_2 = arith.constant 0 : i32
    return %arg0, %c0_i32, %c0_i32_0, %c0_i32_1 : i32, i32, i32, i32
  }
}

</mosaic_0001>

<bundles_post_ra>
// kernel: center_speed_forward.5
= control target key start
LH: loop header
LB: loop body
LE: loop exit
PB: predicated region body
PF: predicated region fallthrough
CT: control target
= control target key end

     0   :  { %s1309_s12 = smov 0   ;;  %s1442_s0 = inlined_call_operand.vmem [shape: bf16[2,66,2,33,6], index: 0, kind: input, shape index: {}]   ;;  %s1443_s1 = inlined_call_operand.vmem [shape: bf16[9,6,64], index: 1, kind: input, shape index: {}]   ;;  %s1444_s2 = inlined_call_operand.vmem [shape: f32[1,64], index: 2, kind: input, shape index: {}]   ;;  %s1445_s3 = inlined_call_operand.vmem [shape: bf16[2,32,32,64], index: 3, kind: output, shape index: {}]  }
   0x1 LB: > { %s1029_s13 = sadd.s32 4294967295, %s1283_s12   ;;  %p1033_p0 = scmp.ge.s32.totalorder %s1283_s12, 1  ;;  %s1283_s12 = sphi %s1309_s12, %s13_s12  }
   0x2   : > { %p137_p1 = scmp.lt.s32.totalorder %s1283_s12, 3 }
   0x4   : > { %p138_p2 = pnand %p1033_p0, %p137_p1 }
   0x5   : > { %p161_p3 = scmp.lt.s32.totalorder (!%p138_p2), %s1029_s13, 1  ;;  %v1320_v0 = vld [vmem:[%s1444_s2] ss:$0 sm:$0xff] (!%p138_p2)  ;;  %s1332_s24 = smov (!%p138_p2), 0  }
   0x6   : > { %141 = sbr.rel (%p138_p2) target bundleno = 295 (0x127), region = 32 }
   0xd   : > { %s1447_s13 = smov (!%p161_p3, %s1029_s13), 1 }
   0xe   : > { %s1241_s16 = smul.u32 2640, %s1447_s13  ;;  %s1112_s17 = sshll.u32 %s1447_s13, 9 }
   0xf   : > { %s1325_s20 = scalar_lea.vmem %s1445_s3, %s1112_s17 }
  0x10   : > { %s1330_s23 = scalar_lea.vmem %s1442_s0, %s1241_s16 }
  0x11 LB: >> { %vm212_vm0 = vcmask 1042432   ;;  %v1069_v1 = vld [vmem:[%s1443_s1 + $0x10] sm:$0x7]  ;;  %v1040_v2 = vld [vmem:[%s1443_s1 + $0x4] sm:$0x7]  ;;  %s1113_s6 = smul.u32 80, %s1287_s24  ;;  %s1287_s24 = sphi %s1332_s24, %s178_s24  }
  0x12   : >> { %1236 = vmatprep.subr.msk.bf16.mxu0 %vm212_vm0, %v1069_v1  ;;  %1232 = vmatprep.subr.msk.bf16.mxu1 %vm212_vm0, %v1040_v2  ;;  %v525_v3 = vsel %vm212_vm0, %v1069_v1, 0  ;;  %v214_v4 = vsel %vm212_vm0, %v1040_v2, 0  ;;  %v1074_v5 = vld [vmem:[%s1443_s1 + $0x14] sm:$0x7]  ;;  %v192_v6 = vld [vmem:[%s1443_s1] sm:$0x7] }
  0x13   : >> { %1171 = vmatpush3.bf16.msra.mxu0 %v525_v3  ;;  %1147 = vmatpush3.bf16.msra.mxu1 %v214_v4  ;;  %s1357_s7 = scalar_lea.vmem %s1330_s23, %s1113_s6  ;;  %vm205_vm1 = vcmask 48128   ;;  %v282_v10 = vsel %vm212_vm0, %v192_v6, 0  ;;  %v1089_v11 = vld [vmem:[%s1443_s1 + $0x18] sm:$0x7]  ;;  %v1049_v12 = vld [vmem:[%s1443_s1 + $0x8] sm:$0x7] }
  0x14   : >> { %1237 = vmatprep.subr.msk.bf16.mxu0 %vm212_vm0, %v1074_v5  ;;  %1233 = vmatprep.subr.msk.bf16.mxu1 %vm212_vm0, %v192_v6  ;;  %v1258_v7 = vld [vmem:[%s1357_s7 + $0x14] sm:$0xff]   ;;  %v1259_v8 = vld [vmem:[%s1357_s7 + $0x3c] sm:$0xff]   ;;  %v1261_v13 = vld [vmem:[%s1357_s7 + $0x44] sm:$0xff]   ;;  %v610_v14 = vsel %vm212_vm0, %v1074_v5, 0  ;;  %vm338_vm2 = vsmask.f32 7424 }
  0x15   : >> { %1148 = vmatprep.mubr.msk.bf16.mxu1 %vm205_vm1, %v1258_v7  ;;  %v1260_v9 = vld [vmem:[%s1357_s7 + $0x1c] sm:$0xff]   ;;  %1172 = vmatprep.mubr.msk.bf16.mxu0 %vm205_vm1, %v1259_v8  ;;  %v1263_v16 = vld [vmem:[%s1357_s7 + $0x28] sm:$0xff]   ;;  %v1379_v17 = vld [vmem:[%s1357_s7 + $0x30] sm:$0xff]   ;;  %v364_v38 = vsel %vm212_vm0, %v1049_v12, 0  ;;  %v697_v40 = vsel %vm212_vm0, %v1089_v11, 0  ;;  %s1118_s19 = sshll.u32 %s1287_s24, 4 }
  0x16   : >> { %1149 = vmatmul.mubr.msk.bf16.vlgmr.msra.gmra.mrb[0].mxu1 %vm205_vm1, %v1260_v9  ;;  %v1262_v15 = vld [vmem:[%s1357_s7] sm:$0xff]   ;;  %1173 = vmatmul.mubr.msk.bf16.vlgmr.msra.gmra.mrb[0].mxu0 %vm205_vm1, %v1261_v13  ;;  %v1265_v19 = vld [vmem:[%s1357_s7 + $0x8] sm:$0xff]   ;;  %v585_v21 = vshrl.u32 %v1263_v16, 16  ;;  %v587_v22 = vshll.u32 %v1263_v16, 16  ;;  %v591_v23 = vshll.u32 %v1379_v17, 16  ;;  %v595_v24 = vshrl.u32 %v1379_v17, 16  ;;  %s951_s21 = scalar_lea.vmem %s1325_s20, %s1118_s19 }
  0x17   : >> { %1153 = vmatpush3.bf16.msra.mxu1 %v282_v10  ;;  %1177 = vmatpush3.bf16.msra.mxu0 %v610_v14  ;;  %v341_v18 = vshll.u32 %v1262_v15, 16  ;;  %v339_v20 = vshrl.u32 %v1262_v15, 16  ;;  %v1266_v25 = vld [vmem:[%s1357_s7 + $0x38] ss:$0 sps:$4 sm:$0x11]   ;;  %v345_v27 = vshll.u32 %v1265_v19, 16 }
  0x18   : >> { %1154 = vmatprep.mubr.msk.bf16.mxu1 %vm205_vm1, %v1262_v15  ;;  %1238 = vmatprep.subr.msk.bf16.mxu0 %vm212_vm0, %v1089_v11  ;;  %v589_v28 = vrot.slane %v587_v22, 1  ;;  %v593_v29 = vrot.slane %v591_v23, 1  ;;  %v599_v30 = vshll.u32 %v1266_v25, 16  ;;  %v1268_v35 = vld [vmem:[%s1357_s7 + $0x10] ss:$0 sps:$4 sm:$0x11]  }
  0x19   : >> { %1234 = vmatprep.subr.msk.bf16.mxu1 %vm212_vm0, %v1049_v12  ;;  %v343_v26 = vrot.slane %v341_v18, 1  ;;  %v347_v32 = vrot.slane %v345_v27, 1  ;;  %v1267_v42 = vld [vmem:[%s1357_s7 + $0x50] sm:$0xff]   ;;  %v1094_v43 = vld [vmem:[%s1443_s1 + $0x1c] sm:$0x7]  ;;  %v349_v44 = vshrl.u32 %v1265_v19, 16 }
  0x1a   : >> { %v590_v33 = vor.u32 %v589_v28, %v585_v21  ;;  %v597_v34 = vor.u32 %v595_v24, %v593_v29  ;;  %v601_v36 = vrot.slane %v599_v30, 1  ;;  %v353_v45 = vshll.u32 %v1268_v35, 16  ;;  %v1064_v46 = vld [vmem:[%s1443_s1 + $0xc] sm:$0x7]  ;;  %v1269_v50 = vld [vmem:[%s1357_s7 + $0x58] sm:$0xff]   ;;  %v1270_v53 = vld [vmem:[%s1357_s7 + $0x64] sm:$0xff]  }
  0x1b   : >> { %v344_v31 = vor.u32 %v343_v26, %v339_v20  ;;  %v351_v47 = vor.u32 %v349_v44, %v347_v32  ;;  %v451_v51 = vsel %vm212_vm0, %v1064_v46, 0  ;;  %v771_v52 = vsel %vm212_vm0, %v1094_v43, 0  ;;  %v1099_v55 = vld [vmem:[%s1443_s1 + $0x20] sm:$0x7]  ;;  %v1271_v61 = vld [vmem:[%s1357_s7 + $0x6c] sm:$0xff]   ;;  %s178_s24 = sadd.s32 1, %s1287_s24  }
  0x1c   : >> { %v594_v37 = vsel %vm338_vm2, %v590_v33, %v593_v29  ;;  %v602_v39 = vsel %vm338_vm2, %v597_v34, %v601_v36  ;;  %v355_v48 = vrot.slane %v353_v45, 1  ;;  %v833_v54 = vshll.u32 %v1267_v42, 16  ;;  %v1272_v62 = vld [vmem:[%s1357_s7 + $0x60] ss:$0 sps:$4 sm:$0x11]   ;;  %p175_p4 = scmp.ge.s32.totalorder %s178_s24, 32  }
  0x1d   : >> { %1178 = vmatprep.mubr.msk.bf16.mxu0 %vm205_vm1, %v594_v37  ;;  %v348_v41 = vsel %vm338_vm2, %v344_v31, %v347_v32  ;;  %v831_v56 = vshrl.u32 %v1267_v42, 16  ;;  %v837_v58 = vshll.u32 %v1269_v50, 16  ;;  %v856_v63 = vsel %vm212_vm0, %v1099_v55, 0 }
  0x1e   : >> { %v356_v49 = vsel %vm338_vm2, %v351_v47, %v355_v48  ;;  %v835_v57 = vrot.slane %v833_v54, 1  ;;  %v841_v2 = vshrl.u32 %v1269_v50, 16  ;;  %v845_v3 = vshll.u32 %v1272_v62, 16 }
  0x1f   : >> { %v839_v60 = vrot.slane %v837_v58, 1  ;;  %vm952_vm5 = vcmask 519168  }
  0x20   : >> { %v836_v59 = vor.u32 %v835_v57, %v831_v56  ;;  %v847_v5 = vrot.slane %v845_v3, 1 }
  0x21   : >> { %v843_v4 = vor.u32 %v841_v2, %v839_v60 }
  0x22   : >> { %1155 = vmatmul.mubr.msk.bf16.vlgmr.msra.gmra.mrb[0].mxu1 %vm205_vm1, %v1265_v19  ;;  %1179 = vmatmul.mubr.msk.bf16.vlgmr.msra.gmra.mrb[0].mxu0 %vm205_vm1, %v602_v39  ;;  %v840_v1 = vsel %vm338_vm2, %v836_v59, %v839_v60 }
  0x23   : >> { %1159 = vmatpush3.bf16.msra.mxu1 %v364_v38  ;;  %1183 = vmatpush3.bf16.msra.mxu0 %v697_v40  ;;  %v848_v6 = vsel %vm338_vm2, %v843_v4, %v847_v5 }
  0x24   : >> { %1160 = vmatprep.mubr.msk.bf16.mxu1 %vm205_vm1, %v348_v41  ;;  %1184 = vmatprep.mubr.msk.bf16.mxu0 %vm205_vm1, %v1267_v42 }
  0x25   : >> { %1239 = vmatprep.subr.msk.bf16.mxu0 %vm212_vm0, %v1094_v43  ;;  %1235 = vmatprep.subr.msk.bf16.mxu1 %vm212_vm0, %v1064_v46 }
  0x2e   : >> { %1161 = vmatmul.mubr.msk.bf16.vlgmr.msra.gmra.mrb[0].mxu1 %vm205_vm1, %v356_v49  ;;  %1185 = vmatmul.mubr.msk.bf16.vlgmr.msra.gmra.mrb[0].mxu0 %vm205_vm1, %v1269_v50 }
  0x2f   : >> { %1165 = vmatpush3.bf16.msra.mxu1 %v451_v51  ;;  %1189 = vmatpush3.bf16.msra.mxu0 %v771_v52 }
  0x30   : >> { %1166 = vmatprep.mubr.msk.bf16.mxu1 %vm205_vm1, %v1263_v16  ;;  %1190 = vmatprep.mubr.msk.bf16.mxu0 %vm205_vm1, %v1270_v53 }
  0x31   : >> { %1240 = vmatprep.subr.msk.bf16.mxu0 %vm212_vm0, %v1099_v55 }
  0x3a   : >> { %1167 = vmatmul.mubr.msk.bf16.vlgmr.msra.gmra.mrb[0].mxu1 %vm205_vm1, %v1379_v17  ;;  %1191 = vmatmul.mubr.msk.bf16.vlgmr.msra.gmra.mrb[0].mxu0 %vm205_vm1, %v1271_v61 }
  0x3b   : >> { %1195 = vmatpush3.bf16.msra.mxu0 %v856_v63  ;;  %1196 = vmatprep.mubr.msk.bf16.mxu0 %vm205_vm1, %v840_v1 }
  0x46   : >> { %1197 = vmatmul.mubr.msk.bf16.vlgmr.msra.gmra.mrb[0].mxu0 %vm205_vm1, %v848_v6 }
 0x10d   : >> { %v1168_v7 = vpop.f32.mrb[0].mxu1 }
 0x10e   : >> { %v487_v8 = vpop.f32.mrb[1].mxu1 }
 0x10f   : >> { %v1169_v9 = vpop.f32.mrb[2].mxu1 }
 0x110   : >> { %v490_v10 = vpop.f32.mrb[3].mxu1 }
 0x119   : >> { %v1198_v11 = vpop.f32.mrb[0].mxu0 }
 0x11a   : >> { %v1200_v12 = vadd.f32 %v1198_v11, %v1168_v7  ;;  %v892_v13 = vpop.f32.mrb[1].mxu0 }
 0x11b   : >> { %v1201_v14 = vadd.f32 %v892_v13, %v487_v8  ;;  %v1199_v15 = vpop.f32.mrb[2].mxu0 }
 0x11c   : >> { %v919_v16 = vadd.f32 %v1200_v12, %v1320_v0  ;;  %v1202_v17 = vadd.f32 %v1199_v15, %v1169_v9  ;;  %v895_v18 = vpop.f32.mrb[3].mxu0 }
 0x11d   : >> { %v917_v19 = vadd.f32 %v1201_v14, %v1320_v0  ;;  %v1203_v20 = vadd.f32 %v895_v18, %v490_v10 }
 0x11e   : >> { %vm923_vm3 = vcmp.ge.f32.partialorder %v919_v16, 0.0  ;;  %v927_v21 = vmul.f32 0.01, %v919_v16  ;;  %v920_v22 = vadd.f32 %v1202_v17, %v1320_v0 }
 0x11f   : >> { %vm921_vm4 = vcmp.ge.f32.partialorder %v917_v19, 0.0  ;;  %v925_v23 = vmul.f32 0.01, %v917_v19  ;;  %v918_v24 = vadd.f32 %v1203_v20, %v1320_v0 }
 0x120   : >> { %v931_v25 = vsel %vm923_vm3, %v919_v16, %v927_v21  ;;  %vm924_vm6 = vcmp.ge.f32.partialorder %v920_v22, 0.0  ;;  %v928_v26 = vmul.f32 0.01, %v920_v22  ;;  %177 = sbr.rel (!%p175_p4) target bundleno = 17 (0x11), region = 81 }
 0x121   : >> { %v1116_v27 = vpack.c.bf16 %v931_v25, %v931_v25  ;;  %v929_v28 = vsel %vm921_vm4, %v917_v19, %v925_v23  ;;  %vm922_vm7 = vcmp.ge.f32.partialorder %v918_v24, 0.0  ;;  %v926_v29 = vmul.f32 0.01, %v918_v24 }
 0x122   : >> { %v1114_v30 = vpack.c.bf16 %v929_v28, %v929_v28  ;;  %v932_v31 = vsel %vm924_vm6, %v920_v22, %v928_v26 }
 0x123   : >> { %955 = vst.msk [vmem:[%s951_s21 + $0x8] sm:$0xf] %vm952_vm5, %v1116_v27  ;;  %v1117_v32 = vpack.c.bf16 %v932_v31, %v932_v31  ;;  %v930_v33 = vsel %vm922_vm7, %v918_v24, %v926_v29 }
 0x124   : >> { %953 = vst.msk [vmem:[%s951_s21] sm:$0xf] %vm952_vm5, %v1114_v30  ;;  %v1115_v34 = vpack.c.bf16 %v930_v33, %v930_v33 }
 0x125   : >> { %956 = vst.msk [vmem:[%s951_s21 + $0xc] sm:$0xf] %vm952_vm5, %v1117_v32 }
 0x126   : >> { %954 = vst.msk [vmem:[%s951_s21 + $0x4] sm:$0xf] %vm952_vm5, %v1115_v34 }
 0x127 PF: > { %s13_s12 = sadd.s32 1, %s1283_s12  }
 0x128   : > { %p10_p5 = scmp.ge.s32.totalorder %s13_s12, 4  }
 0x12a   :  { %12 = sbr.rel (!%p10_p5) target bundleno = 1 (0x1), region = 92 }

// kernel: center_speed_forward.6
= control target key start
LH: loop header
LB: loop body
LE: loop exit
PB: predicated region body
PF: predicated region fallthrough
CT: control target
= control target key end

     0   :  { %s1498_s12 = smov 0   ;;  %s1723_s0 = inlined_call_operand.vmem [shape: bf16[2,34,2,17,64], index: 0, kind: input, shape index: {}]   ;;  %s1724_s1 = inlined_call_operand.vmem [shape: bf16[9,64,128], index: 1, kind: input, shape index: {}]   ;;  %s1725_s2 = inlined_call_operand.vmem [shape: f32[1,128], index: 2, kind: input, shape index: {}]   ;;  %s1726_s3 = inlined_call_operand.vmem [shape: bf16[2,16,16,128], index: 3, kind: output, shape index: {}]  }
   0x1 LB: > { %s1084_s13 = sadd.s32 4294967295, %s1470_s12   ;;  %p1088_p0 = scmp.ge.s32.totalorder %s1470_s12, 1  ;;  %s1470_s12 = sphi %s1498_s12, %s13_s12  }
   0x2   : > { %p137_p1 = scmp.lt.s32.totalorder %s1470_s12, 3 }
   0x4   : > { %p138_p2 = pnand %p1088_p0, %p137_p1 }
   0x5   : > { %p161_p3 = scmp.lt.s32.totalorder (!%p138_p2), %s1084_s13, 1  ;;  %v1509_v0 = vld [vmem:[%s1725_s2] ss:$0 sm:$0xff] (!%p138_p2)  ;;  %s1521_s24 = smov (!%p138_p2), 0  }
   0x6   : > { %141 = sbr.rel (%p138_p2) target bundleno = 322 (0x142), region = 32 }
   0xd   : > { %s1728_s13 = smov (!%p161_p3, %s1084_s13), 1 }
   0xe   : > { %s1396_s16 = smul.u32 816, %s1728_s13  ;;  %s1233_s17 = sshll.u32 %s1728_s13, 7 }
   0xf   : > { %s1514_s20 = scalar_lea.vmem %s1726_s3, %s1233_s17 }
  0x10   : > { %s1519_s23 = scalar_lea.vmem %s1723_s0, %s1396_s16 }
  0x11 LB: >> { %v1415_v1 = vld [vmem:[%s1724_s1 + $0x20] sm:$0xff]   ;;  %v1476_v2 = vmov 0.0   ;;  %v1417_v4 = vld [vmem:[%s1724_s1 + $0x28] sm:$0xff]   ;;  %vm1477_vm0 = vmmov 0   ;;  %s1234_s6 = smul.u32 48, %s1474_s24  ;;  %v1419_v6 = vld [vmem:[%s1724_s1 + $0x30] sm:$0xff]   ;;  %s1474_s24 = sphi %s1521_s24, %s178_s24  }
  0x12   : >> { %1288 = vmatprep.subr.bf16.mxu0 %v1476_v2  ;;  %1300 = vmatprep.subr.bf16.mxu1 %v1476_v2  ;;  %v1416_v3 = vld [vmem:[%s1724_s1] sm:$0xff]   ;;  %v1418_v5 = vld [vmem:[%s1724_s1 + $0x8] sm:$0xff]   ;;  %v1420_v7 = vld [vmem:[%s1724_s1 + $0x10] sm:$0xff]   ;;  %vm234_vm1 = vcmask 523264   ;;  %vm364_vm2 = vsmask.f32 7424 }
  0x13   : >> { %1289 = vmatpush3.bf16.msra.mxu0 %v1415_v1  ;;  %1296 = vmatprep.mubr.msk.bf16.mxu0 %vm1477_vm0, %v1476_v2  ;;  %s1555_s11 = scalar_lea.vmem %s1519_s23, %s1234_s6  ;;  %v1421_v8 = vld [vmem:[%s1724_s1 + $0x38] sm:$0xff]   ;;  %v1425_v12 = vld [vmem:[%s1724_s1 + $0x40] sm:$0xff]   ;;  %v1427_v15 = vld [vmem:[%s1724_s1 + $0x48] sm:$0xff]  }
  0x14   : >> { %1301 = vmatpush3.bf16.msra.mxu1 %v1416_v3  ;;  %1290 = vmatprep.subr.bf16.mxu0 %v1476_v2  ;;  %v1422_v9 = vld [vmem:[%s1724_s1 + $0x18] sm:$0xff]   ;;  %v1423_v10 = vld [vmem:[%s1555_s11 + $0xc] sm:$0xff]   ;;  %v1424_v11 = vld [vmem:[%s1555_s11] sm:$0xff]  }
  0x15   : >> { %1302 = vmatprep.subr.bf16.mxu1 %v1476_v2  ;;  %1308 = vmatprep.mubr.msk.bf16.mxu1 %vm1477_vm0, %v1476_v2  ;;  %v1426_v13 = vld [vmem:[%s1724_s1 + $0x60] sm:$0xff]   ;;  %v367_v14 = vshll.u32 %v1424_v11, 16  ;;  %v1433_v16 = vld [vmem:[%s1555_s11 + $0x8] ss:$0 sps:$4 sm:$0x11]   ;;  %v365_v18 = vshrl.u32 %v1424_v11, 16 }
  0x16   : >> { %v1428_v17 = vld [vmem:[%s1724_s1 + $0x68] sm:$0xff]   ;;  %v1429_v20 = vld [vmem:[%s1724_s1 + $0x50] sm:$0xff]   ;;  %v372_v21 = vshll.u32 %v1433_v16, 16  ;;  %v1431_v23 = vld [vmem:[%s1724_s1 + $0x58] sm:$0xff]  }
  0x17   : >> { %1291 = vmatpush3.bf16.msra.mxu0 %v1417_v4  ;;  %v369_v19 = vrot.slane %v367_v14, 1  ;;  %v1430_v22 = vld [vmem:[%s1724_s1 + $0x70] sm:$0xff]   ;;  %v1432_v24 = vld [vmem:[%s1724_s1 + $0x78] sm:$0xff]   ;;  %v1434_v28 = vld [vmem:[%s1724_s1 + $0x80] sm:$0xff]  }
  0x18   : >> { %1303 = vmatpush3.bf16.msra.mxu1 %v1418_v5  ;;  %1292 = vmatprep.subr.bf16.mxu0 %v1476_v2  ;;  %v374_v26 = vrot.slane %v372_v21, 1  ;;  %v1435_v29 = vld [vmem:[%s1555_s11 + $0x18] sm:$0xff]   ;;  %v1436_v30 = vld [vmem:[%s1724_s1 + $0xa0] sm:$0xff]   ;;  %v1437_v32 = vld [vmem:[%s1724_s1 + $0x88] sm:$0xff]  }
  0x19   : >> { %1304 = vmatprep.subr.bf16.mxu1 %v1476_v2  ;;  %v370_v25 = vor.u32 %v369_v19, %v365_v18  ;;  %v1445_v31 = vld [vmem:[%s1555_s11 + $0x20] ss:$0 sps:$4 sm:$0x11]   ;;  %v1438_v33 = vld [vmem:[%s1724_s1 + $0xa8] sm:$0xff]   ;;  %v637_v34 = vshll.u32 %v1435_v29, 16  ;;  %v1439_v35 = vld [vmem:[%s1724_s1 + $0x90] sm:$0xff]  }
  0x1a   : >> { %v1440_v36 = vld [vmem:[%s1724_s1 + $0xb0] sm:$0xff]   ;;  %v635_v37 = vshrl.u32 %v1435_v29, 16  ;;  %v642_v39 = vshll.u32 %v1445_v31, 16  ;;  %v1441_v40 = vld [vmem:[%s1724_s1 + $0x98] sm:$0xff]   ;;  %v1443_v44 = vld [vmem:[%s1555_s11 + $0x24] sm:$0xff]  }
  0x1b   : >> { %1293 = vmatpush3.bf16.msra.mxu0 %v1419_v6  ;;  %v375_v27 = vsel %vm364_vm2, %v370_v25, %v374_v26  ;;  %v639_v38 = vrot.slane %v637_v34, 1  ;;  %v1442_v41 = vld [vmem:[%s1724_s1 + $0xb8] sm:$0xff]   ;;  %v1444_v45 = vld [vmem:[%s1724_s1 + $0xc0] sm:$0xff]   ;;  %v1447_v48 = vld [vmem:[%s1724_s1 + $0xc8] sm:$0xff]  }
  0x1c   : >> { %1305 = vmatpush3.bf16.msra.mxu1 %v1420_v7  ;;  %1294 = vmatprep.subr.bf16.mxu0 %v1476_v2  ;;  %v644_v43 = vrot.slane %v642_v39, 1  ;;  %v1446_v47 = vld [vmem:[%s1724_s1 + $0xe0] sm:$0xff]   ;;  %v1448_v49 = vld [vmem:[%s1724_s1 + $0xe8] sm:$0xff]   ;;  %v1449_v50 = vld [vmem:[%s1724_s1 + $0xd0] sm:$0xff]  }
  0x1d   : >> { %1306 = vmatprep.subr.bf16.mxu1 %v1476_v2  ;;  %v640_v42 = vor.u32 %v639_v38, %v635_v37  ;;  %v1450_v51 = vld [vmem:[%s1724_s1 + $0xf0] sm:$0xff]   ;;  %v1451_v52 = vld [vmem:[%s1724_s1 + $0xd8] sm:$0xff]   ;;  %v1454_v55 = vld [vmem:[%s1724_s1 + $0x100] sm:$0xff]  }
  0x1e   : >> { %v1452_v53 = vld [vmem:[%s1724_s1 + $0xf8] sm:$0xff]   ;;  %v1453_v54 = vld [vmem:[%s1555_s11 + $0x30] sm:$0xff]   ;;  %v1456_v57 = vld [vmem:[%s1724_s1 + $0x108] sm:$0xff]  }
  0x1f   : >> { %1295 = vmatpush3.bf16.msra.mxu0 %v1421_v8  ;;  %v645_v46 = vsel %vm364_vm2, %v640_v42, %v644_v43  ;;  %v1455_v56 = vld [vmem:[%s1555_s11 + $0x3c] sm:$0xff]   ;;  %v1459_v58 = vld [vmem:[%s1555_s11 + $0x38] ss:$0 sps:$4 sm:$0x11]   ;;  %v907_v59 = vshll.u32 %v1453_v54, 16  ;;  %v1457_v60 = vld [vmem:[%s1724_s1 + $0x110] sm:$0xff]  }
  0x20   : >> { %1307 = vmatpush3.bf16.msra.mxu1 %v1422_v9  ;;  %1312 = vmatprep.subr.bf16.mxu0 %v1476_v2  ;;  %v905_v61 = vshrl.u32 %v1453_v54, 16  ;;  %v912_v63 = vshll.u32 %v1459_v58, 16  ;;  %v1458_v1 = vld [vmem:[%s1724_s1 + $0x118] sm:$0xff]   ;;  %s1237_s11 = sshll.u32 %s1474_s24, 3  ;;  %s178_s24 = sadd.s32 1, %s1474_s24  }
  0x21   : >> { %1324 = vmatprep.subr.bf16.mxu1 %v1476_v2  ;;  %v909_v62 = vrot.slane %v907_v59, 1  ;;  %s1009_s5 = scalar_lea.vmem %s1514_s20, %s1237_s11  ;;  %p175_p4 = scmp.ge.s32.totalorder %s178_s24, 16  }
  0x22   : >> { %1297 = vmatmul.mubr.msk.bf16.vlgmr.msra.gmra.mrb[0].mxu0 %vm234_vm1, %v1423_v10  ;;  %v914_v4 = vrot.slane %v912_v63, 1 }
  0x23   : >> { %1309 = vmatmul.mubr.msk.bf16.vlgmr.msra.gmra.mrb[0].mxu1 %vm234_vm1, %v1424_v11  ;;  %1313 = vmatpush3.bf16.msra.mxu0 %v1425_v12  ;;  %v910_v3 = vor.u32 %v909_v62, %v905_v61 }
  0x24   : >> { %1325 = vmatpush3.bf16.msra.mxu1 %v1426_v13  ;;  %1314 = vmatprep.subr.bf16.mxu0 %v1476_v2 }
  0x25   : >> { %1326 = vmatprep.subr.bf16.mxu1 %v1476_v2  ;;  %1320 = vmatprep.mubr.msk.bf16.mxu0 %vm1477_vm0, %v1476_v2  ;;  %v915_v5 = vsel %vm364_vm2, %v910_v3, %v914_v4 }
  0x26   : >> { %1332 = vmatprep.mubr.msk.bf16.mxu1 %vm1477_vm0, %v1476_v2 }
  0x27   : >> { %1315 = vmatpush3.bf16.msra.mxu0 %v1427_v15 }
  0x28   : >> { %1327 = vmatpush3.bf16.msra.mxu1 %v1428_v17  ;;  %1316 = vmatprep.subr.bf16.mxu0 %v1476_v2 }
  0x29   : >> { %1328 = vmatprep.subr.bf16.mxu1 %v1476_v2 }
  0x2b   : >> { %1317 = vmatpush3.bf16.msra.mxu0 %v1429_v20 }
  0x2c   : >> { %1329 = vmatpush3.bf16.msra.mxu1 %v1430_v22  ;;  %1318 = vmatprep.subr.bf16.mxu0 %v1476_v2 }
  0x2d   : >> { %1330 = vmatprep.subr.bf16.mxu1 %v1476_v2 }
  0x2f   : >> { %1319 = vmatpush3.bf16.msra.mxu0 %v1431_v23 }
  0x30   : >> { %1331 = vmatpush3.bf16.msra.mxu1 %v1432_v24  ;;  %1336 = vmatprep.subr.bf16.mxu0 %v1476_v2 }
  0x31   : >> { %1348 = vmatprep.subr.bf16.mxu1 %v1476_v2 }
  0x32   : >> { %1321 = vmatmul.mubr.msk.bf16.vlgmr.msra.gmra.mrb[4].mxu0 %vm234_vm1, %v375_v27 }
  0x33   : >> { %1337 = vmatpush3.bf16.msra.mxu0 %v1434_v28  ;;  %1333 = vmatmul.mubr.msk.bf16.vlgmr.msra.gmra.mrb[4].mxu1 %vm234_vm1, %v1435_v29 }
  0x34   : >> { %1349 = vmatpush3.bf16.msra.mxu1 %v1436_v30  ;;  %1338 = vmatprep.subr.bf16.mxu0 %v1476_v2 }
  0x35   : >> { %1350 = vmatprep.subr.bf16.mxu1 %v1476_v2  ;;  %1344 = vmatprep.mubr.msk.bf16.mxu0 %vm1477_vm0, %v1476_v2 }
  0x36   : >> { %1356 = vmatprep.mubr.msk.bf16.mxu1 %vm1477_vm0, %v1476_v2 }
  0x37   : >> { %1339 = vmatpush3.bf16.msra.mxu0 %v1437_v32 }
  0x38   : >> { %1351 = vmatpush3.bf16.msra.mxu1 %v1438_v33  ;;  %1340 = vmatprep.subr.bf16.mxu0 %v1476_v2 }
  0x39   : >> { %1352 = vmatprep.subr.bf16.mxu1 %v1476_v2 }
  0x3b   : >> { %1341 = vmatpush3.bf16.msra.mxu0 %v1439_v35 }
  0x3c   : >> { %1353 = vmatpush3.bf16.msra.mxu1 %v1440_v36  ;;  %1342 = vmatprep.subr.bf16.mxu0 %v1476_v2 }
  0x3d   : >> { %1354 = vmatprep.subr.bf16.mxu1 %v1476_v2 }
  0x3f   : >> { %1343 = vmatpush3.bf16.msra.mxu0 %v1441_v40 }
  0x40   : >> { %1355 = vmatpush3.bf16.msra.mxu1 %v1442_v41  ;;  %1360 = vmatprep.subr.bf16.mxu0 %v1476_v2 }
  0x41   : >> { %1372 = vmatprep.subr.bf16.mxu1 %v1476_v2 }
  0x42   : >> { %1345 = vmatmul.mubr.msk.bf16.vlgmr.msra.gmra.mrb[8].mxu0 %vm234_vm1, %v1443_v44 }
  0x43   : >> { %1361 = vmatpush3.bf16.msra.mxu0 %v1444_v45  ;;  %1357 = vmatmul.mubr.msk.bf16.vlgmr.msra.gmra.mrb[8].mxu1 %vm234_vm1, %v645_v46 }
  0x44   : >> { %1373 = vmatpush3.bf16.msra.mxu1 %v1446_v47  ;;  %1362 = vmatprep.subr.bf16.mxu0 %v1476_v2 }
  0x45   : >> { %1374 = vmatprep.subr.bf16.mxu1 %v1476_v2  ;;  %1368 = vmatprep.mubr.msk.bf16.mxu0 %vm1477_vm0, %v1476_v2 }
  0x46   : >> { %1380 = vmatprep.mubr.msk.bf16.mxu1 %vm1477_vm0, %v1476_v2 }
  0x47   : >> { %1363 = vmatpush3.bf16.msra.mxu0 %v1447_v48 }
  0x48   : >> { %1375 = vmatpush3.bf16.msra.mxu1 %v1448_v49  ;;  %1364 = vmatprep.subr.bf16.mxu0 %v1476_v2 }
  0x49   : >> { %1376 = vmatprep.subr.bf16.mxu1 %v1476_v2 }
  0x4b   : >> { %1365 = vmatpush3.bf16.msra.mxu0 %v1449_v50 }
  0x4c   : >> { %1377 = vmatpush3.bf16.msra.mxu1 %v1450_v51  ;;  %1366 = vmatprep.subr.bf16.mxu0 %v1476_v2 }
  0x4d   : >> { %1378 = vmatprep.subr.bf16.mxu1 %v1476_v2 }
  0x4f   : >> { %1367 = vmatpush3.bf16.msra.mxu0 %v1451_v52 }
  0x50   : >> { %1379 = vmatpush3.bf16.msra.mxu1 %v1452_v53  ;;  %1384 = vmatprep.subr.bf16.mxu0 %v1476_v2 }
  0x52   : >> { %1369 = vmatmul.mubr.msk.bf16.vlgmr.msra.gmra.mrb[12].mxu0 %vm234_vm1, %v1453_v54 }
  0x53   : >> { %1385 = vmatpush3.bf16.msra.mxu0 %v1454_v55  ;;  %1381 = vmatmul.mubr.msk.bf16.vlgmr.msra.gmra.mrb[12].mxu1 %vm234_vm1, %v1455_v56 }
  0x54   : >> { %1386 = vmatprep.subr.bf16.mxu0 %v1476_v2  ;;  %1392 = vmatprep.mubr.msk.bf16.mxu0 %vm1477_vm0, %v1476_v2 }
  0x57   : >> { %1387 = vmatpush3.bf16.msra.mxu0 %v1456_v57 }
  0x58   : >> { %1388 = vmatprep.subr.bf16.mxu0 %v1476_v2 }
  0x5b   : >> { %1389 = vmatpush3.bf16.msra.mxu0 %v1457_v60 }
  0x5c   : >> { %1390 = vmatprep.subr.bf16.mxu0 %v1476_v2 }
  0x5f   : >> { %1391 = vmatpush3.bf16.msra.mxu0 %v1458_v1 }
  0x62   : >> { %1393 = vmatmul.mubr.msk.bf16.vlgmr.msra.gmra.mrb[16].mxu0 %vm234_vm1, %v915_v5 }
  0xf5   : >> { %v272_v6 = vpop.f32.mrb[0].mxu0 }
  0xf6   : >> { %v345_v7 = vpop.f32.mrb[0].mxu1  ;;  %v1298_v8 = vpop.f32.mrb[1].mxu0 }
  0xf7   : >> { %v346_v9 = vadd.f32 %v345_v7, %v272_v6  ;;  %v1310_v10 = vpop.f32.mrb[1].mxu1  ;;  %v275_v11 = vpop.f32.mrb[2].mxu0 }
  0xf8   : >> { %v348_v12 = vpop.f32.mrb[2].mxu1  ;;  %v1299_v13 = vpop.f32.mrb[3].mxu0 }
  0xf9   : >> { %v349_v14 = vadd.f32 %v348_v12, %v275_v11  ;;  %v1311_v15 = vpop.f32.mrb[3].mxu1 }
 0x105   : >> { %v437_v16 = vpop.f32.mrb[4].mxu0 }
 0x106   : >> { %v444_v17 = vadd.f32 %v437_v16, %v346_v9  ;;  %v1322_v18 = vpop.f32.mrb[5].mxu0  ;;  %v530_v19 = vpop.f32.mrb[4].mxu1 }
 0x107   : >> { %v440_v2 = vpop.f32.mrb[6].mxu0  ;;  %v1334_v20 = vpop.f32.mrb[5].mxu1 }
 0x108   : >> { %v445_v21 = vadd.f32 %v440_v2, %v349_v14  ;;  %v537_v22 = vadd.f32 %v530_v19, %v444_v17  ;;  %v1323_v23 = vpop.f32.mrb[7].mxu0  ;;  %v533_v24 = vpop.f32.mrb[6].mxu1 }
 0x109   : >> { %v1335_v25 = vpop.f32.mrb[7].mxu1 }
 0x10a   : >> { %v538_v26 = vadd.f32 %v533_v24, %v445_v21 }
 0x115   : >> { %v614_v27 = vpop.f32.mrb[8].mxu0 }
 0x116   : >> { %v621_v28 = vadd.f32 %v614_v27, %v537_v22  ;;  %v1346_v29 = vpop.f32.mrb[9].mxu0  ;;  %v707_v30 = vpop.f32.mrb[8].mxu1 }
 0x117   : >> { %v617_v31 = vpop.f32.mrb[10].mxu0  ;;  %v1358_v32 = vpop.f32.mrb[9].mxu1 }
 0x118   : >> { %v622_v33 = vadd.f32 %v617_v31, %v538_v26  ;;  %v714_v34 = vadd.f32 %v707_v30, %v621_v28  ;;  %v1347_v35 = vpop.f32.mrb[11].mxu0  ;;  %v710_v36 = vpop.f32.mrb[10].mxu1 }
 0x119   : >> { %v1359_v37 = vpop.f32.mrb[11].mxu1 }
 0x11a   : >> { %v715_v38 = vadd.f32 %v710_v36, %v622_v33 }
 0x125   : >> { %v800_v39 = vpop.f32.mrb[12].mxu0 }
 0x126   : >> { %v807_v40 = vadd.f32 %v800_v39, %v714_v34  ;;  %v1370_v41 = vpop.f32.mrb[13].mxu0  ;;  %v884_v42 = vpop.f32.mrb[12].mxu1 }
 0x127   : >> { %v803_v43 = vpop.f32.mrb[14].mxu0  ;;  %v1382_v44 = vpop.f32.mrb[13].mxu1 }
 0x128   : >> { %v808_v45 = vadd.f32 %v803_v43, %v715_v38  ;;  %v891_v46 = vadd.f32 %v884_v42, %v807_v40  ;;  %v1371_v47 = vpop.f32.mrb[15].mxu0  ;;  %v887_v48 = vpop.f32.mrb[14].mxu1 }
 0x129   : >> { %v1383_v49 = vpop.f32.mrb[15].mxu1 }
 0x12a   : >> { %v892_v50 = vadd.f32 %v887_v48, %v808_v45 }
 0x135   : >> { %v977_v51 = vpop.f32.mrb[16].mxu0 }
 0x136   : >> { %v984_v52 = vadd.f32 %v977_v51, %v891_v46  ;;  %v1394_v53 = vpop.f32.mrb[17].mxu0 }
 0x137   : >> { %v980_v54 = vpop.f32.mrb[18].mxu0 }
 0x138   : >> { %v992_v55 = vadd.f32 %v1509_v0, %v984_v52  ;;  %v985_v56 = vadd.f32 %v980_v54, %v892_v50  ;;  %v1395_v57 = vpop.f32.mrb[19].mxu0 }
 0x13a   : >> { %v996_v58 = vmul.f32 0.01, %v992_v55  ;;  %v993_v59 = vadd.f32 %v1509_v0, %v985_v56  ;;  %vm994_vm3 = vcmp.ge.f32.partialorder %v992_v55, 0.0 }
 0x13b   : > { %177 = sbr.rel (!%p175_p4) target bundleno = 17 (0x11), region = 81 }
 0x13c   : >> { %vm995_vm4 = vcmp.ge.f32.partialorder %v993_v59, 0.0  ;;  %v997_v60 = vmul.f32 0.01, %v993_v59  ;;  %v998_v61 = vsel %vm994_vm3, %v992_v55, %v996_v58 }
 0x13e   : >> { %v999_v62 = vsel %vm995_vm4, %v993_v59, %v997_v60 }
 0x13f   : >> { %v1241_v63 = vpack.c.bf16 %v999_v62, %v998_v61 }
 0x141   : >> { %1242 = vst [vmem:[%s1009_s5] sm:$0xff] %v1241_v63  }
 0x142 PF: > { %s13_s12 = sadd.s32 1, %s1470_s12  }
 0x143   : > { %p10_p5 = scmp.ge.s32.totalorder %s13_s12, 4  }
 0x145   :  { %12 = sbr.rel (!%p10_p5) target bundleno = 1 (0x1), region = 92 }

// kernel: center_speed_forward.9
= control target key start
LH: loop header
LB: loop body
LE: loop exit
PB: predicated region body
PF: predicated region fallthrough
CT: control target
= control target key end

     0   :  { %s2554_s12 = smov 0   ;;  %s2902_s0 = inlined_call_operand.vmem [shape: bf16[2,21,1,21,64], index: 0, kind: input, shape index: {}]   ;;  %s2903_s1 = inlined_call_operand.vmem [shape: bf16[16,64,8], index: 1, kind: input, shape index: {}]   ;;  %s2904_s2 = inlined_call_operand.vmem [shape: f32[1,8], index: 2, kind: input, shape index: {}]   ;;  %s2905_s3 = inlined_call_operand.vmem [shape: f32[2,18,18,8], index: 3, kind: output, shape index: {}]  }
   0x1 LB: > { %s1883_s13 = sadd.s32 4294967295, %s2528_s12   ;;  %p1887_p0 = scmp.ge.s32.totalorder %s2528_s12, 1  ;;  %s2528_s12 = sphi %s2554_s12, %s13_s12  }
   0x2   : > { %p137_p1 = scmp.lt.s32.totalorder %s2528_s12, 3 }
   0x4   : > { %p138_p2 = pnand %p1887_p0, %p137_p1 }
   0x5   : > { %p161_p3 = scmp.lt.s32.totalorder (!%p138_p2), %s1883_s13, 1  ;;  %v2565_v0 = vld [vmem:[%s2904_s2] ss:$0 sm:$0xff] (!%p138_p2)  ;;  %s2577_s24 = smov (!%p138_p2), 0  }
   0x6   : > { %141 = sbr.rel (%p138_p2) target bundleno = 400 (0x190), region = 32 }
   0xd   : > { %s2907_s13 = smov (!%p161_p3, %s1883_s13), 1 }
   0xe   : > { %s2416_s16 = smul.u32 252, %s2907_s13 }
   0xf   : > { %s2417_s17 = smul.u32 432, %s2907_s13 }
  0x10   : > { %s2570_s20 = scalar_lea.vmem %s2902_s0, %s2416_s16 }
  0x11   : > { %s2575_s23 = scalar_lea.vmem %s2905_s3, %s2417_s17 }
  0x12 LB: >> { %v2434_v1 = vld [vmem:[%s2903_s1 + $0x20] sm:$0xff]   ;;  %v2436_v3 = vld [vmem:[%s2903_s1 + $0x28] sm:$0xff]   ;;  %s2127_s4 = smul.u32 12, %s2532_s24  ;;  %v2438_v5 = vld [vmem:[%s2903_s1 + $0x30] sm:$0xff]   ;;  %vm250_vm0 = vcmask 523264   ;;  %vm390_vm2 = vcmask 1046528   ;;  %s2532_s24 = sphi %s2577_s24, %s178_s24  }
  0x13   : >> { %v2435_v2 = vld [vmem:[%s2903_s1] sm:$0xff]   ;;  %2224 = vmatprep.subr.bf16.mxu0 %v2434_v1  ;;  %v2437_v4 = vld [vmem:[%s2903_s1 + $0x8] sm:$0xff]   ;;  %v2439_v6 = vld [vmem:[%s2903_s1 + $0x10] sm:$0xff]   ;;  %vm210_vm1 = vsmask.f32 7424  ;;  %s1803_s16 = smul.u32 24, %s2532_s24 }
  0x14   : >> { %2236 = vmatprep.subr.bf16.mxu1 %v2435_v2  ;;  %2225 = vmatpush3.bf16.msra.mxu0 %v2434_v1  ;;  %s2602_s11 = scalar_lea.vmem %s2570_s20, %s2127_s4  ;;  %v2440_v7 = vld [vmem:[%s2903_s1 + $0x38] sm:$0xff]   ;;  %v2444_v15 = vld [vmem:[%s2903_s1 + $0x40] sm:$0xff]   ;;  %v2446_v26 = vld [vmem:[%s2903_s1 + $0x48] sm:$0xff]   ;;  %vm484_vm3 = vsmask.f32 6400  ;;  %vm1808_vm7 = vcmask 58368  }
  0x15   : >> { %2237 = vmatpush3.bf16.msra.mxu1 %v2435_v2  ;;  %2226 = vmatprep.subr.bf16.mxu0 %v2436_v3  ;;  %v2441_v8 = vld [vmem:[%s2903_s1 + $0x18] sm:$0xff]   ;;  %v2442_v9 = vld [vmem:[%s2602_s11] sm:$0xff]   ;;  %v2612_v10 = vld [vmem:[%s2602_s11 + $0x8] ss:$0 sps:$4 sm:$0x77]   ;;  %s1804_s17 = scalar_lea.vmem %s2575_s23, %s1803_s16  ;;  %vm1805_vm8 = vcmask 64512  }
  0x16   : >> { %2238 = vmatprep.subr.bf16.mxu1 %v2437_v4  ;;  %v212_v11 = vshrl.u32 %v2442_v9, 16  ;;  %v214_v12 = vshll.u32 %v2442_v9, 16  ;;  %v219_v13 = vshll.u32 %v2612_v10, 16  ;;  %v223_v14 = vshrl.u32 %v2612_v10, 16  ;;  %2244 = vmatprep.mubr.msk.bf16.mxu1 %vm250_vm0, %v2442_v9  ;;  %v2445_v19 = vld [vmem:[%s2903_s1 + $0x60] sm:$0xff]   ;;  %v2447_v29 = vld [vmem:[%s2903_s1 + $0x68] sm:$0xff]  }
  0x17   : >> { %v391_v21 = vrot.slane %v2442_v9, 1  ;;  %v392_v24 = vrot.slane %v2612_v10, 1  ;;  %v2448_v32 = vld [vmem:[%s2903_s1 + $0x50] sm:$0xff]   ;;  %v2450_v36 = vld [vmem:[%s2903_s1 + $0x58] sm:$0xff]   ;;  %v2452_v38 = vld [vmem:[%s2903_s1 + $0x80] sm:$0xff]   ;;  %s178_s24 = sadd.s32 1, %s2532_s24  }
  0x18   : >> { %2227 = vmatpush3.bf16.msra.mxu0 %v2436_v3  ;;  %v216_v16 = vrot.slane %v214_v12, 1  ;;  %v221_v17 = vrot.slane %v219_v13, 1  ;;  %v485_v18 = vrot.slane %v212_v11, 1  ;;  %v489_v20 = vrot.slane %v219_v13, 2  ;;  %v2449_v35 = vld [vmem:[%s2903_s1 + $0x70] sm:$0xff]   ;;  %v2451_v37 = vld [vmem:[%s2903_s1 + $0x78] sm:$0xff]  }
  0x19   : >> { %2239 = vmatpush3.bf16.msra.mxu1 %v2437_v4  ;;  %2228 = vmatprep.subr.bf16.mxu0 %v2438_v5  ;;  %v486_v25 = vrot.slane %v214_v12, 2  ;;  %v488_v27 = vrot.slane %v223_v14, 1  ;;  %v393_v33 = vsel %vm390_vm2, %v391_v21, %v392_v24  ;;  %v2460_v39 = vld [vmem:[%s2602_s11 + $0xc] sm:$0xff]   ;;  %v2656_v40 = vld [vmem:[%s2602_s11 + $0x14] ss:$0 sps:$4 sm:$0x77]  }
  0x1a   : >> { %2240 = vmatprep.subr.bf16.mxu1 %v2439_v6  ;;  %v217_v22 = vor.u32 %v216_v16, %v212_v11  ;;  %v225_v23 = vor.u32 %v223_v14, %v221_v17  ;;  %v2453_v41 = vld [vmem:[%s2903_s1 + $0xa0] sm:$0xff]   ;;  %v687_v42 = vshrl.u32 %v2460_v39, 16  ;;  %v689_v43 = vshll.u32 %v2460_v39, 16  ;;  %v2454_v45 = vld [vmem:[%s2903_s1 + $0x88] sm:$0xff]   ;;  %v2456_v51 = vld [vmem:[%s2903_s1 + $0x90] sm:$0xff]   ;;  %p175_p4 = scmp.ge.s32.totalorder %s178_s24, 18  }
  0x1b   : >> { %v487_v30 = vor.u32 %v486_v25, %v485_v18  ;;  %v490_v31 = vor.u32 %v489_v20, %v488_v27  ;;  %v693_v44 = vshll.u32 %v2656_v40, 16  ;;  %v2455_v46 = vld [vmem:[%s2903_s1 + $0xa8] sm:$0xff]   ;;  %v2457_v52 = vld [vmem:[%s2903_s1 + $0xb0] sm:$0xff]   ;;  %v2458_v53 = vld [vmem:[%s2903_s1 + $0x98] sm:$0xff]   ;;  %v697_v55 = vshrl.u32 %v2656_v40, 16 }
  0x1c   : >> { %2229 = vmatpush3.bf16.msra.mxu0 %v2438_v5  ;;  %v222_v28 = vsel %vm210_vm1, %v217_v22, %v221_v17  ;;  %v691_v47 = vrot.slane %v689_v43, 1  ;;  %v2459_v54 = vld [vmem:[%s2903_s1 + $0xb8] sm:$0xff]   ;;  %v883_v56 = vrot.slane %v687_v42, 1  ;;  %v884_v57 = vrot.slane %v689_v43, 2  ;;  %v2462_v60 = vld [vmem:[%s2903_s1 + $0xc0] sm:$0xff]   ;;  %v2464_v4 = vld [vmem:[%s2903_s1 + $0xc8] sm:$0xff]  }
  0x1d   : >> { %2241 = vmatpush3.bf16.msra.mxu1 %v2439_v6  ;;  %2230 = vmatprep.subr.bf16.mxu0 %v2440_v7  ;;  %v491_v34 = vsel %vm484_vm3, %v487_v30, %v490_v31  ;;  %v695_v48 = vrot.slane %v693_v44, 1  ;;  %v886_v58 = vrot.slane %v697_v55, 1  ;;  %v887_v59 = vrot.slane %v693_v44, 2  ;;  %v2463_v61 = vld [vmem:[%s2903_s1 + $0xe0] sm:$0xff]   ;;  %v2465_v5 = vld [vmem:[%s2903_s1 + $0xe8] sm:$0xff]   ;;  %v2466_v6 = vld [vmem:[%s2903_s1 + $0xd0] sm:$0xff]  }
  0x1e   : >> { %2242 = vmatprep.subr.bf16.mxu1 %v2441_v8  ;;  %2232 = vmatprep.mubr.msk.bf16.mxu0 %vm250_vm0, %v222_v28  ;;  %v692_v49 = vor.u32 %v691_v47, %v687_v42  ;;  %v790_v62 = vrot.slane %v2460_v39, 1  ;;  %v791_v1 = vrot.slane %v2656_v40, 1  ;;  %v885_v2 = vor.u32 %v884_v57, %v883_v56  ;;  %v2708_v9 = vld [vmem:[%s2602_s11 + $0x18] sm:$0xff]   ;;  %v2716_v11 = vld [vmem:[%s2602_s11 + $0x20] ss:$0 sps:$4 sm:$0x77]  }
  0x1f   : >> { %v699_v63 = vor.u32 %v697_v55, %v695_v48  ;;  %v888_v3 = vor.u32 %v887_v59, %v886_v58  ;;  %v1087_v12 = vshll.u32 %v2708_v9, 16  ;;  %v2468_v13 = vld [vmem:[%s2903_s1 + $0xd8] sm:$0xff]   ;;  %v1091_v17 = vshll.u32 %v2716_v11, 16  ;;  %v2470_v18 = vld [vmem:[%s2903_s1 + $0x100] sm:$0xff]   ;;  %v2472_v20 = vld [vmem:[%s2903_s1 + $0x108] sm:$0xff]  }
  0x20   : >> { %2231 = vmatpush3.bf16.msra.mxu0 %v2440_v7  ;;  %v696_v50 = vsel %vm210_vm1, %v692_v49, %v695_v48  ;;  %v792_v7 = vsel %vm390_vm2, %v790_v62, %v791_v1  ;;  %v2469_v14 = vld [vmem:[%s2903_s1 + $0xf8] sm:$0xff]   ;;  %v2743_v25 = vld [vmem:[%s2602_s11 + $0x2c] ss:$0 sps:$4 sm:$0x77]   ;;  %v2474_v30 = vld [vmem:[%s2903_s1 + $0x110] sm:$0xff]   ;;  %v1095_v42 = vshrl.u32 %v2716_v11, 16 }
  0x21   : >> { %2243 = vmatpush3.bf16.msra.mxu1 %v2441_v8  ;;  %2248 = vmatprep.subr.bf16.mxu0 %v2444_v15  ;;  %v889_v8 = vsel %vm484_vm3, %v885_v2, %v888_v3  ;;  %v1089_v16 = vrot.slane %v1087_v12, 1  ;;  %v1093_v22 = vrot.slane %v1091_v17, 1  ;;  %v1282_v48 = vrot.slane %v1087_v12, 2  ;;  %v2483_v62 = vld [vmem:[%s2903_s1 + $0x168] sm:$0xff]   ;;  %v2484_v2 = vld [vmem:[%s2903_s1 + $0x150] sm:$0xff]   ;;  %v2494_v12 = vld [vmem:[%s2903_s1 + $0x198] sm:$0xff]  }
  0x22   : >> { %2260 = vmatprep.subr.bf16.mxu1 %v2445_v19  ;;  %v1284_v49 = vrot.slane %v1095_v42, 1  ;;  %v1188_v57 = vrot.slane %v2708_v9, 1  ;;  %v1189_v58 = vrot.slane %v2716_v11, 1 }
  0x23   : >> { %2233 = vmatmul.mubr.msk.bf16.vlgmr.msra.gmra.mrb[0].mxu0 %vm250_vm0, %v225_v23  ;;  %v2737_v23 = vld [vmem:[%s2602_s11 + $0x24] sm:$0xff]   ;;  %v1097_v55 = vor.u32 %v1095_v42, %v1093_v22 }
  0x24   : >> { %2245 = vmatmul.mubr.msk.bf16.vlgmr.msra.gmra.mrb[0].mxu1 %vm250_vm0, %v2612_v10  ;;  %2249 = vmatpush3.bf16.msra.mxu0 %v2444_v15  ;;  %v2467_v10 = vld [vmem:[%s2903_s1 + $0xf0] sm:$0xff]   ;;  %v1085_v15 = vshrl.u32 %v2708_v9, 16  ;;  %v1485_v27 = vshll.u32 %v2737_v23, 16 }
  0x25   : >> { %2261 = vmatpush3.bf16.msra.mxu1 %v2445_v19  ;;  %2250 = vmatprep.subr.bf16.mxu0 %v2446_v26  ;;  %v2471_v19 = vld [vmem:[%s2903_s1 + $0x120] sm:$0xff]  }
  0x26   : >> { %2262 = vmatprep.subr.bf16.mxu1 %v2447_v29  ;;  %2256 = vmatprep.mubr.msk.bf16.mxu0 %vm250_vm0, %v393_v33  ;;  %v1090_v21 = vor.u32 %v1089_v16, %v1085_v15  ;;  %v1680_v44 = vrot.slane %v1485_v27, 2 }
  0x27   : >> { %2268 = vmatprep.mubr.msk.bf16.mxu1 %vm250_vm0, %v491_v34 }
  0x28   : >> { %2251 = vmatpush3.bf16.msra.mxu0 %v2446_v26  ;;  %v1483_v26 = vshrl.u32 %v2737_v23, 16  ;;  %v1094_v28 = vsel %vm210_vm1, %v1090_v21, %v1093_v22  ;;  %v2504_v21 = vld [vmem:[%s2903_s1 + $0x1d8] sm:$0xff]  }
  0x29   : >> { %2263 = vmatpush3.bf16.msra.mxu1 %v2447_v29  ;;  %2252 = vmatprep.subr.bf16.mxu0 %v2448_v32  ;;  %v1489_v29 = vshll.u32 %v2743_v25, 16  ;;  %v2505_v22 = vld [vmem:[%s2903_s1 + $0x1f8] sm:$0xff]  }
  0x2a   : >> { %2264 = vmatprep.subr.bf16.mxu1 %v2449_v35 }
  0x2b   : >> { %v2757_v33 = vrot.slane %v1489_v29, 1  ;;  %v1683_v47 = vrot.slane %v1489_v29, 2 }
  0x2c   : >> { %2253 = vmatpush3.bf16.msra.mxu0 %v2448_v32  ;;  %v2475_v32 = vld [vmem:[%s2903_s1 + $0x130] sm:$0xff]  }
  0x2d   : >> { %2265 = vmatpush3.bf16.msra.mxu1 %v2449_v35  ;;  %2254 = vmatprep.subr.bf16.mxu0 %v2450_v36  ;;  %v1586_v35 = vrot.slane %v2737_v23, 1 }
  0x2e   : >> { %2266 = vmatprep.subr.bf16.mxu1 %v2451_v37 }
  0x30   : >> { %2255 = vmatpush3.bf16.msra.mxu0 %v2450_v36  ;;  %v2476_v36 = vld [vmem:[%s2903_s1 + $0x118] sm:$0xff]  }
  0x31   : >> { %2267 = vmatpush3.bf16.msra.mxu1 %v2451_v37  ;;  %2272 = vmatprep.subr.bf16.mxu0 %v2452_v38  ;;  %v2477_v37 = vld [vmem:[%s2903_s1 + $0x138] sm:$0xff]  }
  0x32   : >> { %2284 = vmatprep.subr.bf16.mxu1 %v2453_v41 }
  0x33   : >> { %2257 = vmatmul.mubr.msk.bf16.vlgmr.msra.gmra.mrb[4].mxu0 %vm250_vm0, %v392_v24  ;;  %v2473_v24 = vld [vmem:[%s2903_s1 + $0x128] sm:$0xff]  }
  0x34   : >> { %2269 = vmatmul.mubr.msk.bf16.vlgmr.msra.gmra.mrb[4].mxu1 %vm250_vm0, %v490_v31  ;;  %2273 = vmatpush3.bf16.msra.mxu0 %v2452_v38  ;;  %v1487_v31 = vrot.slane %v1485_v27, 1  ;;  %v1587_v38 = vrot.slane %v2743_v25, 1 }
  0x35   : >> { %2285 = vmatpush3.bf16.msra.mxu1 %v2453_v41  ;;  %2274 = vmatprep.subr.bf16.mxu0 %v2454_v45  ;;  %v1679_v41 = vrot.slane %v1483_v26, 1 }
  0x36   : >> { %2286 = vmatprep.subr.bf16.mxu1 %v2455_v46  ;;  %2280 = vmatprep.mubr.msk.bf16.mxu0 %vm250_vm0, %v2460_v39  ;;  %v1488_v34 = vor.u32 %v1487_v31, %v1483_v26  ;;  %v2779_v43 = vsel %vm390_vm2, %v1586_v35, %v1587_v38 }
  0x37   : >> { %2292 = vmatprep.mubr.msk.bf16.mxu1 %vm250_vm0, %v696_v50  ;;  %v1285_v50 = vrot.slane %v1091_v17, 2  ;;  %v2500_v17 = vld [vmem:[%s2903_s1 + $0x1c8] sm:$0xff]  }
  0x38   : >> { %2275 = vmatpush3.bf16.msra.mxu0 %v2454_v45  ;;  %v2772_v39 = vsel %vm210_vm1, %v1488_v34, %v2757_v33  ;;  %v1281_v45 = vrot.slane %v1085_v15, 1  ;;  %v2499_v15 = vld [vmem:[%s2903_s1 + $0x1e0] sm:$0xff]  }
  0x39   : >> { %2287 = vmatpush3.bf16.msra.mxu1 %v2455_v46  ;;  %2276 = vmatprep.subr.bf16.mxu0 %v2456_v51 }
  0x3a   : >> { %2288 = vmatprep.subr.bf16.mxu1 %v2457_v52  ;;  %v1283_v59 = vor.u32 %v1282_v48, %v1281_v45 }
  0x3c   : >> { %2277 = vmatpush3.bf16.msra.mxu0 %v2456_v51  ;;  %v1681_v51 = vor.u32 %v1680_v44, %v1679_v41 }
  0x3d   : >> { %2289 = vmatpush3.bf16.msra.mxu1 %v2457_v52  ;;  %2278 = vmatprep.subr.bf16.mxu0 %v2458_v53 }
  0x3e   : >> { %2290 = vmatprep.subr.bf16.mxu1 %v2459_v54 }
  0x40   : >> { %2279 = vmatpush3.bf16.msra.mxu0 %v2458_v53  ;;  %v2480_v53 = vld [vmem:[%s2903_s1 + $0x140] sm:$0xff]  }
  0x41   : >> { %2291 = vmatpush3.bf16.msra.mxu1 %v2459_v54  ;;  %2296 = vmatprep.subr.bf16.mxu0 %v2462_v60  ;;  %v2481_v54 = vld [vmem:[%s2903_s1 + $0x160] sm:$0xff]  }
  0x42   : >> { %2308 = vmatprep.subr.bf16.mxu1 %v2463_v61 }
  0x43   : >> { %2281 = vmatmul.mubr.msk.bf16.vlgmr.msra.gmra.mrb[8].mxu0 %vm250_vm0, %v2656_v40  ;;  %v1493_v40 = vshrl.u32 %v2743_v25, 16 }
  0x44   : >> { %2293 = vmatmul.mubr.msk.bf16.vlgmr.msra.gmra.mrb[8].mxu1 %vm250_vm0, %v699_v63  ;;  %2297 = vmatpush3.bf16.msra.mxu0 %v2462_v60  ;;  %v1286_v60 = vor.u32 %v1285_v50, %v1284_v49  ;;  %v1190_v63 = vsel %vm390_vm2, %v1188_v57, %v1189_v58 }
  0x45   : >> { %2309 = vmatpush3.bf16.msra.mxu1 %v2463_v61  ;;  %2298 = vmatprep.subr.bf16.mxu0 %v2464_v4  ;;  %v1682_v46 = vrot.slane %v1493_v40, 1  ;;  %v2482_v61 = vld [vmem:[%s2903_s1 + $0x148] sm:$0xff]   ;;  %v1495_v16 = vor.u32 %v1493_v40, %v2757_v33 }
  0x46   : >> { %2310 = vmatprep.subr.bf16.mxu1 %v2465_v5  ;;  %2304 = vmatprep.mubr.msk.bf16.mxu0 %vm250_vm0, %v792_v7  ;;  %v2489_v7 = vld [vmem:[%s2903_s1 + $0x1a0] sm:$0xff]  }
  0x47   : >> { %2316 = vmatprep.mubr.msk.bf16.mxu1 %vm250_vm0, %v889_v8  ;;  %v2783_v52 = vor.u32 %v1683_v47, %v1682_v46  ;;  %v2490_v8 = vld [vmem:[%s2903_s1 + $0x188] sm:$0xff]  }
  0x48   : >> { %2299 = vmatpush3.bf16.msra.mxu0 %v2464_v4  ;;  %v2486_v4 = vld [vmem:[%s2903_s1 + $0x158] sm:$0xff]  }
  0x49   : >> { %2311 = vmatpush3.bf16.msra.mxu1 %v2465_v5  ;;  %2300 = vmatprep.subr.bf16.mxu0 %v2466_v6  ;;  %v2793_v56 = vsel %vm484_vm3, %v1681_v51, %v2783_v52  ;;  %v2487_v5 = vld [vmem:[%s2903_s1 + $0x178] sm:$0xff]  }
  0x4a   : >> { %2312 = vmatprep.subr.bf16.mxu1 %v2467_v10 }
  0x4c   : >> { %2301 = vmatpush3.bf16.msra.mxu0 %v2466_v6  ;;  %v2488_v6 = vld [vmem:[%s2903_s1 + $0x180] sm:$0xff]  }
  0x4d   : >> { %2313 = vmatpush3.bf16.msra.mxu1 %v2467_v10  ;;  %2302 = vmatprep.subr.bf16.mxu0 %v2468_v13  ;;  %v2492_v10 = vld [vmem:[%s2903_s1 + $0x190] sm:$0xff]  }
  0x4e   : >> { %2314 = vmatprep.subr.bf16.mxu1 %v2469_v14 }
  0x50   : >> { %2303 = vmatpush3.bf16.msra.mxu0 %v2468_v13  ;;  %v2495_v13 = vld [vmem:[%s2903_s1 + $0x1b8] sm:$0xff]  }
  0x51   : >> { %2315 = vmatpush3.bf16.msra.mxu1 %v2469_v14  ;;  %2320 = vmatprep.subr.bf16.mxu0 %v2470_v18  ;;  %v2498_v14 = vld [vmem:[%s2903_s1 + $0x1c0] sm:$0xff]  }
  0x52   : >> { %2332 = vmatprep.subr.bf16.mxu1 %v2471_v19 }
  0x53   : >> { %2305 = vmatmul.mubr.msk.bf16.vlgmr.msra.gmra.mrb[12].mxu0 %vm250_vm0, %v791_v1  ;;  %v1287_v1 = vsel %vm484_vm3, %v1283_v59, %v1286_v60 }
  0x54   : >> { %2317 = vmatmul.mubr.msk.bf16.vlgmr.msra.gmra.mrb[12].mxu1 %vm250_vm0, %v888_v3  ;;  %2321 = vmatpush3.bf16.msra.mxu0 %v2470_v18  ;;  %v2485_v3 = vld [vmem:[%s2903_s1 + $0x170] sm:$0xff]   ;;  %v2501_v18 = vld [vmem:[%s2903_s1 + $0x1e8] sm:$0xff]  }
  0x55   : >> { %2333 = vmatpush3.bf16.msra.mxu1 %v2471_v19  ;;  %2322 = vmatprep.subr.bf16.mxu0 %v2472_v20  ;;  %v2502_v19 = vld [vmem:[%s2903_s1 + $0x1d0] sm:$0xff]  }
  0x56   : >> { %2334 = vmatprep.subr.bf16.mxu1 %v2473_v24  ;;  %2328 = vmatprep.mubr.msk.bf16.mxu0 %vm250_vm0, %v2708_v9  ;;  %v2491_v9 = vld [vmem:[%s2903_s1 + $0x1a8] sm:$0xff]  }
  0x57   : >> { %2340 = vmatprep.mubr.msk.bf16.mxu1 %vm250_vm0, %v1094_v28 }
  0x58   : >> { %2323 = vmatpush3.bf16.msra.mxu0 %v2472_v20  ;;  %v2503_v20 = vld [vmem:[%s2903_s1 + $0x1f0] sm:$0xff]  }
  0x59   : >> { %2335 = vmatpush3.bf16.msra.mxu1 %v2473_v24  ;;  %2324 = vmatprep.subr.bf16.mxu0 %v2474_v30 }
  0x5a   : >> { %2336 = vmatprep.subr.bf16.mxu1 %v2475_v32 }
  0x5c   : >> { %2325 = vmatpush3.bf16.msra.mxu0 %v2474_v30 }
  0x5d   : >> { %2337 = vmatpush3.bf16.msra.mxu1 %v2475_v32  ;;  %2326 = vmatprep.subr.bf16.mxu0 %v2476_v36 }
  0x5e   : >> { %2338 = vmatprep.subr.bf16.mxu1 %v2477_v37 }
  0x60   : >> { %2327 = vmatpush3.bf16.msra.mxu0 %v2476_v36 }
  0x61   : >> { %2339 = vmatpush3.bf16.msra.mxu1 %v2477_v37  ;;  %2344 = vmatprep.subr.bf16.mxu0 %v2480_v53 }
  0x62   : >> { %2356 = vmatprep.subr.bf16.mxu1 %v2481_v54 }
  0x63   : >> { %2329 = vmatmul.mubr.msk.bf16.vlgmr.msra.gmra.mrb[16].mxu0 %vm250_vm0, %v2716_v11  ;;  %v2493_v11 = vld [vmem:[%s2903_s1 + $0x1b0] sm:$0xff]  }
  0x64   : >> { %2341 = vmatmul.mubr.msk.bf16.vlgmr.msra.gmra.mrb[16].mxu1 %vm250_vm0, %v1097_v55  ;;  %2345 = vmatpush3.bf16.msra.mxu0 %v2480_v53 }
  0x65   : >> { %2357 = vmatpush3.bf16.msra.mxu1 %v2481_v54  ;;  %2346 = vmatprep.subr.bf16.mxu0 %v2482_v61 }
  0x66   : >> { %2358 = vmatprep.subr.bf16.mxu1 %v2483_v62  ;;  %2352 = vmatprep.mubr.msk.bf16.mxu0 %vm250_vm0, %v1190_v63 }
  0x67   : >> { %2364 = vmatprep.mubr.msk.bf16.mxu1 %vm250_vm0, %v1287_v1 }
  0x68   : >> { %2347 = vmatpush3.bf16.msra.mxu0 %v2482_v61 }
  0x69   : >> { %2359 = vmatpush3.bf16.msra.mxu1 %v2483_v62  ;;  %2348 = vmatprep.subr.bf16.mxu0 %v2484_v2 }
  0x6a   : >> { %2360 = vmatprep.subr.bf16.mxu1 %v2485_v3 }
  0x6c   : >> { %2349 = vmatpush3.bf16.msra.mxu0 %v2484_v2 }
  0x6d   : >> { %2361 = vmatpush3.bf16.msra.mxu1 %v2485_v3  ;;  %2350 = vmatprep.subr.bf16.mxu0 %v2486_v4 }
  0x6e   : >> { %2362 = vmatprep.subr.bf16.mxu1 %v2487_v5 }
  0x70   : >> { %2351 = vmatpush3.bf16.msra.mxu0 %v2486_v4 }
  0x71   : >> { %2363 = vmatpush3.bf16.msra.mxu1 %v2487_v5  ;;  %2368 = vmatprep.subr.bf16.mxu0 %v2488_v6 }
  0x72   : >> { %2380 = vmatprep.subr.bf16.mxu1 %v2489_v7 }
  0x73   : >> { %2353 = vmatmul.mubr.msk.bf16.vlgmr.msra.gmra.mrb[20].mxu0 %vm250_vm0, %v1189_v58 }
  0x74   : >> { %2365 = vmatmul.mubr.msk.bf16.vlgmr.msra.gmra.mrb[20].mxu1 %vm250_vm0, %v1286_v60  ;;  %2369 = vmatpush3.bf16.msra.mxu0 %v2488_v6 }
  0x75   : >> { %2381 = vmatpush3.bf16.msra.mxu1 %v2489_v7  ;;  %2370 = vmatprep.subr.bf16.mxu0 %v2490_v8 }
  0x76   : >> { %2382 = vmatprep.subr.bf16.mxu1 %v2491_v9  ;;  %2376 = vmatprep.mubr.msk.bf16.mxu0 %vm250_vm0, %v2737_v23 }
  0x77   : >> { %2388 = vmatprep.mubr.msk.bf16.mxu1 %vm250_vm0, %v2772_v39 }
  0x78   : >> { %2371 = vmatpush3.bf16.msra.mxu0 %v2490_v8 }
  0x79   : >> { %2383 = vmatpush3.bf16.msra.mxu1 %v2491_v9  ;;  %2372 = vmatprep.subr.bf16.mxu0 %v2492_v10 }
  0x7a   : >> { %2384 = vmatprep.subr.bf16.mxu1 %v2493_v11 }
  0x7c   : >> { %2373 = vmatpush3.bf16.msra.mxu0 %v2492_v10 }
  0x7d   : >> { %2385 = vmatpush3.bf16.msra.mxu1 %v2493_v11  ;;  %2374 = vmatprep.subr.bf16.mxu0 %v2494_v12 }
  0x7e   : >> { %2386 = vmatprep.subr.bf16.mxu1 %v2495_v13 }
  0x80   : >> { %2375 = vmatpush3.bf16.msra.mxu0 %v2494_v12 }
  0x81   : >> { %2387 = vmatpush3.bf16.msra.mxu1 %v2495_v13  ;;  %2392 = vmatprep.subr.bf16.mxu0 %v2498_v14 }
  0x82   : >> { %2404 = vmatprep.subr.bf16.mxu1 %v2499_v15 }
  0x83   : >> { %2377 = vmatmul.mubr.msk.bf16.vlgmr.msra.gmra.mrb[24].mxu0 %vm250_vm0, %v2743_v25 }
  0x84   : >> { %2389 = vmatmul.mubr.msk.bf16.vlgmr.msra.gmra.mrb[24].mxu1 %vm250_vm0, %v1495_v16  ;;  %2393 = vmatpush3.bf16.msra.mxu0 %v2498_v14 }
  0x85   : >> { %2405 = vmatpush3.bf16.msra.mxu1 %v2499_v15  ;;  %2394 = vmatprep.subr.bf16.mxu0 %v2500_v17 }
  0x86   : >> { %2406 = vmatprep.subr.bf16.mxu1 %v2501_v18  ;;  %2400 = vmatprep.mubr.msk.bf16.mxu0 %vm250_vm0, %v2779_v43 }
  0x87   : >> { %2412 = vmatprep.mubr.msk.bf16.mxu1 %vm250_vm0, %v2793_v56 }
  0x88   : >> { %2395 = vmatpush3.bf16.msra.mxu0 %v2500_v17 }
  0x89   : >> { %2407 = vmatpush3.bf16.msra.mxu1 %v2501_v18  ;;  %2396 = vmatprep.subr.bf16.mxu0 %v2502_v19 }
  0x8a   : >> { %2408 = vmatprep.subr.bf16.mxu1 %v2503_v20 }
  0x8c   : >> { %2397 = vmatpush3.bf16.msra.mxu0 %v2502_v19 }
  0x8d   : >> { %2409 = vmatpush3.bf16.msra.mxu1 %v2503_v20  ;;  %2398 = vmatprep.subr.bf16.mxu0 %v2504_v21 }
  0x8e   : >> { %2410 = vmatprep.subr.bf16.mxu1 %v2505_v22 }
  0x90   : >> { %2399 = vmatpush3.bf16.msra.mxu0 %v2504_v21 }
  0x91   : >> { %2411 = vmatpush3.bf16.msra.mxu1 %v2505_v22 }
  0x93   : >> { %2401 = vmatmul.mubr.msk.bf16.vlgmr.msra.gmra.mrb[28].mxu0 %vm250_vm0, %v1587_v38 }
  0x94   : >> { %2413 = vmatmul.mubr.msk.bf16.vlgmr.msra.gmra.mrb[28].mxu1 %vm250_vm0, %v2783_v52 }
  0xf6   : >> { %v2234_v23 = vpop.f32.mrb[0].mxu0 }
  0xf7   : >> { %v2246_v24 = vpop.f32.mrb[0].mxu1  ;;  %v291_v27 = vpop.f32.mrb[1].mxu0 }
  0xf8   : >> { %v376_v26 = vadd.f32 %v2246_v24, %v2234_v23  ;;  %v367_v28 = vpop.f32.mrb[1].mxu1  ;;  %v2235_v30 = vpop.f32.mrb[2].mxu0 }
  0xf9   : >> { %v368_v29 = vadd.f32 %v367_v28, %v291_v27  ;;  %v2247_v31 = vpop.f32.mrb[2].mxu1  ;;  %v294_v32 = vpop.f32.mrb[3].mxu0 }
  0xfa   : >> { %v370_v33 = vpop.f32.mrb[3].mxu1 }
  0xfb   : >> { %v371_v34 = vadd.f32 %v370_v33, %v294_v32 }
 0x106   : >> { %v2258_v35 = vpop.f32.mrb[4].mxu0 }
 0x107   : >> { %v2270_v36 = vpop.f32.mrb[4].mxu1  ;;  %v474_v37 = vadd.f32 %v2258_v35, %v376_v26  ;;  %v458_v25 = vpop.f32.mrb[5].mxu0 }
 0x108   : >> { %v556_v39 = vpop.f32.mrb[5].mxu1  ;;  %v472_v38 = vadd.f32 %v458_v25, %v368_v29  ;;  %v2259_v40 = vpop.f32.mrb[6].mxu0 }
 0x109   : >> { %v2271_v41 = vpop.f32.mrb[6].mxu1  ;;  %v572_v42 = vadd.f32 %v2270_v36, %v474_v37  ;;  %v461_v43 = vpop.f32.mrb[7].mxu0 }
 0x10a   : >> { %v559_v44 = vpop.f32.mrb[7].mxu1  ;;  %v570_v45 = vadd.f32 %v556_v39, %v472_v38  ;;  %v473_v46 = vadd.f32 %v461_v43, %v371_v34 }
 0x10c   : >> { %v571_v47 = vadd.f32 %v559_v44, %v473_v46 }
 0x116   : >> { %v2282_v48 = vpop.f32.mrb[8].mxu0 }
 0x117   : >> { %v2294_v49 = vpop.f32.mrb[8].mxu1  ;;  %v677_v50 = vadd.f32 %v2282_v48, %v572_v42  ;;  %v661_v51 = vpop.f32.mrb[9].mxu0 }
 0x118   : >> { %v764_v52 = vpop.f32.mrb[9].mxu1  ;;  %v675_v53 = vadd.f32 %v661_v51, %v570_v45  ;;  %v2283_v54 = vpop.f32.mrb[10].mxu0 }
 0x119   : >> { %v2295_v55 = vpop.f32.mrb[10].mxu1  ;;  %v780_v56 = vadd.f32 %v2294_v49, %v677_v50  ;;  %v664_v57 = vpop.f32.mrb[11].mxu0 }
 0x11a   : >> { %v767_v58 = vpop.f32.mrb[11].mxu1  ;;  %v778_v59 = vadd.f32 %v764_v52, %v675_v53  ;;  %v676_v60 = vadd.f32 %v664_v57, %v571_v47 }
 0x11c   : >> { %v779_v61 = vadd.f32 %v767_v58, %v676_v60 }
 0x126   : >> { %v2306_v62 = vpop.f32.mrb[12].mxu0 }
 0x127   : >> { %v2318_v63 = vpop.f32.mrb[12].mxu1  ;;  %v873_v1 = vadd.f32 %v2306_v62, %v780_v56  ;;  %v857_v2 = vpop.f32.mrb[13].mxu0 }
 0x128   : >> { %v954_v3 = vpop.f32.mrb[13].mxu1  ;;  %v871_v4 = vadd.f32 %v857_v2, %v778_v59  ;;  %v2307_v5 = vpop.f32.mrb[14].mxu0 }
 0x129   : >> { %v2319_v6 = vpop.f32.mrb[14].mxu1  ;;  %v970_v7 = vadd.f32 %v2318_v63, %v873_v1  ;;  %v860_v8 = vpop.f32.mrb[15].mxu0 }
 0x12a   : >> { %v957_v9 = vpop.f32.mrb[15].mxu1  ;;  %v968_v10 = vadd.f32 %v954_v3, %v871_v4  ;;  %v872_v11 = vadd.f32 %v860_v8, %v779_v61 }
 0x12c   : >> { %v969_v12 = vadd.f32 %v957_v9, %v872_v11 }
 0x136   : >> { %v2330_v13 = vpop.f32.mrb[16].mxu0 }
 0x137   : >> { %v2342_v14 = vpop.f32.mrb[16].mxu1  ;;  %v1075_v15 = vadd.f32 %v2330_v13, %v970_v7  ;;  %v1059_v16 = vpop.f32.mrb[17].mxu0 }
 0x138   : >> { %v1162_v17 = vpop.f32.mrb[17].mxu1  ;;  %v1073_v18 = vadd.f32 %v1059_v16, %v968_v10  ;;  %v2331_v19 = vpop.f32.mrb[18].mxu0 }
 0x139   : >> { %v2343_v20 = vpop.f32.mrb[18].mxu1  ;;  %v1178_v21 = vadd.f32 %v2342_v14, %v1075_v15  ;;  %v1062_v22 = vpop.f32.mrb[19].mxu0 }
 0x13a   : >> { %v1165_v23 = vpop.f32.mrb[19].mxu1  ;;  %v1176_v24 = vadd.f32 %v1162_v17, %v1073_v18  ;;  %v1074_v26 = vadd.f32 %v1062_v22, %v969_v12 }
 0x13c   : >> { %v1177_v27 = vadd.f32 %v1165_v23, %v1074_v26 }
 0x146   : >> { %v2354_v28 = vpop.f32.mrb[20].mxu0 }
 0x147   : >> { %v2366_v29 = vpop.f32.mrb[20].mxu1  ;;  %v1271_v30 = vadd.f32 %v2354_v28, %v1178_v21  ;;  %v1255_v31 = vpop.f32.mrb[21].mxu0 }
 0x148   : >> { %v1352_v32 = vpop.f32.mrb[21].mxu1  ;;  %v1269_v33 = vadd.f32 %v1255_v31, %v1176_v24  ;;  %v2355_v34 = vpop.f32.mrb[22].mxu0 }
 0x149   : >> { %v2367_v35 = vpop.f32.mrb[22].mxu1  ;;  %v1368_v36 = vadd.f32 %v2366_v29, %v1271_v30  ;;  %v1258_v37 = vpop.f32.mrb[23].mxu0 }
 0x14a   : >> { %v1355_v25 = vpop.f32.mrb[23].mxu1  ;;  %v1366_v39 = vadd.f32 %v1352_v32, %v1269_v33  ;;  %v1270_v38 = vadd.f32 %v1258_v37, %v1177_v27 }
 0x14c   : >> { %v1367_v40 = vadd.f32 %v1355_v25, %v1270_v38 }
 0x156   : >> { %v2378_v41 = vpop.f32.mrb[24].mxu0 }
 0x157   : >> { %v2390_v42 = vpop.f32.mrb[24].mxu1  ;;  %v1473_v43 = vadd.f32 %v2378_v41, %v1368_v36  ;;  %v1457_v44 = vpop.f32.mrb[25].mxu0 }
 0x158   : >> { %v1560_v45 = vpop.f32.mrb[25].mxu1  ;;  %v1471_v46 = vadd.f32 %v1457_v44, %v1366_v39  ;;  %v2379_v47 = vpop.f32.mrb[26].mxu0 }
 0x159   : >> { %v2391_v48 = vpop.f32.mrb[26].mxu1  ;;  %v1576_v49 = vadd.f32 %v2390_v42, %v1473_v43  ;;  %v1460_v50 = vpop.f32.mrb[27].mxu0 }
 0x15a   : >> { %v1563_v51 = vpop.f32.mrb[27].mxu1  ;;  %v1574_v52 = vadd.f32 %v1560_v45, %v1471_v46  ;;  %v1472_v53 = vadd.f32 %v1460_v50, %v1367_v40 }
 0x15c   : >> { %v1575_v54 = vadd.f32 %v1563_v51, %v1472_v53 }
 0x166   : >> { %v2402_v55 = vpop.f32.mrb[28].mxu0 }
 0x167   : >> { %v2414_v56 = vpop.f32.mrb[28].mxu1  ;;  %v1669_v57 = vadd.f32 %v2402_v55, %v1576_v49  ;;  %v1653_v58 = vpop.f32.mrb[29].mxu0 }
 0x168   : >> { %v1750_v59 = vpop.f32.mrb[29].mxu1  ;;  %v1667_v60 = vadd.f32 %v1653_v58, %v1574_v52  ;;  %v2403_v61 = vpop.f32.mrb[30].mxu0 }
 0x169   : >> { %v2415_v62 = vpop.f32.mrb[30].mxu1  ;;  %v1766_v63 = vadd.f32 %v2414_v56, %v1669_v57  ;;  %v1656_v1 = vpop.f32.mrb[31].mxu0 }
 0x16a   : >> { %v1753_v2 = vpop.f32.mrb[31].mxu1  ;;  %v1764_v3 = vadd.f32 %v1750_v59, %v1667_v60  ;;  %v1668_v4 = vadd.f32 %v1656_v1, %v1575_v54 }
 0x16b   : >> { %v1775_v5 = vadd.f32 %v2565_v0, %v1766_v63 }
 0x16c   : >> { %v1773_v6 = vadd.f32 %v2565_v0, %v1764_v3  ;;  %v1765_v7 = vadd.f32 %v1753_v2, %v1668_v4 }
 0x16d   : >> { %vm1778_vm4 = vcmp.ge.f32.partialorder %v1775_v5, 0.0  ;;  %v1781_v8 = vmul.f32 0.01, %v1775_v5 }
 0x16e   : >> { %vm1776_vm5 = vcmp.ge.f32.partialorder %v1773_v6, 0.0  ;;  %v1779_v9 = vmul.f32 0.01, %v1773_v6  ;;  %v1774_v10 = vadd.f32 %v2565_v0, %v1765_v7 }
 0x16f   : >> { %v1784_v11 = vsel %vm1778_vm4, %v1775_v5, %v1781_v8 }
 0x170   : >> { %v1787_v12 = vsub.f32 0.0, %v1784_v11  ;;  %v1782_v13 = vsel %vm1776_vm5, %v1773_v6, %v1779_v9  ;;  %vm1777_vm6 = vcmp.ge.f32.partialorder %v1774_v10, 0.0  ;;  %v1780_v14 = vmul.f32 0.01, %v1774_v10 }
 0x171   : >> { %v1785_v15 = vsub.f32 0.0, %v1782_v13 }
 0x172   : >> { %v1792_v16 = vmul.f32 1.442695, %v1787_v12  ;;  %v1783_v17 = vsel %vm1777_vm6, %v1774_v10, %v1780_v14 }
 0x173   : >> { %v1788_v18 = vmul.f32 1.442695, %v1785_v15  ;;  %v1786_v19 = vsub.f32 0.0, %v1783_v17 }
 0x174   : >> { %2506 = vpow2.f32 %v1792_v16 }
 0x175   : >> { %2508 = vpow2.f32 %v1788_v18  ;;  %v1790_v20 = vmul.f32 1.442695, %v1786_v19 }
 0x177   : >> { %2510 = vpow2.f32 %v1790_v20 }
 0x17e   : >> { %v2507_v21 = vpop.eup %2506 }
 0x17f   : >> { %v2509_v22 = vpop.eup %2508  ;;  %v1796_v23 = vadd.f32 1.0, %v2507_v21 }
 0x180   : >> { %v1794_v24 = vadd.f32 1.0, %v2509_v22 }
 0x181   : >> { %v2511_v26 = vpop.eup %2510  ;;  %2512 = vrcp.f32 %v1796_v23 }
 0x182   : >> { %2514 = vrcp.f32 %v1794_v24  ;;  %v1795_v27 = vadd.f32 1.0, %v2511_v26 }
 0x184   : >> { %2516 = vrcp.f32 %v1795_v27 }
 0x189   : > { %177 = sbr.rel (!%p175_p4) target bundleno = 18 (0x12), region = 89 }
 0x18b   : >> { %v2513_v28 = vpop.eup %2512 }
 0x18c   : >> { %v2515_v29 = vpop.eup %2514  ;;  %1809 = vst.msk [vmem:[%s1804_s17 + $0x10] sm:$0x3] %vm1808_vm7, %v2513_v28 }
 0x18d   : >> { %1806 = vst.msk [vmem:[%s1804_s17] sm:$0xff] %vm1805_vm8, %v2515_v29 }
 0x18e   : >> { %v2517_v30 = vpop.eup %2516 }
 0x18f   : >> { %1807 = vst.msk [vmem:[%s1804_s17 + $0x8] sm:$0xff] %vm1805_vm8, %v2517_v30 }
 0x190 PF: > { %s13_s12 = sadd.s32 1, %s2528_s12  }
 0x191   : > { %p10_p5 = scmp.ge.s32.totalorder %s13_s12, 4  }
 0x193   :  { %12 = sbr.rel (!%p10_p5) target bundleno = 1 (0x1), region = 100 }

// kernel: center_speed_forward.8
= control target key start
LH: loop header
LB: loop body
LE: loop exit
PB: predicated region body
PF: predicated region fallthrough
CT: control target
= control target key end

     0   :  { %s3408_s12 = smov 0   ;;  %s3944_s0 = inlined_call_operand.vmem [shape: bf16[2,20,1,20,128], index: 0, kind: input, shape index: {}]   ;;  %s3945_s1 = inlined_call_operand.vmem [shape: bf16[16,128,64], index: 1, kind: input, shape index: {}]   ;;  %s3946_s2 = inlined_call_operand.vmem [shape: f32[1,64], index: 2, kind: input, shape index: {}]   ;;  %s3947_s3 = inlined_call_operand.vmem [shape: bf16[2,17,17,64], index: 3, kind: output, shape index: {}]  }
   0x1 LB: > { %s2333_s13 = sadd.s32 4294967295, %s3382_s12   ;;  %p2337_p0 = scmp.ge.s32.totalorder %s3382_s12, 1  ;;  %s3382_s12 = sphi %s3408_s12, %s13_s12  }
   0x2   : > { %p137_p1 = scmp.lt.s32.totalorder %s3382_s12, 3 }
   0x4   : > { %p138_p2 = pnand %p2337_p0, %p137_p1 }
   0x5   : > { %p161_p3 = scmp.lt.s32.totalorder (!%p138_p2), %s2333_s13, 1  ;;  %v3419_v0 = vld [vmem:[%s3946_s2] ss:$0 sm:$0xff] (!%p138_p2)  ;;  %s3431_s24 = smov (!%p138_p2), 0  }
   0x6   : > { %141 = sbr.rel (%p138_p2) target bundleno = 502 (0x1f6), region = 32 }
   0xd   : > { %s3949_s13 = smov (!%p161_p3, %s2333_s13), 1 }
   0xe   : > { %s3218_s16 = smul.u32 240, %s3949_s13 }
   0xf   : > { %s3219_s17 = smul.u32 204, %s3949_s13 }
  0x10   : > { %s3424_s20 = scalar_lea.vmem %s3944_s0, %s3218_s16 }
  0x11   : > { %s3429_s23 = scalar_lea.vmem %s3947_s3, %s3219_s17 }
  0x12 LB: >> { %v3236_v1 = vld [vmem:[%s3945_s1 + $0x40] sm:$0xff]   ;;  %v3238_v3 = vld [vmem:[%s3945_s1 + $0x48] sm:$0xff]   ;;  %v3240_v5 = vld [vmem:[%s3945_s1 + $0x50] sm:$0xff]   ;;  %s2733_s15 = smul.u32 12, %s3386_s24  ;;  %vm226_vm0 = vsmask.f32 7424  ;;  %s3386_s24 = sphi %s3431_s24, %s178_s24  }
  0x13   : >> { %v3237_v2 = vld [vmem:[%s3945_s1] sm:$0xff]   ;;  %2898 = vmatprep.subr.bf16.mxu0 %v3236_v1  ;;  %v3239_v4 = vld [vmem:[%s3945_s1 + $0x8] sm:$0xff]   ;;  %v3241_v6 = vld [vmem:[%s3945_s1 + $0x10] sm:$0xff]   ;;  %vm454_vm1 = vcmask 1046528   ;;  %vm576_vm2 = vsmask.f32 6400 }
  0x14   : >> { %2918 = vmatprep.subr.bf16.mxu1 %v3237_v2  ;;  %2899 = vmatpush3.bf16.msra.mxu0 %v3236_v1  ;;  %v3242_v7 = vld [vmem:[%s3945_s1 + $0x58] sm:$0xff]   ;;  %v3244_v9 = vld [vmem:[%s3945_s1 + $0x60] sm:$0xff]   ;;  %s3470_s21 = scalar_lea.vmem %s3424_s20, %s2733_s15  ;;  %v3246_v11 = vld [vmem:[%s3945_s1 + $0x68] sm:$0xff]   ;;  %s2250_s26 = scalar_lea.vmem %s3429_s23, %s2733_s15  ;;  %vm2254_vm3 = vcmask 516096   ;;  %vm2255_vm4 = vsmask.f32 256 }
  0x15   : >> { %2919 = vmatpush3.bf16.msra.mxu1 %v3237_v2  ;;  %2900 = vmatprep.subr.bf16.mxu0 %v3238_v3  ;;  %v3243_v8 = vld [vmem:[%s3945_s1 + $0x18] sm:$0xff]   ;;  %v3245_v10 = vld [vmem:[%s3945_s1 + $0x20] sm:$0xff]   ;;  %v3247_v12 = vld [vmem:[%s3945_s1 + $0x28] sm:$0xff]   ;;  %vm2251_vm8 = vcmask 519168   ;;  %s178_s24 = sadd.s32 1, %s3386_s24  }
  0x16   : >> { %2920 = vmatprep.subr.bf16.mxu1 %v3239_v4  ;;  %v3252_v13 = vld [vmem:[%s3470_s21] sm:$0xff]   ;;  %v3480_v14 = vld [vmem:[%s3470_s21 + $0x8] ss:$0 sps:$4 sm:$0x33]   ;;  %v3248_v18 = vld [vmem:[%s3945_s1 + $0x70] sm:$0xff]   ;;  %p175_p4 = scmp.ge.s32.totalorder %s178_s24, 17  }
  0x17   : >> { %v228_v15 = vshrl.u32 %v3252_v13, 16  ;;  %v230_v16 = vshll.u32 %v3252_v13, 16  ;;  %v235_v17 = vshll.u32 %v3480_v14, 16  ;;  %2934 = vmatprep.mubr.bf16.mxu1 %v3252_v13  ;;  %v3249_v19 = vld [vmem:[%s3945_s1 + $0x30] sm:$0xff]   ;;  %v3250_v23 = vld [vmem:[%s3945_s1 + $0x78] sm:$0xff]   ;;  %v239_v26 = vshrl.u32 %v3480_v14, 16  ;;  %vm2256_vm7 = vmand %vm2254_vm3, %vm2255_vm4 }
  0x18   : >> { %2901 = vmatpush3.bf16.msra.mxu0 %v3238_v3  ;;  %v3251_v24 = vld [vmem:[%s3945_s1 + $0x38] sm:$0xff]   ;;  %v3254_v27 = vld [vmem:[%s3945_s1 + $0x80] sm:$0xff]   ;;  %v455_v33 = vrot.slane %v3252_v13, 1  ;;  %v456_v34 = vrot.slane %v3480_v14, 1  ;;  %v3256_v35 = vld [vmem:[%s3945_s1 + $0x88] sm:$0xff]  }
  0x19   : >> { %2921 = vmatpush3.bf16.msra.mxu1 %v3239_v4  ;;  %2902 = vmatprep.subr.bf16.mxu0 %v3240_v5  ;;  %v232_v20 = vrot.slane %v230_v16, 1  ;;  %v237_v21 = vrot.slane %v235_v17, 1  ;;  %v3500_v28 = vrot.slane %v239_v26, 1  ;;  %v577_v29 = vrot.slane %v228_v15, 1  ;;  %v3255_v32 = vld [vmem:[%s3945_s1 + $0xc0] sm:$0xff]   ;;  %v3257_v38 = vld [vmem:[%s3945_s1 + $0xc8] sm:$0xff]  }
  0x1a   : >> { %2922 = vmatprep.subr.bf16.mxu1 %v3241_v6  ;;  %v578_v30 = vrot.slane %v230_v16, 2  ;;  %v581_v31 = vrot.slane %v235_v17, 2  ;;  %v457_v39 = vsel %vm454_vm1, %v455_v33, %v456_v34  ;;  %v3258_v40 = vld [vmem:[%s3945_s1 + $0x90] sm:$0xff]   ;;  %v3260_v43 = vld [vmem:[%s3945_s1 + $0x98] sm:$0xff]   ;;  %v3262_v45 = vld [vmem:[%s3945_s1 + $0xa0] sm:$0xff]  }
  0x1b   : >> { %v233_v22 = vor.u32 %v232_v20, %v228_v15  ;;  %v3259_v42 = vld [vmem:[%s3945_s1 + $0xd0] sm:$0xff]   ;;  %v3261_v44 = vld [vmem:[%s3945_s1 + $0xd8] sm:$0xff]   ;;  %v3263_v46 = vld [vmem:[%s3945_s1 + $0xe0] sm:$0xff]  }
  0x1c   : >> { %2903 = vmatpush3.bf16.msra.mxu0 %v3240_v5  ;;  %v579_v36 = vor.u32 %v578_v30, %v577_v29  ;;  %v582_v37 = vor.u32 %v581_v31, %v3500_v28  ;;  %v3264_v47 = vld [vmem:[%s3945_s1 + $0xa8] sm:$0xff]   ;;  %v3266_v49 = vld [vmem:[%s3945_s1 + $0xb0] sm:$0xff]   ;;  %v3268_v54 = vld [vmem:[%s3945_s1 + $0xb8] sm:$0xff]  }
  0x1d   : >> { %2923 = vmatpush3.bf16.msra.mxu1 %v3241_v6  ;;  %2904 = vmatprep.subr.bf16.mxu0 %v3242_v7  ;;  %v238_v25 = vsel %vm226_vm0, %v233_v22, %v237_v21  ;;  %v3265_v48 = vld [vmem:[%s3945_s1 + $0xe8] sm:$0xff]   ;;  %v3267_v51 = vld [vmem:[%s3945_s1 + $0xf0] sm:$0xff]   ;;  %v3269_v55 = vld [vmem:[%s3945_s1 + $0xf8] sm:$0xff]  }
  0x1e   : >> { %2924 = vmatprep.subr.bf16.mxu1 %v3243_v8  ;;  %2914 = vmatprep.mubr.bf16.mxu0 %v238_v25  ;;  %v583_v41 = vsel %vm576_vm2, %v579_v36, %v582_v37  ;;  %v3546_v50 = vld [vmem:[%s3470_s21 + $0xc] sm:$0xff]   ;;  %v3552_v52 = vld [vmem:[%s3470_s21 + $0x14] ss:$0 sps:$4 sm:$0x33]   ;;  %v3270_v59 = vld [vmem:[%s3945_s1 + $0x100] sm:$0xff]  }
  0x1f   : >> { %v838_v53 = vshll.u32 %v3546_v50, 16  ;;  %v836_v56 = vshrl.u32 %v3546_v50, 16  ;;  %v843_v58 = vshll.u32 %v3552_v52, 16  ;;  %v3271_v60 = vld [vmem:[%s3945_s1 + $0x140] sm:$0xff]   ;;  %v3272_v63 = vld [vmem:[%s3945_s1 + $0x108] sm:$0xff]   ;;  %v3274_v3 = vld [vmem:[%s3945_s1 + $0x110] sm:$0xff]  }
  0x20   : >> { %2905 = vmatpush3.bf16.msra.mxu0 %v3242_v7  ;;  %v3273_v1 = vld [vmem:[%s3945_s1 + $0x148] sm:$0xff]   ;;  %v3275_v4 = vld [vmem:[%s3945_s1 + $0x150] sm:$0xff]   ;;  %v3276_v5 = vld [vmem:[%s3945_s1 + $0x118] sm:$0xff]   ;;  %v847_v15 = vshrl.u32 %v3552_v52, 16  ;;  %v967_v22 = vrot.slane %v3546_v50, 1 }
  0x21   : >> { %2925 = vmatpush3.bf16.msra.mxu1 %v3243_v8  ;;  %2906 = vmatprep.subr.bf16.mxu0 %v3244_v9  ;;  %v840_v57 = vrot.slane %v838_v53, 1  ;;  %v845_v62 = vrot.slane %v843_v58, 1  ;;  %v3277_v6 = vld [vmem:[%s3945_s1 + $0x158] sm:$0xff]   ;;  %v3278_v7 = vld [vmem:[%s3945_s1 + $0x120] sm:$0xff]   ;;  %v1088_v17 = vrot.slane %v836_v56, 1  ;;  %v1092_v20 = vrot.slane %v843_v58, 2 }
  0x22   : >> { %2926 = vmatprep.subr.bf16.mxu1 %v3245_v10  ;;  %v3279_v8 = vld [vmem:[%s3945_s1 + $0x160] sm:$0xff]   ;;  %v3284_v13 = vld [vmem:[%s3945_s1 + $0x138] sm:$0xff]   ;;  %v3292_v30 = vld [vmem:[%s3945_s1 + $0x190] sm:$0xff]  }
  0x23   : >> { %v841_v61 = vor.u32 %v840_v57, %v836_v56  ;;  %v3288_v16 = vld [vmem:[%s3945_s1 + $0x180] sm:$0xff]   ;;  %v3293_v31 = vld [vmem:[%s3945_s1 + $0x1d0] sm:$0xff]   ;;  %v3295_v33 = vld [vmem:[%s3945_s1 + $0x1d8] sm:$0xff]  }
  0x24   : >> { %2907 = vmatpush3.bf16.msra.mxu0 %v3244_v9  ;;  %v3280_v9 = vld [vmem:[%s3945_s1 + $0x128] sm:$0xff]   ;;  %v3289_v21 = vld [vmem:[%s3945_s1 + $0x1c0] sm:$0xff]   ;;  %v3308_v56 = vld [vmem:[%s3945_s1 + $0x210] sm:$0xff]  }
  0x25   : >> { %2927 = vmatpush3.bf16.msra.mxu1 %v3245_v10  ;;  %2908 = vmatprep.subr.bf16.mxu0 %v3246_v11  ;;  %v846_v2 = vsel %vm226_vm0, %v841_v61, %v845_v62  ;;  %v3281_v10 = vld [vmem:[%s3945_s1 + $0x168] sm:$0xff]   ;;  %v3309_v57 = vld [vmem:[%s3945_s1 + $0x250] sm:$0xff]   ;;  %v3311_v58 = vld [vmem:[%s3945_s1 + $0x258] sm:$0xff]  }
  0x26   : >> { %2928 = vmatprep.subr.bf16.mxu1 %v3247_v12  ;;  %v3298_v36 = vld [vmem:[%s3945_s1 + $0x1a8] sm:$0xff]  }
  0x27   : >> { %v3299_v37 = vld [vmem:[%s3945_s1 + $0x1e8] sm:$0xff]  }
  0x28   : >> { %2909 = vmatpush3.bf16.msra.mxu0 %v3246_v11  ;;  %v3282_v11 = vld [vmem:[%s3945_s1 + $0x130] sm:$0xff]   ;;  %v3314_v61 = vld [vmem:[%s3945_s1 + $0x228] sm:$0xff]  }
  0x29   : >> { %2929 = vmatpush3.bf16.msra.mxu1 %v3247_v12  ;;  %2910 = vmatprep.subr.bf16.mxu0 %v3248_v18  ;;  %v3283_v12 = vld [vmem:[%s3945_s1 + $0x170] sm:$0xff]   ;;  %v3315_v62 = vld [vmem:[%s3945_s1 + $0x268] sm:$0xff]  }
  0x2a   : >> { %2930 = vmatprep.subr.bf16.mxu1 %v3249_v19 }
  0x2c   : >> { %2911 = vmatpush3.bf16.msra.mxu0 %v3248_v18  ;;  %v1089_v18 = vrot.slane %v838_v53, 2  ;;  %v3306_v53 = vld [vmem:[%s3945_s1 + $0x208] sm:$0xff]  }
  0x2d   : >> { %2931 = vmatpush3.bf16.msra.mxu1 %v3249_v19  ;;  %2912 = vmatprep.subr.bf16.mxu0 %v3250_v23  ;;  %v3624_v19 = vrot.slane %v847_v15, 1 }
  0x2e   : >> { %2932 = vmatprep.subr.bf16.mxu1 %v3251_v24 }
  0x2f   : >> { %v1093_v25 = vor.u32 %v1092_v20, %v3624_v19  ;;  %v3327_v20 = vld [vmem:[%s3945_s1 + $0x2d0] sm:$0xff]  }
  0x30   : >> { %2913 = vmatpush3.bf16.msra.mxu0 %v3250_v23  ;;  %v968_v23 = vrot.slane %v3552_v52, 1 }
  0x31   : >> { %2933 = vmatpush3.bf16.msra.mxu1 %v3251_v24  ;;  %2938 = vmatprep.subr.bf16.mxu0 %v3254_v27  ;;  %v1090_v24 = vor.u32 %v1089_v18, %v1088_v17 }
  0x32   : >> { %2958 = vmatprep.subr.bf16.mxu1 %v3255_v32 }
  0x33   : >> { %2915 = vmatmul.mubr.bf16.vlgmr.msra.gmra.mrb[0].mxu0 %v239_v26  ;;  %v3290_v26 = vld [vmem:[%s3945_s1 + $0x188] sm:$0xff]   ;;  %v1094_v29 = vsel %vm576_vm2, %v1090_v24, %v1093_v25  ;;  %v3331_v24 = vld [vmem:[%s3945_s1 + $0x2e0] sm:$0xff]  }
  0x34   : >> { %2935 = vmatmul.mubr.bf16.vlgmr.msra.gmra.mrb[0].mxu1 %v3480_v14  ;;  %2939 = vmatpush3.bf16.msra.mxu0 %v3254_v27  ;;  %v3285_v14 = vld [vmem:[%s3945_s1 + $0x178] sm:$0xff]   ;;  %v3291_v27 = vld [vmem:[%s3945_s1 + $0x1c8] sm:$0xff]  }
  0x35   : >> { %2959 = vmatpush3.bf16.msra.mxu1 %v3255_v32  ;;  %2940 = vmatprep.subr.bf16.mxu0 %v3256_v35  ;;  %v3294_v32 = vld [vmem:[%s3945_s1 + $0x198] sm:$0xff]   ;;  %v3332_v25 = vld [vmem:[%s3945_s1 + $0x2a8] sm:$0xff]  }
  0x36   : >> { %2960 = vmatprep.subr.bf16.mxu1 %v3257_v38  ;;  %2954 = vmatprep.mubr.bf16.mxu0 %v457_v39  ;;  %v3300_v39 = vld [vmem:[%s3945_s1 + $0x1b0] sm:$0xff]  }
  0x37   : >> { %2974 = vmatprep.mubr.bf16.mxu1 %v583_v41  ;;  %v3677_v41 = vld [vmem:[%s3470_s21 + $0x20] ss:$0 sps:$4 sm:$0x33]  }
  0x38   : >> { %2941 = vmatpush3.bf16.msra.mxu0 %v3256_v35  ;;  %v3297_v35 = vld [vmem:[%s3945_s1 + $0x1e0] sm:$0xff]  }
  0x39   : >> { %2961 = vmatpush3.bf16.msra.mxu1 %v3257_v38  ;;  %2942 = vmatprep.subr.bf16.mxu0 %v3258_v40  ;;  %v3668_v38 = vld [vmem:[%s3470_s21 + $0x18] sm:$0xff]  }
  0x3a   : >> { %2962 = vmatprep.subr.bf16.mxu1 %v3259_v42 }
  0x3c   : >> { %2943 = vmatpush3.bf16.msra.mxu0 %v3258_v40  ;;  %v3301_v40 = vld [vmem:[%s3945_s1 + $0x1f0] sm:$0xff]  }
  0x3d   : >> { %2963 = vmatpush3.bf16.msra.mxu1 %v3259_v42  ;;  %2944 = vmatprep.subr.bf16.mxu0 %v3260_v43  ;;  %v1349_v42 = vshll.u32 %v3668_v38, 16 }
  0x3e   : >> { %2964 = vmatprep.subr.bf16.mxu1 %v3261_v44 }
  0x40   : >> { %2945 = vmatpush3.bf16.msra.mxu0 %v3260_v43  ;;  %v3302_v43 = vld [vmem:[%s3945_s1 + $0x1b8] sm:$0xff]  }
  0x41   : >> { %2965 = vmatpush3.bf16.msra.mxu1 %v3261_v44  ;;  %2946 = vmatprep.subr.bf16.mxu0 %v3262_v45  ;;  %v3303_v44 = vld [vmem:[%s3945_s1 + $0x1f8] sm:$0xff]  }
  0x42   : >> { %2966 = vmatprep.subr.bf16.mxu1 %v3263_v46 }
  0x44   : >> { %2947 = vmatpush3.bf16.msra.mxu0 %v3262_v45  ;;  %v1347_v45 = vshrl.u32 %v3668_v38, 16 }
  0x45   : >> { %2967 = vmatpush3.bf16.msra.mxu1 %v3263_v46  ;;  %2948 = vmatprep.subr.bf16.mxu0 %v3264_v47  ;;  %v1351_v46 = vrot.slane %v1349_v42, 1 }
  0x46   : >> { %2968 = vmatprep.subr.bf16.mxu1 %v3265_v48 }
  0x48   : >> { %2949 = vmatpush3.bf16.msra.mxu0 %v3264_v47  ;;  %v1354_v47 = vshll.u32 %v3677_v41, 16 }
  0x49   : >> { %2969 = vmatpush3.bf16.msra.mxu1 %v3265_v48  ;;  %2950 = vmatprep.subr.bf16.mxu0 %v3266_v49  ;;  %v3304_v48 = vld [vmem:[%s3945_s1 + $0x200] sm:$0xff]  }
  0x4a   : >> { %2970 = vmatprep.subr.bf16.mxu1 %v3267_v51 }
  0x4c   : >> { %2951 = vmatpush3.bf16.msra.mxu0 %v3266_v49  ;;  %v3305_v49 = vld [vmem:[%s3945_s1 + $0x240] sm:$0xff]  }
  0x4d   : >> { %2971 = vmatpush3.bf16.msra.mxu1 %v3267_v51  ;;  %2952 = vmatprep.subr.bf16.mxu0 %v3268_v54  ;;  %v1356_v51 = vrot.slane %v1354_v47, 1 }
  0x4e   : >> { %2972 = vmatprep.subr.bf16.mxu1 %v3269_v55 }
  0x50   : >> { %2953 = vmatpush3.bf16.msra.mxu0 %v3268_v54  ;;  %v3307_v54 = vld [vmem:[%s3945_s1 + $0x248] sm:$0xff]  }
  0x51   : >> { %2973 = vmatpush3.bf16.msra.mxu1 %v3269_v55  ;;  %2978 = vmatprep.subr.bf16.mxu0 %v3270_v59 }
  0x52   : >> { %2998 = vmatprep.subr.bf16.mxu1 %v3271_v60 }
  0x53   : >> { %2955 = vmatmul.mubr.bf16.vlgmr.msra.gmra.mrb[4].mxu0 %v456_v34  ;;  %v3296_v34 = vld [vmem:[%s3945_s1 + $0x1a0] sm:$0xff]  }
  0x54   : >> { %2975 = vmatmul.mubr.bf16.vlgmr.msra.gmra.mrb[4].mxu1 %v3500_v28  ;;  %2979 = vmatpush3.bf16.msra.mxu0 %v3270_v59  ;;  %v969_v28 = vsel %vm454_vm1, %v967_v22, %v968_v23  ;;  %v3312_v59 = vld [vmem:[%s3945_s1 + $0x220] sm:$0xff]   ;;  %v3329_v22 = vld [vmem:[%s3945_s1 + $0x2d8] sm:$0xff]  }
  0x55   : >> { %2999 = vmatpush3.bf16.msra.mxu1 %v3271_v60  ;;  %2980 = vmatprep.subr.bf16.mxu0 %v3272_v63  ;;  %v3313_v60 = vld [vmem:[%s3945_s1 + $0x260] sm:$0xff]  }
  0x56   : >> { %3000 = vmatprep.subr.bf16.mxu1 %v3273_v1  ;;  %2994 = vmatprep.mubr.bf16.mxu0 %v3546_v50  ;;  %v1352_v50 = vor.u32 %v1351_v46, %v1347_v45  ;;  %v3343_v46 = vld [vmem:[%s3945_s1 + $0x350] sm:$0xff]  }
  0x57   : >> { %3014 = vmatprep.mubr.bf16.mxu1 %v846_v2  ;;  %v3318_v2 = vld [vmem:[%s3945_s1 + $0x238] sm:$0xff]  }
  0x58   : >> { %2981 = vmatpush3.bf16.msra.mxu0 %v3272_v63  ;;  %v1357_v55 = vsel %vm226_vm0, %v1352_v50, %v1356_v51  ;;  %v3316_v63 = vld [vmem:[%s3945_s1 + $0x230] sm:$0xff]   ;;  %v3348_v50 = vld [vmem:[%s3945_s1 + $0x328] sm:$0xff]  }
  0x59   : >> { %3001 = vmatpush3.bf16.msra.mxu1 %v3273_v1  ;;  %2982 = vmatprep.subr.bf16.mxu0 %v3274_v3  ;;  %v3317_v1 = vld [vmem:[%s3945_s1 + $0x270] sm:$0xff]   ;;  %v3349_v51 = vld [vmem:[%s3945_s1 + $0x368] sm:$0xff]  }
  0x5a   : >> { %3002 = vmatprep.subr.bf16.mxu1 %v3275_v4 }
  0x5c   : >> { %2983 = vmatpush3.bf16.msra.mxu0 %v3274_v3  ;;  %v3319_v3 = vld [vmem:[%s3945_s1 + $0x278] sm:$0xff]  }
  0x5d   : >> { %3003 = vmatpush3.bf16.msra.mxu1 %v3275_v4  ;;  %2984 = vmatprep.subr.bf16.mxu0 %v3276_v5  ;;  %v1358_v4 = vshrl.u32 %v3677_v41, 16 }
  0x5e   : >> { %3004 = vmatprep.subr.bf16.mxu1 %v3277_v6 }
  0x60   : >> { %2985 = vmatpush3.bf16.msra.mxu0 %v3276_v5  ;;  %v1599_v5 = vrot.slane %v1347_v45, 1  ;;  %v3342_v45 = vld [vmem:[%s3945_s1 + $0x310] sm:$0xff]  }
  0x61   : >> { %3005 = vmatpush3.bf16.msra.mxu1 %v3277_v6  ;;  %2986 = vmatprep.subr.bf16.mxu0 %v3278_v7  ;;  %v1600_v6 = vrot.slane %v1349_v42, 2  ;;  %v3340_v42 = vld [vmem:[%s3945_s1 + $0x308] sm:$0xff]  }
  0x62   : >> { %3006 = vmatprep.subr.bf16.mxu1 %v3279_v8 }
  0x64   : >> { %2987 = vmatpush3.bf16.msra.mxu0 %v3278_v7  ;;  %v3746_v7 = vrot.slane %v1358_v4, 1 }
  0x65   : >> { %3007 = vmatpush3.bf16.msra.mxu1 %v3279_v8  ;;  %2988 = vmatprep.subr.bf16.mxu0 %v3280_v9  ;;  %v1603_v8 = vrot.slane %v1354_v47, 2  ;;  %v3345_v47 = vld [vmem:[%s3945_s1 + $0x358] sm:$0xff]  }
  0x66   : >> { %3008 = vmatprep.subr.bf16.mxu1 %v3281_v10 }
  0x68   : >> { %2989 = vmatpush3.bf16.msra.mxu0 %v3280_v9  ;;  %v3322_v9 = vld [vmem:[%s3945_s1 + $0x280] sm:$0xff]  }
  0x69   : >> { %3009 = vmatpush3.bf16.msra.mxu1 %v3281_v10  ;;  %2990 = vmatprep.subr.bf16.mxu0 %v3282_v11  ;;  %v3323_v10 = vld [vmem:[%s3945_s1 + $0x2c0] sm:$0xff]  }
  0x6a   : >> { %3010 = vmatprep.subr.bf16.mxu1 %v3283_v12 }
  0x6c   : >> { %2991 = vmatpush3.bf16.msra.mxu0 %v3282_v11  ;;  %v1478_v11 = vrot.slane %v3668_v38, 1 }
  0x6d   : >> { %3011 = vmatpush3.bf16.msra.mxu1 %v3283_v12  ;;  %2992 = vmatprep.subr.bf16.mxu0 %v3284_v13  ;;  %v1479_v12 = vrot.slane %v3677_v41, 1 }
  0x6e   : >> { %3012 = vmatprep.subr.bf16.mxu1 %v3285_v14 }
  0x6f   : >> { %v1480_v17 = vsel %vm454_vm1, %v1478_v11, %v1479_v12  ;;  %v3363_v11 = vld [vmem:[%s3945_s1 + $0x3d8] sm:$0xff]  }
  0x70   : >> { %2993 = vmatpush3.bf16.msra.mxu0 %v3284_v13  ;;  %v1601_v13 = vor.u32 %v1600_v6, %v1599_v5  ;;  %v3359_v5 = vld [vmem:[%s3945_s1 + $0x3c8] sm:$0xff]  }
  0x71   : >> { %3013 = vmatpush3.bf16.msra.mxu1 %v3285_v14  ;;  %3018 = vmatprep.subr.bf16.mxu0 %v3288_v16  ;;  %v1604_v14 = vor.u32 %v1603_v8, %v3746_v7  ;;  %v3360_v8 = vld [vmem:[%s3945_s1 + $0x390] sm:$0xff]  }
  0x72   : >> { %3038 = vmatprep.subr.bf16.mxu1 %v3289_v21 }
  0x73   : >> { %2995 = vmatmul.mubr.bf16.vlgmr.msra.gmra.mrb[8].mxu0 %v3552_v52  ;;  %v3310_v52 = vld [vmem:[%s3945_s1 + $0x218] sm:$0xff]   ;;  %v1605_v18 = vsel %vm576_vm2, %v1601_v13, %v1604_v14  ;;  %v3365_v13 = vld [vmem:[%s3945_s1 + $0x3e0] sm:$0xff]   ;;  %v3366_v14 = vld [vmem:[%s3945_s1 + $0x3a8] sm:$0xff]  }
  0x74   : >> { %3015 = vmatmul.mubr.bf16.vlgmr.msra.gmra.mrb[8].mxu1 %v847_v15  ;;  %3019 = vmatpush3.bf16.msra.mxu0 %v3288_v16  ;;  %v3324_v15 = vld [vmem:[%s3945_s1 + $0x288] sm:$0xff]  }
  0x75   : >> { %3039 = vmatpush3.bf16.msra.mxu1 %v3289_v21  ;;  %3020 = vmatprep.subr.bf16.mxu0 %v3290_v26  ;;  %v3325_v16 = vld [vmem:[%s3945_s1 + $0x2c8] sm:$0xff]   ;;  %v3328_v21 = vld [vmem:[%s3945_s1 + $0x298] sm:$0xff]  }
  0x76   : >> { %3040 = vmatprep.subr.bf16.mxu1 %v3291_v27  ;;  %3034 = vmatprep.mubr.bf16.mxu0 %v969_v28  ;;  %v3334_v28 = vld [vmem:[%s3945_s1 + $0x2b0] sm:$0xff]  }
  0x77   : >> { %3054 = vmatprep.mubr.bf16.mxu1 %v1094_v29  ;;  %v3335_v29 = vld [vmem:[%s3945_s1 + $0x2f0] sm:$0xff]  }
  0x78   : >> { %3021 = vmatpush3.bf16.msra.mxu0 %v3290_v26  ;;  %v3333_v26 = vld [vmem:[%s3945_s1 + $0x2e8] sm:$0xff]  }
  0x79   : >> { %3041 = vmatpush3.bf16.msra.mxu1 %v3291_v27  ;;  %3022 = vmatprep.subr.bf16.mxu0 %v3292_v30  ;;  %v3793_v27 = vld [vmem:[%s3470_s21 + $0x24] sm:$0xff]  }
  0x7a   : >> { %3042 = vmatprep.subr.bf16.mxu1 %v3293_v31 }
  0x7c   : >> { %3023 = vmatpush3.bf16.msra.mxu0 %v3292_v30  ;;  %v3802_v30 = vld [vmem:[%s3470_s21 + $0x2c] ss:$0 sps:$4 sm:$0x33]  }
  0x7d   : >> { %3043 = vmatpush3.bf16.msra.mxu1 %v3293_v31  ;;  %3024 = vmatprep.subr.bf16.mxu0 %v3294_v32  ;;  %v1860_v31 = vshll.u32 %v3793_v27, 16 }
  0x7e   : >> { %3044 = vmatprep.subr.bf16.mxu1 %v3295_v33 }
  0x80   : >> { %3025 = vmatpush3.bf16.msra.mxu0 %v3294_v32  ;;  %v3336_v32 = vld [vmem:[%s3945_s1 + $0x2b8] sm:$0xff]  }
  0x81   : >> { %3045 = vmatpush3.bf16.msra.mxu1 %v3295_v33  ;;  %3026 = vmatprep.subr.bf16.mxu0 %v3296_v34  ;;  %v3337_v33 = vld [vmem:[%s3945_s1 + $0x2f8] sm:$0xff]  }
  0x82   : >> { %3046 = vmatprep.subr.bf16.mxu1 %v3297_v35 }
  0x84   : >> { %3027 = vmatpush3.bf16.msra.mxu0 %v3296_v34  ;;  %v1858_v34 = vshrl.u32 %v3793_v27, 16 }
  0x85   : >> { %3047 = vmatpush3.bf16.msra.mxu1 %v3297_v35  ;;  %3028 = vmatprep.subr.bf16.mxu0 %v3298_v36  ;;  %v1862_v35 = vrot.slane %v1860_v31, 1 }
  0x86   : >> { %3048 = vmatprep.subr.bf16.mxu1 %v3299_v37 }
  0x88   : >> { %3029 = vmatpush3.bf16.msra.mxu0 %v3298_v36  ;;  %v1865_v36 = vshll.u32 %v3802_v30, 16 }
  0x89   : >> { %3049 = vmatpush3.bf16.msra.mxu1 %v3299_v37  ;;  %3030 = vmatprep.subr.bf16.mxu0 %v3300_v39  ;;  %v3338_v37 = vld [vmem:[%s3945_s1 + $0x300] sm:$0xff]  }
  0x8a   : >> { %3050 = vmatprep.subr.bf16.mxu1 %v3301_v40 }
  0x8c   : >> { %3031 = vmatpush3.bf16.msra.mxu0 %v3300_v39  ;;  %v1863_v39 = vor.u32 %v1862_v35, %v1858_v34 }
  0x8d   : >> { %3051 = vmatpush3.bf16.msra.mxu1 %v3301_v40  ;;  %3032 = vmatprep.subr.bf16.mxu0 %v3302_v43  ;;  %v1867_v40 = vrot.slane %v1865_v36, 1 }
  0x8e   : >> { %3052 = vmatprep.subr.bf16.mxu1 %v3303_v44 }
  0x90   : >> { %3033 = vmatpush3.bf16.msra.mxu0 %v3302_v43  ;;  %v3341_v43 = vld [vmem:[%s3945_s1 + $0x348] sm:$0xff]  }
  0x91   : >> { %3053 = vmatpush3.bf16.msra.mxu1 %v3303_v44  ;;  %3058 = vmatprep.subr.bf16.mxu0 %v3304_v48  ;;  %v1868_v44 = vsel %vm226_vm0, %v1863_v39, %v1867_v40 }
  0x92   : >> { %3078 = vmatprep.subr.bf16.mxu1 %v3305_v49 }
  0x93   : >> { %3035 = vmatmul.mubr.bf16.vlgmr.msra.gmra.mrb[12].mxu0 %v968_v23  ;;  %v3330_v23 = vld [vmem:[%s3945_s1 + $0x2a0] sm:$0xff]  }
  0x94   : >> { %3055 = vmatmul.mubr.bf16.vlgmr.msra.gmra.mrb[12].mxu1 %v3624_v19  ;;  %3059 = vmatpush3.bf16.msra.mxu0 %v3304_v48  ;;  %v3326_v19 = vld [vmem:[%s3945_s1 + $0x290] sm:$0xff]   ;;  %v3346_v48 = vld [vmem:[%s3945_s1 + $0x320] sm:$0xff]  }
  0x95   : >> { %3079 = vmatpush3.bf16.msra.mxu1 %v3305_v49  ;;  %3060 = vmatprep.subr.bf16.mxu0 %v3306_v53  ;;  %v3347_v49 = vld [vmem:[%s3945_s1 + $0x360] sm:$0xff]  }
  0x96   : >> { %3080 = vmatprep.subr.bf16.mxu1 %v3307_v54  ;;  %3074 = vmatprep.mubr.bf16.mxu0 %v3668_v38  ;;  %v3339_v38 = vld [vmem:[%s3945_s1 + $0x340] sm:$0xff]  }
  0x97   : >> { %3094 = vmatprep.mubr.bf16.mxu1 %v1357_v55  ;;  %v3352_v55 = vld [vmem:[%s3945_s1 + $0x338] sm:$0xff]  }
  0x98   : >> { %3061 = vmatpush3.bf16.msra.mxu0 %v3306_v53  ;;  %v3350_v53 = vld [vmem:[%s3945_s1 + $0x330] sm:$0xff]  }
  0x99   : >> { %3081 = vmatpush3.bf16.msra.mxu1 %v3307_v54  ;;  %3062 = vmatprep.subr.bf16.mxu0 %v3308_v56  ;;  %v3351_v54 = vld [vmem:[%s3945_s1 + $0x370] sm:$0xff]  }
  0x9a   : >> { %3082 = vmatprep.subr.bf16.mxu1 %v3309_v57 }
  0x9c   : >> { %3063 = vmatpush3.bf16.msra.mxu0 %v3308_v56  ;;  %v3353_v56 = vld [vmem:[%s3945_s1 + $0x378] sm:$0xff]  }
  0x9d   : >> { %3083 = vmatpush3.bf16.msra.mxu1 %v3309_v57  ;;  %3064 = vmatprep.subr.bf16.mxu0 %v3310_v52  ;;  %v1869_v57 = vshrl.u32 %v3802_v30, 16 }
  0x9e   : >> { %3084 = vmatprep.subr.bf16.mxu1 %v3311_v58 }
  0xa0   : >> { %3065 = vmatpush3.bf16.msra.mxu0 %v3310_v52  ;;  %v2110_v52 = vrot.slane %v1858_v34, 1 }
  0xa1   : >> { %3085 = vmatpush3.bf16.msra.mxu1 %v3311_v58  ;;  %3066 = vmatprep.subr.bf16.mxu0 %v3312_v59  ;;  %v2111_v58 = vrot.slane %v1860_v31, 2 }
  0xa2   : >> { %3086 = vmatprep.subr.bf16.mxu1 %v3313_v60 }
  0xa4   : >> { %3067 = vmatpush3.bf16.msra.mxu0 %v3312_v59  ;;  %v3871_v59 = vrot.slane %v1869_v57, 1 }
  0xa5   : >> { %3087 = vmatpush3.bf16.msra.mxu1 %v3313_v60  ;;  %3068 = vmatprep.subr.bf16.mxu0 %v3314_v61  ;;  %v2114_v60 = vrot.slane %v1865_v36, 2 }
  0xa6   : >> { %3088 = vmatprep.subr.bf16.mxu1 %v3315_v62 }
  0xa8   : >> { %3069 = vmatpush3.bf16.msra.mxu0 %v3314_v61  ;;  %v3356_v61 = vld [vmem:[%s3945_s1 + $0x380] sm:$0xff]  }
  0xa9   : >> { %3089 = vmatpush3.bf16.msra.mxu1 %v3315_v62  ;;  %3070 = vmatprep.subr.bf16.mxu0 %v3316_v63  ;;  %v3357_v62 = vld [vmem:[%s3945_s1 + $0x3c0] sm:$0xff]  }
  0xaa   : >> { %3090 = vmatprep.subr.bf16.mxu1 %v3317_v1 }
  0xac   : >> { %3071 = vmatpush3.bf16.msra.mxu0 %v3316_v63  ;;  %v1989_v63 = vrot.slane %v3793_v27, 1 }
  0xad   : >> { %3091 = vmatpush3.bf16.msra.mxu1 %v3317_v1  ;;  %3072 = vmatprep.subr.bf16.mxu0 %v3318_v2  ;;  %v1990_v1 = vrot.slane %v3802_v30, 1 }
  0xae   : >> { %3092 = vmatprep.subr.bf16.mxu1 %v3319_v3 }
  0xaf   : >> { %v1991_v6 = vsel %vm454_vm1, %v1989_v63, %v1990_v1 }
  0xb0   : >> { %3073 = vmatpush3.bf16.msra.mxu0 %v3318_v2  ;;  %v2112_v2 = vor.u32 %v2111_v58, %v2110_v52 }
  0xb1   : >> { %3093 = vmatpush3.bf16.msra.mxu1 %v3319_v3  ;;  %3098 = vmatprep.subr.bf16.mxu0 %v3322_v9  ;;  %v2115_v3 = vor.u32 %v2114_v60, %v3871_v59 }
  0xb2   : >> { %3118 = vmatprep.subr.bf16.mxu1 %v3323_v10 }
  0xb3   : >> { %3075 = vmatmul.mubr.bf16.vlgmr.msra.gmra.mrb[16].mxu0 %v3677_v41  ;;  %v3344_v41 = vld [vmem:[%s3945_s1 + $0x318] sm:$0xff]  }
  0xb4   : >> { %3095 = vmatmul.mubr.bf16.vlgmr.msra.gmra.mrb[16].mxu1 %v1358_v4  ;;  %3099 = vmatpush3.bf16.msra.mxu0 %v3322_v9  ;;  %v3358_v4 = vld [vmem:[%s3945_s1 + $0x388] sm:$0xff]   ;;  %v3361_v9 = vld [vmem:[%s3945_s1 + $0x3d0] sm:$0xff]  }
  0xb5   : >> { %3119 = vmatpush3.bf16.msra.mxu1 %v3323_v10  ;;  %3100 = vmatprep.subr.bf16.mxu0 %v3324_v15  ;;  %v3362_v10 = vld [vmem:[%s3945_s1 + $0x398] sm:$0xff]  }
  0xb6   : >> { %3120 = vmatprep.subr.bf16.mxu1 %v3325_v16  ;;  %3114 = vmatprep.mubr.bf16.mxu0 %v1480_v17 }
  0xb7   : >> { %3134 = vmatprep.mubr.bf16.mxu1 %v1605_v18  ;;  %v3369_v18 = vld [vmem:[%s3945_s1 + $0x3f0] sm:$0xff]  }
  0xb8   : >> { %3101 = vmatpush3.bf16.msra.mxu0 %v3324_v15  ;;  %v3367_v15 = vld [vmem:[%s3945_s1 + $0x3e8] sm:$0xff]  }
  0xb9   : >> { %3121 = vmatpush3.bf16.msra.mxu1 %v3325_v16  ;;  %3102 = vmatprep.subr.bf16.mxu0 %v3326_v19  ;;  %v3368_v16 = vld [vmem:[%s3945_s1 + $0x3b0] sm:$0xff]  }
  0xba   : >> { %3122 = vmatprep.subr.bf16.mxu1 %v3327_v20 }
  0xbc   : >> { %3103 = vmatpush3.bf16.msra.mxu0 %v3326_v19 }
  0xbd   : >> { %3123 = vmatpush3.bf16.msra.mxu1 %v3327_v20  ;;  %3104 = vmatprep.subr.bf16.mxu0 %v3328_v21 }
  0xbe   : >> { %3124 = vmatprep.subr.bf16.mxu1 %v3329_v22 }
  0xc0   : >> { %3105 = vmatpush3.bf16.msra.mxu0 %v3328_v21 }
  0xc1   : >> { %3125 = vmatpush3.bf16.msra.mxu1 %v3329_v22  ;;  %3106 = vmatprep.subr.bf16.mxu0 %v3330_v23 }
  0xc2   : >> { %3126 = vmatprep.subr.bf16.mxu1 %v3331_v24 }
  0xc4   : >> { %3107 = vmatpush3.bf16.msra.mxu0 %v3330_v23 }
  0xc5   : >> { %3127 = vmatpush3.bf16.msra.mxu1 %v3331_v24  ;;  %3108 = vmatprep.subr.bf16.mxu0 %v3332_v25 }
  0xc6   : >> { %3128 = vmatprep.subr.bf16.mxu1 %v3333_v26 }
  0xc8   : >> { %3109 = vmatpush3.bf16.msra.mxu0 %v3332_v25 }
  0xc9   : >> { %3129 = vmatpush3.bf16.msra.mxu1 %v3333_v26  ;;  %3110 = vmatprep.subr.bf16.mxu0 %v3334_v28 }
  0xca   : >> { %3130 = vmatprep.subr.bf16.mxu1 %v3335_v29 }
  0xcc   : >> { %3111 = vmatpush3.bf16.msra.mxu0 %v3334_v28 }
  0xcd   : >> { %3131 = vmatpush3.bf16.msra.mxu1 %v3335_v29  ;;  %3112 = vmatprep.subr.bf16.mxu0 %v3336_v32  ;;  %v3371_v29 = vld [vmem:[%s3945_s1 + $0x3f8] sm:$0xff]  }
  0xce   : >> { %3132 = vmatprep.subr.bf16.mxu1 %v3337_v33 }
  0xd0   : >> { %3113 = vmatpush3.bf16.msra.mxu0 %v3336_v32 }
  0xd1   : >> { %3133 = vmatpush3.bf16.msra.mxu1 %v3337_v33  ;;  %3138 = vmatprep.subr.bf16.mxu0 %v3338_v37 }
  0xd2   : >> { %3158 = vmatprep.subr.bf16.mxu1 %v3339_v38 }
  0xd3   : >> { %3115 = vmatmul.mubr.bf16.vlgmr.msra.gmra.mrb[20].mxu0 %v1479_v12  ;;  %v3364_v12 = vld [vmem:[%s3945_s1 + $0x3a0] sm:$0xff]  }
  0xd4   : >> { %3135 = vmatmul.mubr.bf16.vlgmr.msra.gmra.mrb[20].mxu1 %v3746_v7  ;;  %3139 = vmatpush3.bf16.msra.mxu0 %v3338_v37  ;;  %v2116_v7 = vsel %vm576_vm2, %v2112_v2, %v2115_v3 }
  0xd5   : >> { %3159 = vmatpush3.bf16.msra.mxu1 %v3339_v38  ;;  %3140 = vmatprep.subr.bf16.mxu0 %v3340_v42 }
  0xd6   : >> { %3160 = vmatprep.subr.bf16.mxu1 %v3341_v43  ;;  %3154 = vmatprep.mubr.bf16.mxu0 %v3793_v27  ;;  %v3370_v27 = vld [vmem:[%s3945_s1 + $0x3b8] sm:$0xff]  }
  0xd7   : >> { %3174 = vmatprep.mubr.bf16.mxu1 %v1868_v44 }
  0xd8   : >> { %3141 = vmatpush3.bf16.msra.mxu0 %v3340_v42 }
  0xd9   : >> { %3161 = vmatpush3.bf16.msra.mxu1 %v3341_v43  ;;  %3142 = vmatprep.subr.bf16.mxu0 %v3342_v45 }
  0xda   : >> { %3162 = vmatprep.subr.bf16.mxu1 %v3343_v46 }
  0xdc   : >> { %3143 = vmatpush3.bf16.msra.mxu0 %v3342_v45 }
  0xdd   : >> { %3163 = vmatpush3.bf16.msra.mxu1 %v3343_v46  ;;  %3144 = vmatprep.subr.bf16.mxu0 %v3344_v41 }
  0xde   : >> { %3164 = vmatprep.subr.bf16.mxu1 %v3345_v47 }
  0xe0   : >> { %3145 = vmatpush3.bf16.msra.mxu0 %v3344_v41 }
  0xe1   : >> { %3165 = vmatpush3.bf16.msra.mxu1 %v3345_v47  ;;  %3146 = vmatprep.subr.bf16.mxu0 %v3346_v48 }
  0xe2   : >> { %3166 = vmatprep.subr.bf16.mxu1 %v3347_v49 }
  0xe4   : >> { %3147 = vmatpush3.bf16.msra.mxu0 %v3346_v48 }
  0xe5   : >> { %3167 = vmatpush3.bf16.msra.mxu1 %v3347_v49  ;;  %3148 = vmatprep.subr.bf16.mxu0 %v3348_v50 }
  0xe6   : >> { %3168 = vmatprep.subr.bf16.mxu1 %v3349_v51 }
  0xe8   : >> { %3149 = vmatpush3.bf16.msra.mxu0 %v3348_v50 }
  0xe9   : >> { %3169 = vmatpush3.bf16.msra.mxu1 %v3349_v51  ;;  %3150 = vmatprep.subr.bf16.mxu0 %v3350_v53 }
  0xea   : >> { %3170 = vmatprep.subr.bf16.mxu1 %v3351_v54 }
  0xec   : >> { %3151 = vmatpush3.bf16.msra.mxu0 %v3350_v53 }
  0xed   : >> { %3171 = vmatpush3.bf16.msra.mxu1 %v3351_v54  ;;  %3152 = vmatprep.subr.bf16.mxu0 %v3352_v55 }
  0xee   : >> { %3172 = vmatprep.subr.bf16.mxu1 %v3353_v56 }
  0xf0   : >> { %3153 = vmatpush3.bf16.msra.mxu0 %v3352_v55 }
  0xf1   : >> { %3173 = vmatpush3.bf16.msra.mxu1 %v3353_v56  ;;  %3178 = vmatprep.subr.bf16.mxu0 %v3356_v61 }
  0xf2   : >> { %3198 = vmatprep.subr.bf16.mxu1 %v3357_v62 }
  0xf3   : >> { %3155 = vmatmul.mubr.bf16.vlgmr.msra.gmra.mrb[24].mxu0 %v3802_v30 }
  0xf4   : >> { %3175 = vmatmul.mubr.bf16.vlgmr.msra.gmra.mrb[24].mxu1 %v1869_v57  ;;  %3179 = vmatpush3.bf16.msra.mxu0 %v3356_v61 }
  0xf5   : >> { %3199 = vmatpush3.bf16.msra.mxu1 %v3357_v62  ;;  %3180 = vmatprep.subr.bf16.mxu0 %v3358_v4 }
  0xf6   : >> { %3200 = vmatprep.subr.bf16.mxu1 %v3359_v5  ;;  %3194 = vmatprep.mubr.bf16.mxu0 %v1991_v6 }
  0xf7   : >> { %3214 = vmatprep.mubr.bf16.mxu1 %v2116_v7 }
  0xf8   : >> { %3181 = vmatpush3.bf16.msra.mxu0 %v3358_v4 }
  0xf9   : >> { %3201 = vmatpush3.bf16.msra.mxu1 %v3359_v5  ;;  %3182 = vmatprep.subr.bf16.mxu0 %v3360_v8 }
  0xfa   : >> { %3202 = vmatprep.subr.bf16.mxu1 %v3361_v9 }
  0xfc   : >> { %3183 = vmatpush3.bf16.msra.mxu0 %v3360_v8 }
  0xfd   : >> { %3203 = vmatpush3.bf16.msra.mxu1 %v3361_v9  ;;  %3184 = vmatprep.subr.bf16.mxu0 %v3362_v10 }
  0xfe   : >> { %3204 = vmatprep.subr.bf16.mxu1 %v3363_v11 }
 0x100   : >> { %3185 = vmatpush3.bf16.msra.mxu0 %v3362_v10 }
 0x101   : >> { %3205 = vmatpush3.bf16.msra.mxu1 %v3363_v11  ;;  %3186 = vmatprep.subr.bf16.mxu0 %v3364_v12 }
 0x102   : >> { %3206 = vmatprep.subr.bf16.mxu1 %v3365_v13 }
 0x104   : >> { %3187 = vmatpush3.bf16.msra.mxu0 %v3364_v12 }
 0x105   : >> { %3207 = vmatpush3.bf16.msra.mxu1 %v3365_v13  ;;  %3188 = vmatprep.subr.bf16.mxu0 %v3366_v14 }
 0x106   : >> { %v2916_v17 = vpop.f32.mrb[0].mxu0  ;;  %3208 = vmatprep.subr.bf16.mxu1 %v3367_v15 }
 0x107   : >> { %v2936_v19 = vpop.f32.mrb[0].mxu1  ;;  %v325_v20 = vpop.f32.mrb[1].mxu0 }
 0x108   : >> { %v432_v21 = vadd.f32 %v2936_v19, %v2916_v17  ;;  %v423_v22 = vpop.f32.mrb[1].mxu1  ;;  %v2917_v23 = vpop.f32.mrb[2].mxu0  ;;  %3189 = vmatpush3.bf16.msra.mxu0 %v3366_v14 }
 0x109   : >> { %v424_v24 = vadd.f32 %v423_v22, %v325_v20  ;;  %v2937_v25 = vpop.f32.mrb[2].mxu1  ;;  %3209 = vmatpush3.bf16.msra.mxu1 %v3367_v15  ;;  %v328_v26 = vpop.f32.mrb[3].mxu0  ;;  %3190 = vmatprep.subr.bf16.mxu0 %v3368_v16 }
 0x10a   : >> { %v426_v28 = vpop.f32.mrb[3].mxu1  ;;  %3210 = vmatprep.subr.bf16.mxu1 %v3369_v18 }
 0x10b   : >> { %v427_v31 = vadd.f32 %v426_v28, %v328_v26 }
 0x10c   : >> { %3191 = vmatpush3.bf16.msra.mxu0 %v3368_v16 }
 0x10d   : >> { %3211 = vmatpush3.bf16.msra.mxu1 %v3369_v18  ;;  %3192 = vmatprep.subr.bf16.mxu0 %v3370_v27 }
 0x10e   : >> { %3212 = vmatprep.subr.bf16.mxu1 %v3371_v29 }
 0x110   : >> { %3193 = vmatpush3.bf16.msra.mxu0 %v3370_v27 }
 0x111   : >> { %3213 = vmatpush3.bf16.msra.mxu1 %v3371_v29 }
 0x113   : >> { %3195 = vmatmul.mubr.bf16.vlgmr.msra.gmra.mrb[28].mxu0 %v1990_v1 }
 0x114   : >> { %3215 = vmatmul.mubr.bf16.vlgmr.msra.gmra.mrb[28].mxu1 %v3871_v59 }
 0x126   : >> { %v2956_v32 = vpop.f32.mrb[4].mxu0 }
 0x127   : >> { %v558_v33 = vadd.f32 %v2956_v32, %v432_v21  ;;  %v2976_v34 = vpop.f32.mrb[4].mxu1  ;;  %v542_v35 = vpop.f32.mrb[5].mxu0 }
 0x128   : >> { %v556_v36 = vadd.f32 %v542_v35, %v424_v24  ;;  %v668_v37 = vpop.f32.mrb[5].mxu1  ;;  %v2957_v38 = vpop.f32.mrb[6].mxu0 }
 0x129   : >> { %v684_v39 = vadd.f32 %v2976_v34, %v558_v33  ;;  %v2977_v40 = vpop.f32.mrb[6].mxu1  ;;  %v545_v42 = vpop.f32.mrb[7].mxu0 }
 0x12a   : >> { %v682_v43 = vadd.f32 %v668_v37, %v556_v36  ;;  %v557_v44 = vadd.f32 %v545_v42, %v427_v31  ;;  %v671_v45 = vpop.f32.mrb[7].mxu1 }
 0x12c   : >> { %v683_v46 = vadd.f32 %v671_v45, %v557_v44 }
 0x146   : >> { %v2996_v41 = vpop.f32.mrb[8].mxu0 }
 0x147   : >> { %v817_v47 = vadd.f32 %v2996_v41, %v684_v39  ;;  %v3016_v30 = vpop.f32.mrb[8].mxu1  ;;  %v801_v48 = vpop.f32.mrb[9].mxu0 }
 0x148   : >> { %v815_v49 = vadd.f32 %v801_v48, %v682_v43  ;;  %v933_v50 = vpop.f32.mrb[9].mxu1  ;;  %v2997_v51 = vpop.f32.mrb[10].mxu0 }
 0x149   : >> { %v949_v53 = vadd.f32 %v3016_v30, %v817_v47  ;;  %v3017_v54 = vpop.f32.mrb[10].mxu1  ;;  %v804_v55 = vpop.f32.mrb[11].mxu0 }
 0x14a   : >> { %v947_v56 = vadd.f32 %v933_v50, %v815_v49  ;;  %v816_v57 = vadd.f32 %v804_v55, %v683_v46  ;;  %v936_v52 = vpop.f32.mrb[11].mxu1 }
 0x14c   : >> { %v948_v58 = vadd.f32 %v936_v52, %v816_v57 }
 0x166   : >> { %v3036_v59 = vpop.f32.mrb[12].mxu0 }
 0x167   : >> { %v1070_v60 = vadd.f32 %v3036_v59, %v949_v53  ;;  %v3056_v61 = vpop.f32.mrb[12].mxu1  ;;  %v1054_v62 = vpop.f32.mrb[13].mxu0 }
 0x168   : >> { %v1068_v63 = vadd.f32 %v1054_v62, %v947_v56  ;;  %v1179_v1 = vpop.f32.mrb[13].mxu1  ;;  %v3037_v2 = vpop.f32.mrb[14].mxu0 }
 0x169   : >> { %v1195_v3 = vadd.f32 %v3056_v61, %v1070_v60  ;;  %v3057_v4 = vpop.f32.mrb[14].mxu1  ;;  %v1057_v5 = vpop.f32.mrb[15].mxu0 }
 0x16a   : >> { %v1193_v6 = vadd.f32 %v1179_v1, %v1068_v63  ;;  %v1069_v7 = vadd.f32 %v1057_v5, %v948_v58  ;;  %v1182_v8 = vpop.f32.mrb[15].mxu1 }
 0x16c   : >> { %v1194_v9 = vadd.f32 %v1182_v8, %v1069_v7 }
 0x186   : >> { %v3076_v10 = vpop.f32.mrb[16].mxu0 }
 0x187   : >> { %v1328_v11 = vadd.f32 %v3076_v10, %v1195_v3  ;;  %v3096_v12 = vpop.f32.mrb[16].mxu1  ;;  %v1312_v13 = vpop.f32.mrb[17].mxu0 }
 0x188   : >> { %v1326_v14 = vadd.f32 %v1312_v13, %v1193_v6  ;;  %v1444_v15 = vpop.f32.mrb[17].mxu1  ;;  %v3077_v16 = vpop.f32.mrb[18].mxu0 }
 0x189   : >> { %v1460_v17 = vadd.f32 %v3096_v12, %v1328_v11  ;;  %v3097_v18 = vpop.f32.mrb[18].mxu1  ;;  %v1315_v19 = vpop.f32.mrb[19].mxu0 }
 0x18a   : >> { %v1458_v20 = vadd.f32 %v1444_v15, %v1326_v14  ;;  %v1327_v21 = vadd.f32 %v1315_v19, %v1194_v9  ;;  %v1447_v22 = vpop.f32.mrb[19].mxu1  ;;  %v2257_v9 = vld [vmem:[%s2250_s26 + $0x8] sm:$0x1] }
 0x18c   : >> { %v1459_v23 = vadd.f32 %v1447_v22, %v1327_v21 }
 0x1a6   : >> { %v3116_v24 = vpop.f32.mrb[20].mxu0 }
 0x1a7   : >> { %v1581_v25 = vadd.f32 %v3116_v24, %v1460_v17  ;;  %v3136_v26 = vpop.f32.mrb[20].mxu1  ;;  %v1565_v27 = vpop.f32.mrb[21].mxu0 }
 0x1a8   : >> { %v1579_v28 = vadd.f32 %v1565_v27, %v1458_v20  ;;  %v1690_v29 = vpop.f32.mrb[21].mxu1  ;;  %v3117_v31 = vpop.f32.mrb[22].mxu0 }
 0x1a9   : >> { %v1706_v32 = vadd.f32 %v3136_v26, %v1581_v25  ;;  %v3137_v33 = vpop.f32.mrb[22].mxu1  ;;  %v1568_v34 = vpop.f32.mrb[23].mxu0 }
 0x1aa   : >> { %v1704_v35 = vadd.f32 %v1690_v29, %v1579_v28  ;;  %v1580_v36 = vadd.f32 %v1568_v34, %v1459_v23  ;;  %v1693_v37 = vpop.f32.mrb[23].mxu1 }
 0x1ac   : >> { %v1705_v38 = vadd.f32 %v1693_v37, %v1580_v36 }
 0x1c6   : >> { %v3156_v39 = vpop.f32.mrb[24].mxu0 }
 0x1c7   : >> { %v1839_v40 = vadd.f32 %v3156_v39, %v1706_v32  ;;  %v3176_v42 = vpop.f32.mrb[24].mxu1  ;;  %v1823_v43 = vpop.f32.mrb[25].mxu0 }
 0x1c8   : >> { %v1837_v44 = vadd.f32 %v1823_v43, %v1704_v35  ;;  %v1955_v45 = vpop.f32.mrb[25].mxu1  ;;  %v3157_v46 = vpop.f32.mrb[26].mxu0 }
 0x1c9   : >> { %v1971_v41 = vadd.f32 %v3176_v42, %v1839_v40  ;;  %v3177_v47 = vpop.f32.mrb[26].mxu1  ;;  %v1826_v30 = vpop.f32.mrb[27].mxu0 }
 0x1ca   : >> { %v1969_v48 = vadd.f32 %v1955_v45, %v1837_v44  ;;  %v1838_v49 = vadd.f32 %v1826_v30, %v1705_v38  ;;  %v1958_v50 = vpop.f32.mrb[27].mxu1 }
 0x1cc   : >> { %v1970_v51 = vadd.f32 %v1958_v50, %v1838_v49 }
 0x1e6   : >> { %v3196_v53 = vpop.f32.mrb[28].mxu0 }
 0x1e7   : >> { %v2092_v54 = vadd.f32 %v3196_v53, %v1971_v41  ;;  %v3216_v55 = vpop.f32.mrb[28].mxu1  ;;  %v2076_v56 = vpop.f32.mrb[29].mxu0 }
 0x1e8   : >> { %v2090_v57 = vadd.f32 %v2076_v56, %v1969_v48  ;;  %v2201_v52 = vpop.f32.mrb[29].mxu1  ;;  %v3197_v58 = vpop.f32.mrb[30].mxu0 }
 0x1e9   : >> { %v2217_v59 = vadd.f32 %v3216_v55, %v2092_v54  ;;  %v3217_v60 = vpop.f32.mrb[30].mxu1  ;;  %v2079_v61 = vpop.f32.mrb[31].mxu0 }
 0x1ea   : >> { %v2215_v62 = vadd.f32 %v2201_v52, %v2090_v57  ;;  %v2091_v63 = vadd.f32 %v2079_v61, %v1970_v51  ;;  %v2204_v1 = vpop.f32.mrb[31].mxu1 }
 0x1eb   : >> { %v2226_v2 = vadd.f32 %v3419_v0, %v2217_v59 }
 0x1ec   : >> { %v2224_v3 = vadd.f32 %v3419_v0, %v2215_v62  ;;  %v2216_v4 = vadd.f32 %v2204_v1, %v2091_v63 }
 0x1ed   : >> { %vm2229_vm5 = vcmp.ge.f32.partialorder %v2226_v2, 0.0  ;;  %v2232_v5 = vmul.f32 0.01, %v2226_v2 }
 0x1ee   : >> { %vm2227_vm6 = vcmp.ge.f32.partialorder %v2224_v3, 0.0  ;;  %v2230_v6 = vmul.f32 0.01, %v2224_v3  ;;  %v2225_v7 = vadd.f32 %v3419_v0, %v2216_v4 }
 0x1ef   : >> { %v2235_v8 = vsel %vm2229_vm5, %v2226_v2, %v2232_v5  ;;  %177 = sbr.rel (!%p175_p4) target bundleno = 18 (0x12), region = 89 }
 0x1f0   : >> { %v2736_v10 = vpack.c.bf16 %v2235_v8, %v2235_v8  ;;  %v2233_v11 = vsel %vm2227_vm6, %v2224_v3, %v2230_v6  ;;  %vm2228_vm9 = vcmp.ge.f32.partialorder %v2225_v7, 0.0  ;;  %v2231_v12 = vmul.f32 0.01, %v2225_v7 }
 0x1f1   : >> { %v2734_v13 = vpack.c.bf16 %v2233_v11, %v2233_v11 }
 0x1f2   : >> { %v2258_v14 = vsel %vm2256_vm7, %v2736_v10, %v2257_v9  ;;  %v2234_v15 = vsel %vm2228_vm9, %v2225_v7, %v2231_v12 }
 0x1f3   : >> { %2259 = vst [vmem:[%s2250_s26 + $0x8] sm:$0x1] %v2258_v14  ;;  %2252 = vst.msk [vmem:[%s2250_s26] sm:$0xf] %vm2251_vm8, %v2734_v13  ;;  %v2735_v16 = vpack.c.bf16 %v2234_v15, %v2234_v15 }
 0x1f5   : >> { %2253 = vst.msk [vmem:[%s2250_s26 + $0x4] sm:$0xf] %vm2251_vm8, %v2735_v16 }
 0x1f6 PF: > { %s13_s12 = sadd.s32 1, %s3382_s12  }
 0x1f7   : > { %p10_p5 = scmp.ge.s32.totalorder %s13_s12, 4  }
 0x1f9   :  { %12 = sbr.rel (!%p10_p5) target bundleno = 1 (0x1), region = 100 }

// kernel: squeeze.1
= control target key start
LH: loop header
LB: loop body
LE: loop exit
PB: predicated region body
PF: predicated region fallthrough
CT: control target
= control target key end

     0   :  { %s74_s10 = smov 12  ;;  %s99_s11 = smov 3  ;;  %vm76_vm0 = vcmask 1043458   ;;  %vm66_vm1 = vcmask 130048   ;;  %vm80_vm2 = vcmask 1048448   ;;  %vm94_vm3 = vcmask 917248   ;;  %s242_s0 = inlined_call_operand.vmem [shape: bf16[2,16,16], index: 0, kind: input, shape index: {}]   ;;  %s243_s1 = inlined_call_operand.vmem [shape: bf16[2,256], index: 1, kind: output, shape index: {}]  }
   0x1   :  { %v196_v0 = vld [vmem:[%s242_s0 + $0x8] sm:$0xff]   ;;  %v193_v1 = vld [vmem:[%s242_s0] sm:$0xff]   ;;  %s71_s0 = smov 3  ;;  %s102_s12 = smov 12  ;;  %vm108_vm4 = vcmask 786048   ;;  %vm122_vm5 = vcmask 654848  }
   0x2   :  { %v190_v2 = vunpack.c.l.bf16 %v196_v0  ;;  %v191_v3 = vunpack.c.h.bf16 %v196_v0  ;;  %v194_v4 = vunpack.c.l.bf16 %v193_v1  ;;  %v195_v5 = vunpack.c.h.bf16 %v193_v1  ;;  %s85_s13 = smov 3  ;;  %s88_s14 = smov 12 }
   0x3   :  { %s113_s15 = smov 3  ;;  %s116_s16 = smov 12  ;;  %vm136_vm6 = vcmask 523648   ;;  %vm150_vm7 = vcmask 392448   ;;  %vm164_vm8 = vcmask 261248   ;;  %v212_v37 = vmov 0.0  }
   0x4   :  { %20 = vst [vmem:[#allocation1 + $0x18] sm:$0xff] %v191_v3  ;;  %36 = vst [vmem:[#allocation1 + $0x10] sm:$0xff] %v190_v2  ;;  %s127_s17 = smov 3  ;;  %s130_s18 = smov 12 }
   0x5   :  { %51 = vst [vmem:[#allocation1 + $0x8] sm:$0xff] %v195_v5  ;;  %64 = vst [vmem:[#allocation1] sm:$0xff] %v194_v4  ;;  %s141_s19 = smov 3  ;;  %s205_s20 = smov 112  }
   0x6   :  { %s144_s21 = smov 12  ;;  %s206_s22 = smov 80  }
   0x7   :  { %s155_s23 = smov 3  ;;  %s158_s24 = smov 12 }
   0x8   :  { %s207_s25 = smov 96   ;;  %s208_s26 = smov 64  }
   0x9   :  { %s209_s27 = smov 48   ;;  %s210_s28 = smov 32  }
   0xa   :  { %s211_s29 = smov 16  }
   0xc   :  { %v72_v6 = vld [vmem:[#allocation1 + $0x7] ss:$16 sm:%s71_s0]   ;;  %v75_v7 = vld [vmem:[#allocation1 - $0x11] ss:$16 sm:%s74_s10]   ;;  %v100_v8 = vld [vmem:[#allocation1 + $0x5] ss:$16 sm:%s99_s11]  }
   0xd   :  { %v77_v9 = vsel %vm76_vm0, %v75_v7, %v72_v6  ;;  %v103_v10 = vld [vmem:[#allocation1 - $0x13] ss:$16 sm:%s102_s12]   ;;  %v86_v11 = vld [vmem:[#allocation1 + $0x6] ss:$16 sm:%s85_s13]   ;;  %v89_v12 = vld [vmem:[#allocation1 - $0x12] ss:$16 sm:%s88_s14]  }
   0xe   :  { %78 = vrot.lane.b32.xlu0 %v77_v9, %s205_s20  ;;  %v105_v13 = vsel %vm76_vm0, %v103_v10, %v100_v8  ;;  %v114_v14 = vld [vmem:[#allocation1 + $0x4] ss:$16 sm:%s113_s15]   ;;  %v117_v15 = vld [vmem:[#allocation1 - $0x14] ss:$16 sm:%s116_s16]   ;;  %v91_v16 = vsel %vm76_vm0, %v89_v12, %v86_v11  ;;  %v128_v18 = vld [vmem:[#allocation1 + $0x3] ss:$16 sm:%s127_s17]  }
   0xf   :  { %106 = vrot.lane.b32.xlu1 %v105_v13, %s206_s22  ;;  %v119_v17 = vsel %vm76_vm0, %v117_v15, %v114_v14  ;;  %v131_v19 = vld [vmem:[#allocation1 - $0x15] ss:$16 sm:%s130_s18]   ;;  %v142_v20 = vld [vmem:[#allocation1 + $0x2] ss:$16 sm:%s141_s19]   ;;  %v145_v21 = vld [vmem:[#allocation1 - $0x16] ss:$16 sm:%s144_s21]  }
  0x10   :  { %v65_v22 = vld [vmem:[#allocation1] ss:$8 sm:$0xf]   ;;  %v133_v23 = vsel %vm76_vm0, %v131_v19, %v128_v18  ;;  %v147_v24 = vsel %vm76_vm0, %v145_v21, %v142_v20  ;;  %v156_v25 = vld [vmem:[#allocation1 + $0x1] ss:$16 sm:%s155_s23]  }
  0x11   :  { %67 = vst.msk [vmem:[#allocation0] ss:$8 sm:$0x3] %vm66_vm1, %v65_v22   ;;  %69 = vst.msk [vmem:[#allocation0 - $0xf] ss:$8 sm:$0xc] %vm66_vm1, %v65_v22  }
  0x12   :  { %92 = vrot.lane.b32.xlu0 %v91_v16, %s207_s25  ;;  %v159_v26 = vld [vmem:[#allocation1 - $0x17] ss:$16 sm:%s158_s24]  }
  0x13   :  { %120 = vrot.lane.b32.xlu1 %v119_v17, %s208_s26  ;;  %v161_v27 = vsel %vm76_vm0, %v159_v26, %v156_v25 }
  0x16   :  { %134 = vrot.lane.b32.xlu0 %v133_v23, %s209_s27 }
  0x17   :  { %148 = vrot.lane.b32.xlu1 %v147_v24, %s210_s28 }
  0x1a   :  { %162 = vrot.lane.b32.xlu0 %v161_v27, %s211_s29 }
  0x80   :  { %v79_v28 = vpop.permute.xlu0 %78  }
  0x81   :  { %81 = vst.msk [vmem:[#allocation0] sm:$0x3] %vm80_vm2, %v79_v28   ;;  %83 = vst.msk [vmem:[#allocation0 + $0x6] sm:$0xc] %vm80_vm2, %v79_v28   ;;  %v107_v29 = vpop.permute.xlu1 %106  }
  0x84   :  { %v93_v30 = vpop.permute.xlu0 %92  }
  0x85   :  { %95 = vst.msk [vmem:[#allocation0] sm:$0x3] %vm94_vm3, %v93_v30   ;;  %97 = vst.msk [vmem:[#allocation0 + $0x6] sm:$0xc] %vm94_vm3, %v93_v30   ;;  %v121_v31 = vpop.permute.xlu1 %120  }
  0x86   :  { %109 = vst.msk [vmem:[#allocation0] sm:$0x3] %vm108_vm4, %v107_v29   ;;  %111 = vst.msk [vmem:[#allocation0 + $0x6] sm:$0xc] %vm108_vm4, %v107_v29  }
  0x87   :  { %123 = vst.msk [vmem:[#allocation0] sm:$0x3] %vm122_vm5, %v121_v31   ;;  %125 = vst.msk [vmem:[#allocation0 + $0x6] sm:$0xc] %vm122_vm5, %v121_v31  }
  0x88   :  { %v135_v32 = vpop.permute.xlu0 %134  }
  0x89   :  { %137 = vst.msk [vmem:[#allocation0] sm:$0x3] %vm136_vm6, %v135_v32   ;;  %139 = vst.msk [vmem:[#allocation0 + $0x6] sm:$0xc] %vm136_vm6, %v135_v32   ;;  %v149_v33 = vpop.permute.xlu1 %148  }
  0x8a   :  { %151 = vst.msk [vmem:[#allocation0] sm:$0x3] %vm150_vm7, %v149_v33   ;;  %153 = vst.msk [vmem:[#allocation0 + $0x6] sm:$0xc] %vm150_vm7, %v149_v33  }
  0x8c   :  { %v163_v34 = vpop.permute.xlu0 %162  }
  0x8d   :  { %165 = vst.msk [vmem:[#allocation0] sm:$0x3] %vm164_vm8, %v163_v34   ;;  %167 = vst.msk [vmem:[#allocation0 + $0x6] sm:$0xc] %vm164_vm8, %v163_v34  }
  0x94   :  { %v172_v35 = vld [vmem:[#allocation0] sm:$0x3]  ;;  %v177_v36 = vld [vmem:[#allocation0 + $0x8] sm:$0x3] }
  0x95   :  { %v173_v38 = vpack.c.bf16 %v212_v37, %v172_v35  ;;  %v178_v39 = vpack.c.bf16 %v212_v37, %v177_v36 }
  0x97   :  { %175 = vst [vmem:[%s243_s1] sm:$0x1] %v173_v38  ;;  %187 = vst [vmem:[%s243_s1 + $0x1] sm:$0x1] %v178_v39 }

// kernel: center_speed_forward.7
= control target key start
LH: loop header
LB: loop body
LE: loop exit
PB: predicated region body
PF: predicated region fallthrough
CT: control target
= control target key end

     0   :  { %s1952_s12 = smov 0   ;;  %s2347_s0 = inlined_call_operand.vmem [shape: bf16[2,18,1,18,128], index: 0, kind: input, shape index: {}]   ;;  %s2348_s1 = inlined_call_operand.vmem [shape: bf16[9,128,8], index: 1, kind: input, shape index: {}]   ;;  %s2349_s2 = inlined_call_operand.vmem [shape: f32[1,8], index: 2, kind: input, shape index: {}]   ;;  %s2350_s3 = inlined_call_operand.vmem [shape: f32[2,16,16,8], index: 3, kind: output, shape index: {}]  }
   0x1 LB: > { %s1329_s13 = sadd.s32 4294967295, %s1924_s12   ;;  %p1333_p0 = scmp.ge.s32.totalorder %s1924_s12, 1  ;;  %s1924_s12 = sphi %s1952_s12, %s13_s12  }
   0x2   : > { %p137_p1 = scmp.lt.s32.totalorder %s1924_s12, 3 }
   0x4   : > { %p138_p2 = pnand %p1333_p0, %p137_p1 }
   0x5   : > { %p161_p3 = scmp.lt.s32.totalorder (!%p138_p2), %s1329_s13, 1  ;;  %v1963_v0 = vld [vmem:[%s2349_s2] ss:$0 sm:$0xff] (!%p138_p2)  ;;  %s1975_s24 = smov (!%p138_p2), 0  }
   0x6   : > { %141 = sbr.rel (%p138_p2) target bundleno = 397 (0x18d), region = 32 }
   0xd   : > { %s2352_s13 = smov (!%p161_p3, %s1329_s13), 1 }
   0xe   : > { %s1817_s16 = smul.u32 216, %s2352_s13  ;;  %s1554_s17 = sshll.u32 %s2352_s13, 8 }
   0xf   : > { %s1968_s20 = scalar_lea.vmem %s2350_s3, %s1554_s17 }
  0x10   : > { %s1973_s23 = scalar_lea.vmem %s2347_s0, %s1817_s16 }
  0x11 LB: >> { %v1836_v1 = vld [vmem:[%s2348_s1 + $0x40] sm:$0xff]   ;;  %v1930_v2 = vmov 0.0   ;;  %v1838_v4 = vld [vmem:[%s2348_s1 + $0x48] sm:$0xff]   ;;  %vm1931_vm0 = vmmov 0   ;;  %v1840_v6 = vld [vmem:[%s2348_s1 + $0x50] sm:$0xff]   ;;  %s1555_s13 = smul.u32 12, %s1928_s24  ;;  %s1928_s24 = sphi %s1975_s24, %s178_s24  }
  0x12   : >> { %1637 = vmatprep.subr.bf16.mxu0 %v1930_v2  ;;  %1657 = vmatprep.subr.bf16.mxu1 %v1930_v2  ;;  %v1837_v3 = vld [vmem:[%s2348_s1] sm:$0xff]   ;;  %v1839_v5 = vld [vmem:[%s2348_s1 + $0x8] sm:$0xff]   ;;  %v1841_v7 = vld [vmem:[%s2348_s1 + $0x10] sm:$0xff]   ;;  %vm226_vm1 = vsmask.f32 7424  ;;  %vm436_vm2 = vcmask 1046528  }
  0x13   : >> { %1638 = vmatpush3.bf16.msra.mxu0 %v1836_v1  ;;  %1653 = vmatprep.mubr.msk.bf16.mxu0 %vm1931_vm0, %v1930_v2  ;;  %v1842_v8 = vld [vmem:[%s2348_s1 + $0x58] sm:$0xff]   ;;  %v1844_v10 = vld [vmem:[%s2348_s1 + $0x60] sm:$0xff]   ;;  %s2021_s18 = scalar_lea.vmem %s1973_s23, %s1555_s13  ;;  %v1846_v14 = vld [vmem:[%s2348_s1 + $0x68] sm:$0xff]   ;;  %s1551_s8 = sshll.u32 %s1928_s24, 4  ;;  %vm1256_vm3 = vcmask 64512  }
  0x14   : >> { %1658 = vmatpush3.bf16.msra.mxu1 %v1837_v3  ;;  %1639 = vmatprep.subr.bf16.mxu0 %v1930_v2  ;;  %v1843_v9 = vld [vmem:[%s2348_s1 + $0x18] sm:$0xff]   ;;  %v1845_v11 = vld [vmem:[%s2348_s1 + $0x20] sm:$0xff]   ;;  %v2032_v13 = vld [vmem:[%s2021_s18 + $0x8] ss:$0 sps:$4 sm:$0x11]   ;;  %s1255_s9 = scalar_lea.vmem %s1968_s20, %s1551_s8  ;;  %s178_s24 = sadd.s32 1, %s1928_s24  }
  0x15   : >> { %1659 = vmatprep.subr.bf16.mxu1 %v1930_v2  ;;  %1673 = vmatprep.mubr.msk.bf16.mxu1 %vm1931_vm0, %v1930_v2  ;;  %v2029_v12 = vld [vmem:[%s2021_s18] sm:$0xff]   ;;  %v1847_v15 = vld [vmem:[%s2348_s1 + $0x28] sm:$0xff]   ;;  %v1848_v17 = vld [vmem:[%s2348_s1 + $0x70] sm:$0xff]   ;;  %v235_v20 = vshll.u32 %v2032_v13, 16  ;;  %v438_v52 = vrot.slane %v2032_v13, 1  ;;  %p175_p4 = scmp.ge.s32.totalorder %s178_s24, 16  }
  0x16   : >> { %v230_v16 = vshll.u32 %v2029_v12, 16  ;;  %v228_v18 = vshrl.u32 %v2029_v12, 16  ;;  %v1849_v21 = vld [vmem:[%s2348_s1 + $0x30] sm:$0xff]   ;;  %v1850_v22 = vld [vmem:[%s2348_s1 + $0x78] sm:$0xff]   ;;  %v1854_v27 = vld [vmem:[%s2348_s1 + $0x80] sm:$0xff]   ;;  %v437_v49 = vrot.slane %v2029_v12, 1 }
  0x17   : >> { %1640 = vmatpush3.bf16.msra.mxu0 %v1838_v4  ;;  %v1851_v23 = vld [vmem:[%s2348_s1 + $0x38] sm:$0xff]   ;;  %v237_v25 = vrot.slane %v235_v20, 1  ;;  %v1855_v28 = vld [vmem:[%s2348_s1 + $0xc0] sm:$0xff]   ;;  %v1856_v29 = vld [vmem:[%s2348_s1 + $0x88] sm:$0xff]  }
  0x18   : >> { %1660 = vmatpush3.bf16.msra.mxu1 %v1839_v5  ;;  %1641 = vmatprep.subr.bf16.mxu0 %v1930_v2  ;;  %v232_v19 = vrot.slane %v230_v16, 1  ;;  %v1857_v30 = vld [vmem:[%s2348_s1 + $0xc8] sm:$0xff]   ;;  %v1858_v31 = vld [vmem:[%s2348_s1 + $0x90] sm:$0xff]   ;;  %v1860_v33 = vld [vmem:[%s2348_s1 + $0x98] sm:$0xff]   ;;  %v439_v54 = vsel %vm436_vm2, %v437_v49, %v438_v52 }
  0x19   : >> { %1661 = vmatprep.subr.bf16.mxu1 %v1930_v2  ;;  %v1859_v32 = vld [vmem:[%s2348_s1 + $0xd0] sm:$0xff]   ;;  %v1861_v34 = vld [vmem:[%s2348_s1 + $0xd8] sm:$0xff]   ;;  %v1862_v37 = vld [vmem:[%s2348_s1 + $0xa0] sm:$0xff]  }
  0x1a   : >> { %v233_v24 = vor.u32 %v232_v19, %v228_v18  ;;  %v2099_v35 = vld [vmem:[%s2021_s18 + $0xc] sm:$0xff]   ;;  %v1863_v38 = vld [vmem:[%s2348_s1 + $0xe0] sm:$0xff]   ;;  %v2120_v43 = vld [vmem:[%s2021_s18 + $0x14] ss:$0 sps:$4 sm:$0x11]  }
  0x1b   : >> { %1642 = vmatpush3.bf16.msra.mxu0 %v1840_v6  ;;  %v676_v36 = vshll.u32 %v2099_v35, 16  ;;  %v674_v39 = vshrl.u32 %v2099_v35, 16  ;;  %v1864_v41 = vld [vmem:[%s2348_s1 + $0xa8] sm:$0xff]   ;;  %v681_v45 = vshll.u32 %v2120_v43, 16  ;;  %v1866_v46 = vld [vmem:[%s2348_s1 + $0xb0] sm:$0xff]   ;;  %v1868_v51 = vld [vmem:[%s2348_s1 + $0xb8] sm:$0xff]  }
  0x1c   : >> { %1662 = vmatpush3.bf16.msra.mxu1 %v1841_v7  ;;  %1643 = vmatprep.subr.bf16.mxu0 %v1930_v2  ;;  %v238_v26 = vsel %vm226_vm1, %v233_v24, %v237_v25  ;;  %v1865_v42 = vld [vmem:[%s2348_s1 + $0xe8] sm:$0xff]   ;;  %v1867_v47 = vld [vmem:[%s2348_s1 + $0xf0] sm:$0xff]   ;;  %v1869_v53 = vld [vmem:[%s2348_s1 + $0xf8] sm:$0xff]  }
  0x1d   : >> { %1663 = vmatprep.subr.bf16.mxu1 %v1930_v2  ;;  %v678_v40 = vrot.slane %v676_v36, 1  ;;  %v683_v48 = vrot.slane %v681_v45, 1  ;;  %v1870_v55 = vld [vmem:[%s2348_s1 + $0x100] sm:$0xff]   ;;  %v1873_v57 = vld [vmem:[%s2348_s1 + $0x108] sm:$0xff]   ;;  %v1875_v59 = vld [vmem:[%s2348_s1 + $0x110] sm:$0xff]  }
  0x1e   : >> { %v1872_v56 = vld [vmem:[%s2348_s1 + $0x140] sm:$0xff]   ;;  %v1874_v58 = vld [vmem:[%s2348_s1 + $0x148] sm:$0xff]   ;;  %v2171_v60 = vld [vmem:[%s2021_s18 + $0x18] sm:$0xff]  }
  0x1f   : >> { %1644 = vmatpush3.bf16.msra.mxu0 %v1842_v8  ;;  %v679_v44 = vor.u32 %v678_v40, %v674_v39  ;;  %v1876_v61 = vld [vmem:[%s2348_s1 + $0x150] sm:$0xff]   ;;  %v1906_v62 = vld [vmem:[%s2021_s18 + $0x20] ss:$0 sps:$4 sm:$0x11]   ;;  %v1031_v63 = vshrl.u32 %v2171_v60, 16  ;;  %v1033_v1 = vshll.u32 %v2171_v60, 16 }
  0x20   : >> { %1664 = vmatpush3.bf16.msra.mxu1 %v1843_v9  ;;  %1645 = vmatprep.subr.bf16.mxu0 %v1930_v2  ;;  %v1038_v3 = vshll.u32 %v1906_v62, 16  ;;  %v1877_v5 = vld [vmem:[%s2348_s1 + $0x118] sm:$0xff]   ;;  %v1151_v9 = vrot.slane %v2171_v60, 1  ;;  %v1882_v16 = vld [vmem:[%s2348_s1 + $0x168] sm:$0xff]   ;;  %v1884_v18 = vld [vmem:[%s2348_s1 + $0x170] sm:$0xff]  }
  0x21   : >> { %1665 = vmatprep.subr.bf16.mxu1 %v1930_v2  ;;  %v2134_v50 = vsel %vm226_vm1, %v679_v44, %v683_v48  ;;  %v1035_v4 = vrot.slane %v1033_v1, 1  ;;  %v1878_v7 = vld [vmem:[%s2348_s1 + $0x158] sm:$0xff]   ;;  %v1889_v25 = vld [vmem:[%s2348_s1 + $0x1c0] sm:$0xff]   ;;  %v1900_v36 = vld [vmem:[%s2348_s1 + $0x1b0] sm:$0xff]  }
  0x22   : >> { %v1040_v6 = vrot.slane %v1038_v3, 1  ;;  %v1885_v19 = vld [vmem:[%s2348_s1 + $0x138] sm:$0xff]   ;;  %v1905_v40 = vld [vmem:[%s2348_s1 + $0x200] sm:$0xff]   ;;  %v1911_v45 = vld [vmem:[%s2348_s1 + $0x228] sm:$0xff]  }
  0x23   : >> { %1646 = vmatpush3.bf16.msra.mxu0 %v1844_v10  ;;  %v1036_v8 = vor.u32 %v1035_v4, %v1031_v63  ;;  %v1152_v10 = vrot.slane %v1906_v62, 1  ;;  %v1886_v20 = vld [vmem:[%s2348_s1 + $0x178] sm:$0xff]   ;;  %v1910_v44 = vld [vmem:[%s2348_s1 + $0x220] sm:$0xff]  }
  0x24   : >> { %1666 = vmatpush3.bf16.msra.mxu1 %v1845_v11  ;;  %1647 = vmatprep.subr.bf16.mxu0 %v1930_v2  ;;  %v1903_v39 = vld [vmem:[%s2348_s1 + $0x1f8] sm:$0xff]  }
  0x25   : >> { %1667 = vmatprep.subr.bf16.mxu1 %v1930_v2  ;;  %v2191_v11 = vsel %vm226_vm1, %v1036_v8, %v1040_v6  ;;  %v2197_v13 = vsel %vm436_vm2, %v1151_v9, %v1152_v10 }
  0x27   : >> { %1648 = vmatpush3.bf16.msra.mxu0 %v1846_v14  ;;  %v1880_v14 = vld [vmem:[%s2348_s1 + $0x160] sm:$0xff]  }
  0x28   : >> { %1668 = vmatpush3.bf16.msra.mxu1 %v1847_v15  ;;  %1649 = vmatprep.subr.bf16.mxu0 %v1930_v2  ;;  %v1881_v15 = vld [vmem:[%s2348_s1 + $0x128] sm:$0xff]  }
  0x29   : >> { %1669 = vmatprep.subr.bf16.mxu1 %v1930_v2 }
  0x2b   : >> { %1650 = vmatpush3.bf16.msra.mxu0 %v1848_v17  ;;  %v1883_v17 = vld [vmem:[%s2348_s1 + $0x130] sm:$0xff]  }
  0x2c   : >> { %1670 = vmatpush3.bf16.msra.mxu1 %v1849_v21  ;;  %1651 = vmatprep.subr.bf16.mxu0 %v1930_v2  ;;  %v794_v21 = vrot.slane %v2099_v35, 1 }
  0x2d   : >> { %1671 = vmatprep.subr.bf16.mxu1 %v1930_v2 }
  0x2f   : >> { %1652 = vmatpush3.bf16.msra.mxu0 %v1850_v22  ;;  %v795_v22 = vrot.slane %v2120_v43, 1  ;;  %v1909_v43 = vld [vmem:[%s2348_s1 + $0x218] sm:$0xff]  }
  0x30   : >> { %1672 = vmatpush3.bf16.msra.mxu1 %v1851_v23  ;;  %1677 = vmatprep.subr.bf16.mxu0 %v1930_v2  ;;  %v1888_v23 = vld [vmem:[%s2348_s1 + $0x180] sm:$0xff]  }
  0x31   : >> { %1697 = vmatprep.subr.bf16.mxu1 %v1930_v2  ;;  %v796_v24 = vsel %vm436_vm2, %v794_v21, %v795_v22 }
  0x32   : >> { %1654 = vmatmul.mubr.bf16.vlgmr.msra.gmra.mrb[0].mxu0 %v238_v26  ;;  %v1890_v26 = vld [vmem:[%s2348_s1 + $0x188] sm:$0xff]  }
  0x33   : >> { %1674 = vmatmul.mubr.bf16.vlgmr.msra.gmra.mrb[0].mxu1 %v2029_v12  ;;  %1678 = vmatpush3.bf16.msra.mxu0 %v1854_v27  ;;  %v1879_v12 = vld [vmem:[%s2348_s1 + $0x120] sm:$0xff]   ;;  %v1891_v27 = vld [vmem:[%s2348_s1 + $0x1c8] sm:$0xff]  }
  0x34   : >> { %1698 = vmatpush3.bf16.msra.mxu1 %v1855_v28  ;;  %1679 = vmatprep.subr.bf16.mxu0 %v1930_v2  ;;  %v1892_v28 = vld [vmem:[%s2348_s1 + $0x190] sm:$0xff]  }
  0x35   : >> { %1699 = vmatprep.subr.bf16.mxu1 %v1930_v2  ;;  %1693 = vmatprep.mubr.msk.bf16.mxu0 %vm1931_vm0, %v1930_v2 }
  0x36   : >> { %1713 = vmatprep.mubr.msk.bf16.mxu1 %vm1931_vm0, %v1930_v2 }
  0x37   : >> { %1680 = vmatpush3.bf16.msra.mxu0 %v1856_v29  ;;  %v1893_v29 = vld [vmem:[%s2348_s1 + $0x1d0] sm:$0xff]  }
  0x38   : >> { %1700 = vmatpush3.bf16.msra.mxu1 %v1857_v30  ;;  %1681 = vmatprep.subr.bf16.mxu0 %v1930_v2  ;;  %v1894_v30 = vld [vmem:[%s2348_s1 + $0x198] sm:$0xff]  }
  0x39   : >> { %1701 = vmatprep.subr.bf16.mxu1 %v1930_v2 }
  0x3b   : >> { %1682 = vmatpush3.bf16.msra.mxu0 %v1858_v31  ;;  %v1895_v31 = vld [vmem:[%s2348_s1 + $0x1d8] sm:$0xff]  }
  0x3c   : >> { %1702 = vmatpush3.bf16.msra.mxu1 %v1859_v32  ;;  %1683 = vmatprep.subr.bf16.mxu0 %v1930_v2  ;;  %v1896_v32 = vld [vmem:[%s2348_s1 + $0x1a0] sm:$0xff]  }
  0x3d   : >> { %1703 = vmatprep.subr.bf16.mxu1 %v1930_v2 }
  0x3f   : >> { %1684 = vmatpush3.bf16.msra.mxu0 %v1860_v33  ;;  %v1897_v33 = vld [vmem:[%s2348_s1 + $0x1e0] sm:$0xff]  }
  0x40   : >> { %1704 = vmatpush3.bf16.msra.mxu1 %v1861_v34  ;;  %1685 = vmatprep.subr.bf16.mxu0 %v1930_v2  ;;  %v1898_v34 = vld [vmem:[%s2348_s1 + $0x1a8] sm:$0xff]  }
  0x41   : >> { %1705 = vmatprep.subr.bf16.mxu1 %v1930_v2 }
  0x43   : >> { %1686 = vmatpush3.bf16.msra.mxu0 %v1862_v37  ;;  %v1901_v37 = vld [vmem:[%s2348_s1 + $0x1f0] sm:$0xff]  }
  0x44   : >> { %1706 = vmatpush3.bf16.msra.mxu1 %v1863_v38  ;;  %1687 = vmatprep.subr.bf16.mxu0 %v1930_v2  ;;  %v1902_v38 = vld [vmem:[%s2348_s1 + $0x1b8] sm:$0xff]  }
  0x45   : >> { %1707 = vmatprep.subr.bf16.mxu1 %v1930_v2 }
  0x47   : >> { %1688 = vmatpush3.bf16.msra.mxu0 %v1864_v41  ;;  %v1907_v41 = vld [vmem:[%s2348_s1 + $0x208] sm:$0xff]  }
  0x48   : >> { %1708 = vmatpush3.bf16.msra.mxu1 %v1865_v42  ;;  %1689 = vmatprep.subr.bf16.mxu0 %v1930_v2  ;;  %v1908_v42 = vld [vmem:[%s2348_s1 + $0x210] sm:$0xff]  }
  0x49   : >> { %1709 = vmatprep.subr.bf16.mxu1 %v1930_v2 }
  0x4b   : >> { %1690 = vmatpush3.bf16.msra.mxu0 %v1866_v46  ;;  %v1912_v46 = vld [vmem:[%s2348_s1 + $0x230] sm:$0xff]  }
  0x4c   : >> { %1710 = vmatpush3.bf16.msra.mxu1 %v1867_v47  ;;  %1691 = vmatprep.subr.bf16.mxu0 %v1930_v2  ;;  %v1913_v47 = vld [vmem:[%s2348_s1 + $0x238] sm:$0xff]  }
  0x4d   : >> { %1711 = vmatprep.subr.bf16.mxu1 %v1930_v2 }
  0x4f   : >> { %1692 = vmatpush3.bf16.msra.mxu0 %v1868_v51 }
  0x50   : >> { %1712 = vmatpush3.bf16.msra.mxu1 %v1869_v53  ;;  %1717 = vmatprep.subr.bf16.mxu0 %v1930_v2 }
  0x51   : >> { %1737 = vmatprep.subr.bf16.mxu1 %v1930_v2 }
  0x52   : >> { %1694 = vmatmul.mubr.bf16.vlgmr.msra.gmra.mrb[4].mxu0 %v439_v54 }
  0x53   : >> { %1718 = vmatpush3.bf16.msra.mxu0 %v1870_v55  ;;  %1714 = vmatmul.mubr.bf16.vlgmr.msra.gmra.mrb[4].mxu1 %v2099_v35  ;;  %v1899_v35 = vld [vmem:[%s2348_s1 + $0x1e8] sm:$0xff]  }
  0x54   : >> { %1738 = vmatpush3.bf16.msra.mxu1 %v1872_v56  ;;  %1719 = vmatprep.subr.bf16.mxu0 %v1930_v2 }
  0x55   : >> { %1739 = vmatprep.subr.bf16.mxu1 %v1930_v2  ;;  %1733 = vmatprep.mubr.msk.bf16.mxu0 %vm1931_vm0, %v1930_v2 }
  0x56   : >> { %1753 = vmatprep.mubr.msk.bf16.mxu1 %vm1931_vm0, %v1930_v2 }
  0x57   : >> { %1720 = vmatpush3.bf16.msra.mxu0 %v1873_v57 }
  0x58   : >> { %1740 = vmatpush3.bf16.msra.mxu1 %v1874_v58  ;;  %1721 = vmatprep.subr.bf16.mxu0 %v1930_v2 }
  0x59   : >> { %1741 = vmatprep.subr.bf16.mxu1 %v1930_v2 }
  0x5b   : >> { %1722 = vmatpush3.bf16.msra.mxu0 %v1875_v59 }
  0x5c   : >> { %1742 = vmatpush3.bf16.msra.mxu1 %v1876_v61  ;;  %1723 = vmatprep.subr.bf16.mxu0 %v1930_v2 }
  0x5d   : >> { %1743 = vmatprep.subr.bf16.mxu1 %v1930_v2 }
  0x5f   : >> { %1724 = vmatpush3.bf16.msra.mxu0 %v1877_v5 }
  0x60   : >> { %1744 = vmatpush3.bf16.msra.mxu1 %v1878_v7  ;;  %1725 = vmatprep.subr.bf16.mxu0 %v1930_v2 }
  0x61   : >> { %1745 = vmatprep.subr.bf16.mxu1 %v1930_v2 }
  0x63   : >> { %1726 = vmatpush3.bf16.msra.mxu0 %v1879_v12 }
  0x64   : >> { %1746 = vmatpush3.bf16.msra.mxu1 %v1880_v14  ;;  %1727 = vmatprep.subr.bf16.mxu0 %v1930_v2 }
  0x65   : >> { %1747 = vmatprep.subr.bf16.mxu1 %v1930_v2 }
  0x67   : >> { %1728 = vmatpush3.bf16.msra.mxu0 %v1881_v15 }
  0x68   : >> { %1748 = vmatpush3.bf16.msra.mxu1 %v1882_v16  ;;  %1729 = vmatprep.subr.bf16.mxu0 %v1930_v2 }
  0x69   : >> { %1749 = vmatprep.subr.bf16.mxu1 %v1930_v2 }
  0x6b   : >> { %1730 = vmatpush3.bf16.msra.mxu0 %v1883_v17 }
  0x6c   : >> { %1750 = vmatpush3.bf16.msra.mxu1 %v1884_v18  ;;  %1731 = vmatprep.subr.bf16.mxu0 %v1930_v2 }
  0x6d   : >> { %1751 = vmatprep.subr.bf16.mxu1 %v1930_v2 }
  0x6f   : >> { %1732 = vmatpush3.bf16.msra.mxu0 %v1885_v19 }
  0x70   : >> { %1752 = vmatpush3.bf16.msra.mxu1 %v1886_v20  ;;  %1757 = vmatprep.subr.bf16.mxu0 %v1930_v2 }
  0x71   : >> { %1777 = vmatprep.subr.bf16.mxu1 %v1930_v2 }
  0x72   : >> { %1734 = vmatmul.mubr.bf16.vlgmr.msra.gmra.mrb[8].mxu0 %v2134_v50 }
  0x73   : >> { %1758 = vmatpush3.bf16.msra.mxu0 %v1888_v23  ;;  %1754 = vmatmul.mubr.bf16.vlgmr.msra.gmra.mrb[8].mxu1 %v796_v24 }
  0x74   : >> { %1778 = vmatpush3.bf16.msra.mxu1 %v1889_v25  ;;  %1759 = vmatprep.subr.bf16.mxu0 %v1930_v2 }
  0x75   : >> { %1779 = vmatprep.subr.bf16.mxu1 %v1930_v2  ;;  %1773 = vmatprep.mubr.msk.bf16.mxu0 %vm1931_vm0, %v1930_v2 }
  0x76   : >> { %1793 = vmatprep.mubr.msk.bf16.mxu1 %vm1931_vm0, %v1930_v2 }
  0x77   : >> { %1760 = vmatpush3.bf16.msra.mxu0 %v1890_v26 }
  0x78   : >> { %1780 = vmatpush3.bf16.msra.mxu1 %v1891_v27  ;;  %1761 = vmatprep.subr.bf16.mxu0 %v1930_v2 }
  0x79   : >> { %1781 = vmatprep.subr.bf16.mxu1 %v1930_v2 }
  0x7b   : >> { %1762 = vmatpush3.bf16.msra.mxu0 %v1892_v28 }
  0x7c   : >> { %1782 = vmatpush3.bf16.msra.mxu1 %v1893_v29  ;;  %1763 = vmatprep.subr.bf16.mxu0 %v1930_v2 }
  0x7d   : >> { %1783 = vmatprep.subr.bf16.mxu1 %v1930_v2 }
  0x7f   : >> { %1764 = vmatpush3.bf16.msra.mxu0 %v1894_v30 }
  0x80   : >> { %1784 = vmatpush3.bf16.msra.mxu1 %v1895_v31  ;;  %1765 = vmatprep.subr.bf16.mxu0 %v1930_v2 }
  0x81   : >> { %1785 = vmatprep.subr.bf16.mxu1 %v1930_v2 }
  0x83   : >> { %1766 = vmatpush3.bf16.msra.mxu0 %v1896_v32 }
  0x84   : >> { %1786 = vmatpush3.bf16.msra.mxu1 %v1897_v33  ;;  %1767 = vmatprep.subr.bf16.mxu0 %v1930_v2 }
  0x85   : >> { %1787 = vmatprep.subr.bf16.mxu1 %v1930_v2 }
  0x87   : >> { %1768 = vmatpush3.bf16.msra.mxu0 %v1898_v34 }
  0x88   : >> { %1788 = vmatpush3.bf16.msra.mxu1 %v1899_v35  ;;  %1769 = vmatprep.subr.bf16.mxu0 %v1930_v2 }
  0x89   : >> { %1789 = vmatprep.subr.bf16.mxu1 %v1930_v2 }
  0x8b   : >> { %1770 = vmatpush3.bf16.msra.mxu0 %v1900_v36 }
  0x8c   : >> { %1790 = vmatpush3.bf16.msra.mxu1 %v1901_v37  ;;  %1771 = vmatprep.subr.bf16.mxu0 %v1930_v2 }
  0x8d   : >> { %1791 = vmatprep.subr.bf16.mxu1 %v1930_v2 }
  0x8f   : >> { %1772 = vmatpush3.bf16.msra.mxu0 %v1902_v38 }
  0x90   : >> { %1792 = vmatpush3.bf16.msra.mxu1 %v1903_v39  ;;  %1797 = vmatprep.subr.bf16.mxu0 %v1930_v2 }
  0x92   : >> { %1774 = vmatmul.mubr.bf16.vlgmr.msra.gmra.mrb[12].mxu0 %v2171_v60 }
  0x93   : >> { %1798 = vmatpush3.bf16.msra.mxu0 %v1905_v40  ;;  %1794 = vmatmul.mubr.bf16.vlgmr.msra.gmra.mrb[12].mxu1 %v2191_v11 }
  0x94   : >> { %1799 = vmatprep.subr.bf16.mxu0 %v1930_v2  ;;  %1813 = vmatprep.mubr.msk.bf16.mxu0 %vm1931_vm0, %v1930_v2 }
  0x97   : >> { %1800 = vmatpush3.bf16.msra.mxu0 %v1907_v41 }
  0x98   : >> { %1801 = vmatprep.subr.bf16.mxu0 %v1930_v2 }
  0x9b   : >> { %1802 = vmatpush3.bf16.msra.mxu0 %v1908_v42 }
  0x9c   : >> { %1803 = vmatprep.subr.bf16.mxu0 %v1930_v2 }
  0x9f   : >> { %1804 = vmatpush3.bf16.msra.mxu0 %v1909_v43 }
  0xa0   : >> { %1805 = vmatprep.subr.bf16.mxu0 %v1930_v2 }
  0xa3   : >> { %1806 = vmatpush3.bf16.msra.mxu0 %v1910_v44 }
  0xa4   : >> { %1807 = vmatprep.subr.bf16.mxu0 %v1930_v2 }
  0xa7   : >> { %1808 = vmatpush3.bf16.msra.mxu0 %v1911_v45 }
  0xa8   : >> { %1809 = vmatprep.subr.bf16.mxu0 %v1930_v2 }
  0xab   : >> { %1810 = vmatpush3.bf16.msra.mxu0 %v1912_v46 }
  0xac   : >> { %1811 = vmatprep.subr.bf16.mxu0 %v1930_v2 }
  0xaf   : >> { %1812 = vmatpush3.bf16.msra.mxu0 %v1913_v47 }
  0xb2   : >> { %1814 = vmatmul.mubr.bf16.vlgmr.msra.gmra.mrb[16].mxu0 %v2197_v13 }
 0x105   : >> { %v322_v48 = vpop.f32.mrb[0].mxu0 }
 0x106   : >> { %v412_v49 = vpop.f32.mrb[0].mxu1  ;;  %v1655_v50 = vpop.f32.mrb[1].mxu0 }
 0x107   : >> { %v413_v51 = vadd.f32 %v412_v49, %v322_v48  ;;  %v1675_v52 = vpop.f32.mrb[1].mxu1  ;;  %v325_v53 = vpop.f32.mrb[2].mxu0 }
 0x108   : >> { %v415_v54 = vpop.f32.mrb[2].mxu1  ;;  %v1656_v55 = vpop.f32.mrb[3].mxu0 }
 0x109   : >> { %v416_v56 = vadd.f32 %v415_v54, %v325_v53  ;;  %v1676_v57 = vpop.f32.mrb[3].mxu1 }
 0x125   : >> { %v523_v58 = vpop.f32.mrb[4].mxu0 }
 0x126   : >> { %v530_v59 = vadd.f32 %v523_v58, %v413_v51  ;;  %v1695_v60 = vpop.f32.mrb[5].mxu0  ;;  %v644_v61 = vpop.f32.mrb[4].mxu1 }
 0x127   : >> { %v526_v62 = vpop.f32.mrb[6].mxu0  ;;  %v1715_v63 = vpop.f32.mrb[5].mxu1 }
 0x128   : >> { %v531_v2 = vadd.f32 %v526_v62, %v416_v56  ;;  %v651_v1 = vadd.f32 %v644_v61, %v530_v59  ;;  %v1696_v3 = vpop.f32.mrb[7].mxu0  ;;  %v647_v4 = vpop.f32.mrb[6].mxu1 }
 0x129   : >> { %v1716_v5 = vpop.f32.mrb[7].mxu1 }
 0x12a   : >> { %v652_v6 = vadd.f32 %v647_v4, %v531_v2 }
 0x145   : >> { %v768_v7 = vpop.f32.mrb[8].mxu0 }
 0x146   : >> { %v775_v8 = vadd.f32 %v768_v7, %v651_v1  ;;  %v1735_v9 = vpop.f32.mrb[9].mxu0  ;;  %v880_v10 = vpop.f32.mrb[8].mxu1 }
 0x147   : >> { %v771_v11 = vpop.f32.mrb[10].mxu0  ;;  %v1755_v12 = vpop.f32.mrb[9].mxu1 }
 0x148   : >> { %v776_v13 = vadd.f32 %v771_v11, %v652_v6  ;;  %v887_v14 = vadd.f32 %v880_v10, %v775_v8  ;;  %v1736_v15 = vpop.f32.mrb[11].mxu0  ;;  %v883_v16 = vpop.f32.mrb[10].mxu1 }
 0x149   : >> { %v1756_v17 = vpop.f32.mrb[11].mxu1 }
 0x14a   : >> { %v888_v18 = vadd.f32 %v883_v16, %v776_v13 }
 0x165   : >> { %v1001_v19 = vpop.f32.mrb[12].mxu0 }
 0x166   : >> { %v1008_v20 = vadd.f32 %v1001_v19, %v887_v14  ;;  %v1775_v21 = vpop.f32.mrb[13].mxu0  ;;  %v1125_v22 = vpop.f32.mrb[12].mxu1 }
 0x167   : >> { %v1004_v23 = vpop.f32.mrb[14].mxu0  ;;  %v1795_v24 = vpop.f32.mrb[13].mxu1 }
 0x168   : >> { %v1009_v25 = vadd.f32 %v1004_v23, %v888_v18  ;;  %v1132_v26 = vadd.f32 %v1125_v22, %v1008_v20  ;;  %v1776_v27 = vpop.f32.mrb[15].mxu0  ;;  %v1128_v28 = vpop.f32.mrb[14].mxu1 }
 0x169   : >> { %v1796_v29 = vpop.f32.mrb[15].mxu1 }
 0x16a   : >> { %v1133_v30 = vadd.f32 %v1128_v28, %v1009_v25 }
 0x185   : >> { %v1237_v31 = vpop.f32.mrb[16].mxu0 }
 0x186   : >> { %v1244_v32 = vadd.f32 %v1237_v31, %v1132_v26  ;;  %v1815_v33 = vpop.f32.mrb[17].mxu0  ;;  %177 = sbr.rel (!%p175_p4) target bundleno = 17 (0x11), region = 81 }
 0x187   : >> { %v1240_v34 = vpop.f32.mrb[18].mxu0 }
 0x188   : >> { %v1252_v35 = vadd.f32 %v1963_v0, %v1244_v32  ;;  %v1245_v36 = vadd.f32 %v1240_v34, %v1133_v30  ;;  %v1816_v37 = vpop.f32.mrb[19].mxu0 }
 0x18a   : >> { %1257 = vst.msk [vmem:[%s1255_s9] sm:$0xff] %vm1256_vm3, %v1252_v35  ;;  %v1253_v38 = vadd.f32 %v1963_v0, %v1245_v36 }
 0x18c   : >> { %1258 = vst.msk [vmem:[%s1255_s9 + $0x8] sm:$0xff] %vm1256_vm3, %v1253_v38 }
 0x18d PF: > { %s13_s12 = sadd.s32 1, %s1924_s12  }
 0x18e   : > { %p10_p5 = scmp.ge.s32.totalorder %s13_s12, 4  }
 0x190   :  { %12 = sbr.rel (!%p10_p5) target bundleno = 1 (0x1), region = 92 }

</bundles_post_ra>
